<compile_context>
chip_gen: v7x
topology: tpu7x:2x2x1
jax: 0.10.0
libtpu: 0.0.40
codegen_flags: <defaults>
</compile_context>

<pallas_src>
import functools

import jax
import jax.numpy as jnp
from jax.experimental import pallas as pl
from jax.experimental.pallas import tpu as pltpu  # noqa: F401  (TPU backend assumed)

EPS = 1e-5      # PyTorch BatchNorm2d default eps
SLOPE = 0.2     # LeakyReLU negative slope
LANES = 128     # TPU lane width


# ----------------------------- Pallas kernel ------------------------------

def _conv_bn_lrelu_wide_kernel(p_ref, w_ref, g_ref, gamma_ref, beta_ref, o_ref,
                               *, inv_m):
    # Conv as a lane-dense matmul on wide im2col patches: bf16 in, f32 accumulate.
    z = jnp.dot(p_ref[...], w_ref[...], preferred_element_type=jnp.float32)  # (Mr, 128)

    # Training-mode BatchNorm, single pass.  g_ref (0/1 combine matrix) sums
    # the r per-replica lane groups into per-channel totals and broadcasts
    # them back to the wide 128-lane layout (MXU is idle here); the row sum
    # finishes E[z] / E[z^2].  All stats kept in f32.
    zc = jnp.dot(z, g_ref[...], preferred_element_type=jnp.float32)
    z2c = jnp.dot(z * z, g_ref[...], preferred_element_type=jnp.float32)
    mean = jnp.sum(zc, axis=0, keepdims=True) * inv_m          # (1, 128)
    ex2 = jnp.sum(z2c, axis=0, keepdims=True) * inv_m          # (1, 128)
    var = jnp.maximum(ex2 - mean * mean, 0.0)                  # biased variance
    inv_std = jax.lax.rsqrt(var + EPS)

    y = (z - mean) * (inv_std * gamma_ref[...]) + beta_ref[...]
    o_ref[...] = jnp.where(y >= 0.0, y, SLOPE * y)             # LeakyReLU(0.2)


def _full_spec(shape):
    # Whole-array block: these per-layer operands are tiny and fit VMEM easily.
    return pl.BlockSpec(shape, lambda i: (0,) * len(shape))


def conv_bn_lrelu_wide(p_wide, w_bd, g_mat, gamma_w, beta_w, m_total):
    mr, kw = p_wide.shape
    lanes = w_bd.shape[1]
    kernel = functools.partial(_conv_bn_lrelu_wide_kernel,
                               inv_m=1.0 / float(m_total))
    return pl.pallas_call(
        kernel,
        out_shape=jax.ShapeDtypeStruct((mr, lanes), jnp.float32),
        grid=(1,),
        in_specs=[_full_spec((mr, kw)),
                  _full_spec((kw, lanes)),
                  _full_spec((lanes, lanes)),
                  _full_spec((1, lanes)),
                  _full_spec((1, lanes))],
        out_specs=_full_spec((mr, lanes)),
    )(p_wide, w_bd, g_mat, gamma_w, beta_w)


# ------------------------------- JAX glue ----------------------------------

def _extract_patches_nhwc(x, k, stride, pad):
    """x: (N,H,W,C) NHWC -> (N, OH, OW, k*k*C) patches, (kh, kw, c) order.

    Cheap XLA glue: strided slices + one lane-dim concat (no 6-D transpose).
    # TODO(synk): form patches on-chip for full cross-layer fusion.
    """
    n, h, w, c = x.shape
    xp = jnp.pad(x, ((0, 0), (pad, pad), (pad, pad), (0, 0))) if pad else x
    oh = (h + 2 * pad - k) // stride + 1
    ow = (w + 2 * pad - k) // stride + 1
    taps = [xp[:, kh:kh + stride * oh:stride, kw:kw + stride * ow:stride, :]
            for kh in range(k) for kw in range(k)]
    return jnp.concatenate(taps, axis=-1), oh, ow


def init_discriminator_params(key, in_channels=3, out_channels=8):
    """Mirrors Discriminator.__init__: 4x (Conv(k4,s2,p1,no-bias)+BN+LeakyReLU)
    with widths out_channels * 2**i, then Conv(->1, k4, s1, p0)."""
    params = []
    n_layers = 5
    cin = in_channels
    for i in range(n_layers):
        key, wk = jax.random.split(key)
        if i == n_layers - 1:
            cout = 1
            params.append({"w": 0.02 * jax.random.normal(wk, (cout, cin, 4, 4),
                                                         jnp.float32)})
        else:
            cout = out_channels * 2 ** i
            params.append({
                "w": 0.02 * jax.random.normal(wk, (cout, cin, 4, 4), jnp.float32),
                "gamma": jnp.ones((cout,), jnp.float32),   # BN weight init
                "beta": jnp.zeros((cout,), jnp.float32),   # BN bias init
            })
        cin = cout
    return params


def prepare_params(params):
    """One-time (outside jit) weight widening + BN combine-matrix construction."""
    prepped = []
    n_layers = len(params)
    for i, p in enumerate(params):
        w = p["w"]                                           # (cout, cin, kh, kw)
        cout, cin, kh, kw = w.shape
        # (kh, kw, cin, cout) flattening matches the patch (kh, kw, c) order.
        w2d = jnp.transpose(w, (2, 3, 1, 0)).reshape(kh * kw * cin, cout)
        if i == n_layers - 1:
            prepped.append({"w_col": w2d})                   # final plain conv
            continue
        r = max(1, LANES // cout)                            # lane replication
        w_bd = jnp.kron(jnp.eye(r, dtype=jnp.float32), w2d).astype(jnp.bfloat16)
        g_mat = jnp.kron(jnp.ones((r, r), jnp.float32),
                         jnp.eye(cout, dtype=jnp.float32))   # (r*cout, r*cout)
        prepped.append({
            "w_bd": w_bd,                                    # (r*K, r*cout)
            "g": g_mat,
            "gamma_rc": jnp.tile(p["gamma"][None, :], (r, 1)),   # (r, cout)
            "beta_rc": jnp.tile(p["beta"][None, :], (r, 1)),
        })
    return prepped


@jax.jit
def discriminator_forward(prepped, x):
    """x: (N, Cin, H, W) NCHW, same convention as the PyTorch module."""
    n = x.shape[0]
    h = jnp.transpose(x, (0, 2, 3, 1))                       # NCHW -> NHWC, once
    n_layers = len(prepped)
    for i in range(n_layers - 1):
        p = prepped[i]
        r, cout = p["gamma_rc"].shape
        patches, oh, ow = _extract_patches_nhwc(h, 4, 2, 1)  # (N, OH, OW, 16*Cin)
        m = n * oh * ow
        k = patches.shape[-1]
        assert m % r == 0, f"wide-layout replication r={r} must divide M={m}"
        p_wide = patches.reshape(m // r, r * k).astype(jnp.bfloat16)
        y_wide = conv_bn_lrelu_wide(
            p_wide, p["w_bd"], p["g"],
            p["gamma_rc"].reshape(1, r * cout),
            p["beta_rc"].reshape(1, r * cout),
            m_total=m)
        # Wide rows are r consecutive NHWC pixels -> this reshape is free.
        h = y_wide.reshape(n, oh, ow, cout)
    # Final layer: Conv2d(cin->1, k=4, s=1, p=0, bias=False).  A pallas_call
    # for this (M=N, K=1024, Cout=1) matmul is pure launch overhead -> jnp.dot.
    patches5, oh5, ow5 = _extract_patches_nhwc(h, 4, 1, 0)
    w_col = prepped[-1]["w_col"]                             # (16*cin, 1)
    out = patches5.reshape(n * oh5 * ow5, w_col.shape[0]) @ w_col
    return out.reshape(-1, 1)                                # == .view(-1, 1)


if __name__ == "__main__":
    key = jax.random.PRNGKey(0)
    pkey, xkey = jax.random.split(key)
    # Small config: in_channels=3, out_channels=8.  Spatial must be 64 so the
    # four stride-2 downsamples land on 4x4 before the final 4x4 valid conv.
    params = init_discriminator_params(pkey, in_channels=3, out_channels=8)
    prepped = prepare_params(params)
    x = jax.random.normal(xkey, (2, 3, 64, 64), jnp.float32)
    out = discriminator_forward(prepped, x)
    out = jax.block_until_ready(out)
    assert out.shape == (2, 1), out.shape
    print("KERNEL_OK")
</pallas_src>

<mosaic_0001>
module attributes {stable_mosaic.version = 11 : i64} {
  func.func @_conv_bn_lrelu_wide_kernel(%arg0: i32, %arg1: memref<128x768xbf16, #tpu.memory_space<vmem>>, %arg2: memref<768x128xbf16, #tpu.memory_space<vmem>>, %arg3: memref<128x128xf32, #tpu.memory_space<vmem>>, %arg4: memref<1x128xf32, #tpu.memory_space<vmem>>, %arg5: memref<1x128xf32, #tpu.memory_space<vmem>>, %arg6: memref<128x128xf32, #tpu.memory_space<vmem>>) attributes {dimension_semantics = [#tpu.dimension_semantics<arbitrary>], iteration_bounds = array<i64: 1>, scalar_prefetch = 0 : i64, scratch_operands = 0 : i64, tpu.core_type = #tpu.core_type<tc>, window_params = [{pipeline_mode = #tpu.pipeline_mode<synchronous>, transform_indices = @transform_0, window_bounds = array<i64: 128, 768>}, {pipeline_mode = #tpu.pipeline_mode<synchronous>, transform_indices = @transform_1, window_bounds = array<i64: 768, 128>}, {pipeline_mode = #tpu.pipeline_mode<synchronous>, transform_indices = @transform_2, window_bounds = array<i64: 128, 128>}, {pipeline_mode = #tpu.pipeline_mode<synchronous>, transform_indices = @transform_3, window_bounds = array<i64: 1, 128>}, {pipeline_mode = #tpu.pipeline_mode<synchronous>, transform_indices = @transform_4, window_bounds = array<i64: 1, 128>}, {pipeline_mode = #tpu.pipeline_mode<synchronous>, transform_indices = @transform_5, window_bounds = array<i64: 128, 128>}]} {
    %c0 = arith.constant 0 : index
    %c0_0 = arith.constant 0 : index
    %0 = vector.load %arg1[%c0, %c0_0] : memref<128x768xbf16, #tpu.memory_space<vmem>>, vector<128x768xbf16>
    %c0_1 = arith.constant 0 : index
    %c0_2 = arith.constant 0 : index
    %1 = vector.load %arg2[%c0_1, %c0_2] : memref<768x128xbf16, #tpu.memory_space<vmem>>, vector<768x128xbf16>
    %cst = arith.constant dense<0.000000e+00> : vector<128x128xf32>
    %2 = tpu.matmul %0, %1, %cst {dimension_numbers = #tpu.dot_dimension_numbers<[1], [0], [0], [1], [0, 0, 1, 1], [], []>} : vector<128x768xbf16>, vector<768x128xbf16>, vector<128x128xf32> -> vector<128x128xf32>
    %c0_3 = arith.constant 0 : index
    %c0_4 = arith.constant 0 : index
    %3 = vector.load %arg3[%c0_3, %c0_4] : memref<128x128xf32, #tpu.memory_space<vmem>>, vector<128x128xf32>
    %cst_5 = arith.constant dense<0.000000e+00> : vector<128x128xf32>
    %4 = tpu.matmul %2, %3, %cst_5 {dimension_numbers = #tpu.dot_dimension_numbers<[1], [0], [0], [1], [0, 0, 1, 1], [], []>} : vector<128x128xf32>, vector<128x128xf32>, vector<128x128xf32> -> vector<128x128xf32>
    %5 = arith.mulf %2, %2 : vector<128x128xf32>
    %c0_6 = arith.constant 0 : index
    %c0_7 = arith.constant 0 : index
    %6 = vector.load %arg3[%c0_6, %c0_7] : memref<128x128xf32, #tpu.memory_space<vmem>>, vector<128x128xf32>
    %cst_8 = arith.constant dense<0.000000e+00> : vector<128x128xf32>
    %7 = tpu.matmul %5, %6, %cst_8 {dimension_numbers = #tpu.dot_dimension_numbers<[1], [0], [0], [1], [0, 0, 1, 1], [], []>} : vector<128x128xf32>, vector<128x128xf32>, vector<128x128xf32> -> vector<128x128xf32>
    %cst_9 = arith.constant dense<0.000000e+00> : vector<128xf32>
    %8 = vector.multi_reduction <add>, %4, %cst_9 [0] : vector<128x128xf32> to vector<128xf32>
    %9 = vector.shape_cast %8 : vector<128xf32> to vector<1x128xf32>
    %cst_10 = arith.constant 4.8828125E-4 : f32
    %10 = vector.broadcast %cst_10 : f32 to vector<1x128xf32>
    %11 = arith.mulf %9, %10 : vector<1x128xf32>
    %cst_11 = arith.constant dense<0.000000e+00> : vector<128xf32>
    %12 = vector.multi_reduction <add>, %7, %cst_11 [0] : vector<128x128xf32> to vector<128xf32>
    %13 = vector.shape_cast %12 : vector<128xf32> to vector<1x128xf32>
    %cst_12 = arith.constant 4.8828125E-4 : f32
    %14 = vector.broadcast %cst_12 : f32 to vector<1x128xf32>
    %15 = arith.mulf %13, %14 : vector<1x128xf32>
    %16 = arith.mulf %11, %11 : vector<1x128xf32>
    %17 = arith.subf %15, %16 : vector<1x128xf32>
    %cst_13 = arith.constant 0.000000e+00 : f32
    %18 = vector.broadcast %cst_13 : f32 to vector<1x128xf32>
    %19 = arith.maximumf %17, %18 : vector<1x128xf32>
    %cst_14 = arith.constant 9.99999974E-6 : f32
    %20 = vector.broadcast %cst_14 : f32 to vector<1x128xf32>
    %21 = arith.addf %19, %20 : vector<1x128xf32>
    %22 = math.rsqrt %21 : vector<1x128xf32>
    %23 = vector.broadcast %11 : vector<1x128xf32> to vector<128x128xf32>
    %24 = arith.subf %2, %23 : vector<128x128xf32>
    %c0_15 = arith.constant 0 : index
    %c0_16 = arith.constant 0 : index
    %25 = vector.load %arg4[%c0_15, %c0_16] : memref<1x128xf32, #tpu.memory_space<vmem>>, vector<1x128xf32>
    %26 = arith.mulf %22, %25 : vector<1x128xf32>
    %27 = vector.broadcast %26 : vector<1x128xf32> to vector<128x128xf32>
    %28 = arith.mulf %24, %27 : vector<128x128xf32>
    %c0_17 = arith.constant 0 : index
    %c0_18 = arith.constant 0 : index
    %29 = vector.load %arg5[%c0_17, %c0_18] : memref<1x128xf32, #tpu.memory_space<vmem>>, vector<1x128xf32>
    %30 = vector.broadcast %29 : vector<1x128xf32> to vector<128x128xf32>
    %31 = arith.addf %28, %30 : vector<128x128xf32>
    %cst_19 = arith.constant 0.000000e+00 : f32
    %32 = vector.broadcast %cst_19 : f32 to vector<128x128xf32>
    %33 = arith.cmpf oge, %31, %32 : vector<128x128xf32>
    %cst_20 = arith.constant 2.000000e-01 : f32
    %34 = vector.broadcast %cst_20 : f32 to vector<128x128xf32>
    %35 = arith.mulf %34, %31 : vector<128x128xf32>
    %36 = arith.select %33, %31, %35 : vector<128x128xi1>, vector<128x128xf32>
    %c0_21 = arith.constant 0 : index
    %c0_22 = arith.constant 0 : index
    %37 = vector.load %arg6[%c0_21, %c0_22] : memref<128x128xf32, #tpu.memory_space<vmem>>, vector<128x128xf32>
    tpu.vector_store %arg6[%c0_21, %c0_22], %36 {strides = array<i32>} : memref<128x128xf32, #tpu.memory_space<vmem>>, vector<128x128xf32>,
    return
  }
  func.func @transform_0(%arg0: i32) -> (i32, i32) {
    %c0_i32 = arith.constant 0 : i32
    %c0_i32_0 = arith.constant 0 : i32
    %c0_i32_1 = arith.constant 0 : i32
    return %c0_i32, %c0_i32_0 : i32, i32
  }
  func.func @transform_1(%arg0: i32) -> (i32, i32) {
    %c0_i32 = arith.constant 0 : i32
    %c0_i32_0 = arith.constant 0 : i32
    %c0_i32_1 = arith.constant 0 : i32
    return %c0_i32, %c0_i32_0 : i32, i32
  }
  func.func @transform_2(%arg0: i32) -> (i32, i32) {
    %c0_i32 = arith.constant 0 : i32
    %c0_i32_0 = arith.constant 0 : i32
    %c0_i32_1 = arith.constant 0 : i32
    return %c0_i32, %c0_i32_0 : i32, i32
  }
  func.func @transform_3(%arg0: i32) -> (i32, i32) {
    %c0_i32 = arith.constant 0 : i32
    %c0_i32_0 = arith.constant 0 : i32
    %c0_i32_1 = arith.constant 0 : i32
    return %c0_i32, %c0_i32_0 : i32, i32
  }
  func.func @transform_4(%arg0: i32) -> (i32, i32) {
    %c0_i32 = arith.constant 0 : i32
    %c0_i32_0 = arith.constant 0 : i32
    %c0_i32_1 = arith.constant 0 : i32
    return %c0_i32, %c0_i32_0 : i32, i32
  }
  func.func @transform_5(%arg0: i32) -> (i32, i32) {
    %c0_i32 = arith.constant 0 : i32
    %c0_i32_0 = arith.constant 0 : i32
    %c0_i32_1 = arith.constant 0 : i32
    return %c0_i32, %c0_i32_0 : i32, i32
  }
}

module attributes {stable_mosaic.version = 11 : i64} {
  func.func @_conv_bn_lrelu_wide_kernel(%arg0: i32, %arg1: memref<64x1024xbf16, #tpu.memory_space<vmem>>, %arg2: memref<1024x128xbf16, #tpu.memory_space<vmem>>, %arg3: memref<128x128xf32, #tpu.memory_space<vmem>>, %arg4: memref<1x128xf32, #tpu.memory_space<vmem>>, %arg5: memref<1x128xf32, #tpu.memory_space<vmem>>, %arg6: memref<64x128xf32, #tpu.memory_space<vmem>>) attributes {dimension_semantics = [#tpu.dimension_semantics<arbitrary>], iteration_bounds = array<i64: 1>, scalar_prefetch = 0 : i64, scratch_operands = 0 : i64, tpu.core_type = #tpu.core_type<tc>, window_params = [{pipeline_mode = #tpu.pipeline_mode<synchronous>, transform_indices = @transform_0, window_bounds = array<i64: 64, 1024>}, {pipeline_mode = #tpu.pipeline_mode<synchronous>, transform_indices = @transform_1, window_bounds = array<i64: 1024, 128>}, {pipeline_mode = #tpu.pipeline_mode<synchronous>, transform_indices = @transform_2, window_bounds = array<i64: 128, 128>}, {pipeline_mode = #tpu.pipeline_mode<synchronous>, transform_indices = @transform_3, window_bounds = array<i64: 1, 128>}, {pipeline_mode = #tpu.pipeline_mode<synchronous>, transform_indices = @transform_4, window_bounds = array<i64: 1, 128>}, {pipeline_mode = #tpu.pipeline_mode<synchronous>, transform_indices = @transform_5, window_bounds = array<i64: 64, 128>}]} {
    %c0 = arith.constant 0 : index
    %c0_0 = arith.constant 0 : index
    %0 = vector.load %arg1[%c0, %c0_0] : memref<64x1024xbf16, #tpu.memory_space<vmem>>, vector<64x1024xbf16>
    %c0_1 = arith.constant 0 : index
    %c0_2 = arith.constant 0 : index
    %1 = vector.load %arg2[%c0_1, %c0_2] : memref<1024x128xbf16, #tpu.memory_space<vmem>>, vector<1024x128xbf16>
    %cst = arith.constant dense<0.000000e+00> : vector<64x128xf32>
    %2 = tpu.matmul %0, %1, %cst {dimension_numbers = #tpu.dot_dimension_numbers<[1], [0], [0], [1], [0, 0, 1, 1], [], []>} : vector<64x1024xbf16>, vector<1024x128xbf16>, vector<64x128xf32> -> vector<64x128xf32>
    %c0_3 = arith.constant 0 : index
    %c0_4 = arith.constant 0 : index
    %3 = vector.load %arg3[%c0_3, %c0_4] : memref<128x128xf32, #tpu.memory_space<vmem>>, vector<128x128xf32>
    %cst_5 = arith.constant dense<0.000000e+00> : vector<64x128xf32>
    %4 = tpu.matmul %2, %3, %cst_5 {dimension_numbers = #tpu.dot_dimension_numbers<[1], [0], [0], [1], [0, 0, 1, 1], [], []>} : vector<64x128xf32>, vector<128x128xf32>, vector<64x128xf32> -> vector<64x128xf32>
    %5 = arith.mulf %2, %2 : vector<64x128xf32>
    %c0_6 = arith.constant 0 : index
    %c0_7 = arith.constant 0 : index
    %6 = vector.load %arg3[%c0_6, %c0_7] : memref<128x128xf32, #tpu.memory_space<vmem>>, vector<128x128xf32>
    %cst_8 = arith.constant dense<0.000000e+00> : vector<64x128xf32>
    %7 = tpu.matmul %5, %6, %cst_8 {dimension_numbers = #tpu.dot_dimension_numbers<[1], [0], [0], [1], [0, 0, 1, 1], [], []>} : vector<64x128xf32>, vector<128x128xf32>, vector<64x128xf32> -> vector<64x128xf32>
    %cst_9 = arith.constant dense<0.000000e+00> : vector<128xf32>
    %8 = vector.multi_reduction <add>, %4, %cst_9 [0] : vector<64x128xf32> to vector<128xf32>
    %9 = vector.shape_cast %8 : vector<128xf32> to vector<1x128xf32>
    %cst_10 = arith.constant 0.001953125 : f32
    %10 = vector.broadcast %cst_10 : f32 to vector<1x128xf32>
    %11 = arith.mulf %9, %10 : vector<1x128xf32>
    %cst_11 = arith.constant dense<0.000000e+00> : vector<128xf32>
    %12 = vector.multi_reduction <add>, %7, %cst_11 [0] : vector<64x128xf32> to vector<128xf32>
    %13 = vector.shape_cast %12 : vector<128xf32> to vector<1x128xf32>
    %cst_12 = arith.constant 0.001953125 : f32
    %14 = vector.broadcast %cst_12 : f32 to vector<1x128xf32>
    %15 = arith.mulf %13, %14 : vector<1x128xf32>
    %16 = arith.mulf %11, %11 : vector<1x128xf32>
    %17 = arith.subf %15, %16 : vector<1x128xf32>
    %cst_13 = arith.constant 0.000000e+00 : f32
    %18 = vector.broadcast %cst_13 : f32 to vector<1x128xf32>
    %19 = arith.maximumf %17, %18 : vector<1x128xf32>
    %cst_14 = arith.constant 9.99999974E-6 : f32
    %20 = vector.broadcast %cst_14 : f32 to vector<1x128xf32>
    %21 = arith.addf %19, %20 : vector<1x128xf32>
    %22 = math.rsqrt %21 : vector<1x128xf32>
    %23 = vector.broadcast %11 : vector<1x128xf32> to vector<64x128xf32>
    %24 = arith.subf %2, %23 : vector<64x128xf32>
    %c0_15 = arith.constant 0 : index
    %c0_16 = arith.constant 0 : index
    %25 = vector.load %arg4[%c0_15, %c0_16] : memref<1x128xf32, #tpu.memory_space<vmem>>, vector<1x128xf32>
    %26 = arith.mulf %22, %25 : vector<1x128xf32>
    %27 = vector.broadcast %26 : vector<1x128xf32> to vector<64x128xf32>
    %28 = arith.mulf %24, %27 : vector<64x128xf32>
    %c0_17 = arith.constant 0 : index
    %c0_18 = arith.constant 0 : index
    %29 = vector.load %arg5[%c0_17, %c0_18] : memref<1x128xf32, #tpu.memory_space<vmem>>, vector<1x128xf32>
    %30 = vector.broadcast %29 : vector<1x128xf32> to vector<64x128xf32>
    %31 = arith.addf %28, %30 : vector<64x128xf32>
    %cst_19 = arith.constant 0.000000e+00 : f32
    %32 = vector.broadcast %cst_19 : f32 to vector<64x128xf32>
    %33 = arith.cmpf oge, %31, %32 : vector<64x128xf32>
    %cst_20 = arith.constant 2.000000e-01 : f32
    %34 = vector.broadcast %cst_20 : f32 to vector<64x128xf32>
    %35 = arith.mulf %34, %31 : vector<64x128xf32>
    %36 = arith.select %33, %31, %35 : vector<64x128xi1>, vector<64x128xf32>
    %c0_21 = arith.constant 0 : index
    %c0_22 = arith.constant 0 : index
    %37 = vector.load %arg6[%c0_21, %c0_22] : memref<64x128xf32, #tpu.memory_space<vmem>>, vector<64x128xf32>
    tpu.vector_store %arg6[%c0_21, %c0_22], %36 {strides = array<i32>} : memref<64x128xf32, #tpu.memory_space<vmem>>, vector<64x128xf32>,
    return
  }
  func.func @transform_0(%arg0: i32) -> (i32, i32) {
    %c0_i32 = arith.constant 0 : i32
    %c0_i32_0 = arith.constant 0 : i32
    %c0_i32_1 = arith.constant 0 : i32
    return %c0_i32, %c0_i32_0 : i32, i32
  }
  func.func @transform_1(%arg0: i32) -> (i32, i32) {
    %c0_i32 = arith.constant 0 : i32
    %c0_i32_0 = arith.constant 0 : i32
    %c0_i32_1 = arith.constant 0 : i32
    return %c0_i32, %c0_i32_0 : i32, i32
  }
  func.func @transform_2(%arg0: i32) -> (i32, i32) {
    %c0_i32 = arith.constant 0 : i32
    %c0_i32_0 = arith.constant 0 : i32
    %c0_i32_1 = arith.constant 0 : i32
    return %c0_i32, %c0_i32_0 : i32, i32
  }
  func.func @transform_3(%arg0: i32) -> (i32, i32) {
    %c0_i32 = arith.constant 0 : i32
    %c0_i32_0 = arith.constant 0 : i32
    %c0_i32_1 = arith.constant 0 : i32
    return %c0_i32, %c0_i32_0 : i32, i32
  }
  func.func @transform_4(%arg0: i32) -> (i32, i32) {
    %c0_i32 = arith.constant 0 : i32
    %c0_i32_0 = arith.constant 0 : i32
    %c0_i32_1 = arith.constant 0 : i32
    return %c0_i32, %c0_i32_0 : i32, i32
  }
  func.func @transform_5(%arg0: i32) -> (i32, i32) {
    %c0_i32 = arith.constant 0 : i32
    %c0_i32_0 = arith.constant 0 : i32
    %c0_i32_1 = arith.constant 0 : i32
    return %c0_i32, %c0_i32_0 : i32, i32
  }
}

module attributes {stable_mosaic.version = 11 : i64} {
  func.func @_conv_bn_lrelu_wide_kernel(%arg0: i32, %arg1: memref<32x1024xbf16, #tpu.memory_space<vmem>>, %arg2: memref<1024x128xbf16, #tpu.memory_space<vmem>>, %arg3: memref<128x128xf32, #tpu.memory_space<vmem>>, %arg4: memref<1x128xf32, #tpu.memory_space<vmem>>, %arg5: memref<1x128xf32, #tpu.memory_space<vmem>>, %arg6: memref<32x128xf32, #tpu.memory_space<vmem>>) attributes {dimension_semantics = [#tpu.dimension_semantics<arbitrary>], iteration_bounds = array<i64: 1>, scalar_prefetch = 0 : i64, scratch_operands = 0 : i64, tpu.core_type = #tpu.core_type<tc>, window_params = [{pipeline_mode = #tpu.pipeline_mode<synchronous>, transform_indices = @transform_0, window_bounds = array<i64: 32, 1024>}, {pipeline_mode = #tpu.pipeline_mode<synchronous>, transform_indices = @transform_1, window_bounds = array<i64: 1024, 128>}, {pipeline_mode = #tpu.pipeline_mode<synchronous>, transform_indices = @transform_2, window_bounds = array<i64: 128, 128>}, {pipeline_mode = #tpu.pipeline_mode<synchronous>, transform_indices = @transform_3, window_bounds = array<i64: 1, 128>}, {pipeline_mode = #tpu.pipeline_mode<synchronous>, transform_indices = @transform_4, window_bounds = array<i64: 1, 128>}, {pipeline_mode = #tpu.pipeline_mode<synchronous>, transform_indices = @transform_5, window_bounds = array<i64: 32, 128>}]} {
    %c0 = arith.constant 0 : index
    %c0_0 = arith.constant 0 : index
    %0 = vector.load %arg1[%c0, %c0_0] : memref<32x1024xbf16, #tpu.memory_space<vmem>>, vector<32x1024xbf16>
    %c0_1 = arith.constant 0 : index
    %c0_2 = arith.constant 0 : index
    %1 = vector.load %arg2[%c0_1, %c0_2] : memref<1024x128xbf16, #tpu.memory_space<vmem>>, vector<1024x128xbf16>
    %cst = arith.constant dense<0.000000e+00> : vector<32x128xf32>
    %2 = tpu.matmul %0, %1, %cst {dimension_numbers = #tpu.dot_dimension_numbers<[1], [0], [0], [1], [0, 0, 1, 1], [], []>} : vector<32x1024xbf16>, vector<1024x128xbf16>, vector<32x128xf32> -> vector<32x128xf32>
    %c0_3 = arith.constant 0 : index
    %c0_4 = arith.constant 0 : index
    %3 = vector.load %arg3[%c0_3, %c0_4] : memref<128x128xf32, #tpu.memory_space<vmem>>, vector<128x128xf32>
    %cst_5 = arith.constant dense<0.000000e+00> : vector<32x128xf32>
    %4 = tpu.matmul %2, %3, %cst_5 {dimension_numbers = #tpu.dot_dimension_numbers<[1], [0], [0], [1], [0, 0, 1, 1], [], []>} : vector<32x128xf32>, vector<128x128xf32>, vector<32x128xf32> -> vector<32x128xf32>
    %5 = arith.mulf %2, %2 : vector<32x128xf32>
    %c0_6 = arith.constant 0 : index
    %c0_7 = arith.constant 0 : index
    %6 = vector.load %arg3[%c0_6, %c0_7] : memref<128x128xf32, #tpu.memory_space<vmem>>, vector<128x128xf32>
    %cst_8 = arith.constant dense<0.000000e+00> : vector<32x128xf32>
    %7 = tpu.matmul %5, %6, %cst_8 {dimension_numbers = #tpu.dot_dimension_numbers<[1], [0], [0], [1], [0, 0, 1, 1], [], []>} : vector<32x128xf32>, vector<128x128xf32>, vector<32x128xf32> -> vector<32x128xf32>
    %cst_9 = arith.constant dense<0.000000e+00> : vector<128xf32>
    %8 = vector.multi_reduction <add>, %4, %cst_9 [0] : vector<32x128xf32> to vector<128xf32>
    %9 = vector.shape_cast %8 : vector<128xf32> to vector<1x128xf32>
    %cst_10 = arith.constant 7.812500e-03 : f32
    %10 = vector.broadcast %cst_10 : f32 to vector<1x128xf32>
    %11 = arith.mulf %9, %10 : vector<1x128xf32>
    %cst_11 = arith.constant dense<0.000000e+00> : vector<128xf32>
    %12 = vector.multi_reduction <add>, %7, %cst_11 [0] : vector<32x128xf32> to vector<128xf32>
    %13 = vector.shape_cast %12 : vector<128xf32> to vector<1x128xf32>
    %cst_12 = arith.constant 7.812500e-03 : f32
    %14 = vector.broadcast %cst_12 : f32 to vector<1x128xf32>
    %15 = arith.mulf %13, %14 : vector<1x128xf32>
    %16 = arith.mulf %11, %11 : vector<1x128xf32>
    %17 = arith.subf %15, %16 : vector<1x128xf32>
    %cst_13 = arith.constant 0.000000e+00 : f32
    %18 = vector.broadcast %cst_13 : f32 to vector<1x128xf32>
    %19 = arith.maximumf %17, %18 : vector<1x128xf32>
    %cst_14 = arith.constant 9.99999974E-6 : f32
    %20 = vector.broadcast %cst_14 : f32 to vector<1x128xf32>
    %21 = arith.addf %19, %20 : vector<1x128xf32>
    %22 = math.rsqrt %21 : vector<1x128xf32>
    %23 = vector.broadcast %11 : vector<1x128xf32> to vector<32x128xf32>
    %24 = arith.subf %2, %23 : vector<32x128xf32>
    %c0_15 = arith.constant 0 : index
    %c0_16 = arith.constant 0 : index
    %25 = vector.load %arg4[%c0_15, %c0_16] : memref<1x128xf32, #tpu.memory_space<vmem>>, vector<1x128xf32>
    %26 = arith.mulf %22, %25 : vector<1x128xf32>
    %27 = vector.broadcast %26 : vector<1x128xf32> to vector<32x128xf32>
    %28 = arith.mulf %24, %27 : vector<32x128xf32>
    %c0_17 = arith.constant 0 : index
    %c0_18 = arith.constant 0 : index
    %29 = vector.load %arg5[%c0_17, %c0_18] : memref<1x128xf32, #tpu.memory_space<vmem>>, vector<1x128xf32>
    %30 = vector.broadcast %29 : vector<1x128xf32> to vector<32x128xf32>
    %31 = arith.addf %28, %30 : vector<32x128xf32>
    %cst_19 = arith.constant 0.000000e+00 : f32
    %32 = vector.broadcast %cst_19 : f32 to vector<32x128xf32>
    %33 = arith.cmpf oge, %31, %32 : vector<32x128xf32>
    %cst_20 = arith.constant 2.000000e-01 : f32
    %34 = vector.broadcast %cst_20 : f32 to vector<32x128xf32>
    %35 = arith.mulf %34, %31 : vector<32x128xf32>
    %36 = arith.select %33, %31, %35 : vector<32x128xi1>, vector<32x128xf32>
    %c0_21 = arith.constant 0 : index
    %c0_22 = arith.constant 0 : index
    %37 = vector.load %arg6[%c0_21, %c0_22] : memref<32x128xf32, #tpu.memory_space<vmem>>, vector<32x128xf32>
    tpu.vector_store %arg6[%c0_21, %c0_22], %36 {strides = array<i32>} : memref<32x128xf32, #tpu.memory_space<vmem>>, vector<32x128xf32>,
    return
  }
  func.func @transform_0(%arg0: i32) -> (i32, i32) {
    %c0_i32 = arith.constant 0 : i32
    %c0_i32_0 = arith.constant 0 : i32
    %c0_i32_1 = arith.constant 0 : i32
    return %c0_i32, %c0_i32_0 : i32, i32
  }
  func.func @transform_1(%arg0: i32) -> (i32, i32) {
    %c0_i32 = arith.constant 0 : i32
    %c0_i32_0 = arith.constant 0 : i32
    %c0_i32_1 = arith.constant 0 : i32
    return %c0_i32, %c0_i32_0 : i32, i32
  }
  func.func @transform_2(%arg0: i32) -> (i32, i32) {
    %c0_i32 = arith.constant 0 : i32
    %c0_i32_0 = arith.constant 0 : i32
    %c0_i32_1 = arith.constant 0 : i32
    return %c0_i32, %c0_i32_0 : i32, i32
  }
  func.func @transform_3(%arg0: i32) -> (i32, i32) {
    %c0_i32 = arith.constant 0 : i32
    %c0_i32_0 = arith.constant 0 : i32
    %c0_i32_1 = arith.constant 0 : i32
    return %c0_i32, %c0_i32_0 : i32, i32
  }
  func.func @transform_4(%arg0: i32) -> (i32, i32) {
    %c0_i32 = arith.constant 0 : i32
    %c0_i32_0 = arith.constant 0 : i32
    %c0_i32_1 = arith.constant 0 : i32
    return %c0_i32, %c0_i32_0 : i32, i32
  }
  func.func @transform_5(%arg0: i32) -> (i32, i32) {
    %c0_i32 = arith.constant 0 : i32
    %c0_i32_0 = arith.constant 0 : i32
    %c0_i32_1 = arith.constant 0 : i32
    return %c0_i32, %c0_i32_0 : i32, i32
  }
}

module attributes {stable_mosaic.version = 11 : i64} {
  func.func @_conv_bn_lrelu_wide_kernel(%arg0: i32, %arg1: memref<16x1024xbf16, #tpu.memory_space<vmem>>, %arg2: memref<1024x128xbf16, #tpu.memory_space<vmem>>, %arg3: memref<128x128xf32, #tpu.memory_space<vmem>>, %arg4: memref<1x128xf32, #tpu.memory_space<vmem>>, %arg5: memref<1x128xf32, #tpu.memory_space<vmem>>, %arg6: memref<16x128xf32, #tpu.memory_space<vmem>>) attributes {dimension_semantics = [#tpu.dimension_semantics<arbitrary>], iteration_bounds = array<i64: 1>, scalar_prefetch = 0 : i64, scratch_operands = 0 : i64, tpu.core_type = #tpu.core_type<tc>, window_params = [{pipeline_mode = #tpu.pipeline_mode<synchronous>, transform_indices = @transform_0, window_bounds = array<i64: 16, 1024>}, {pipeline_mode = #tpu.pipeline_mode<synchronous>, transform_indices = @transform_1, window_bounds = array<i64: 1024, 128>}, {pipeline_mode = #tpu.pipeline_mode<synchronous>, transform_indices = @transform_2, window_bounds = array<i64: 128, 128>}, {pipeline_mode = #tpu.pipeline_mode<synchronous>, transform_indices = @transform_3, window_bounds = array<i64: 1, 128>}, {pipeline_mode = #tpu.pipeline_mode<synchronous>, transform_indices = @transform_4, window_bounds = array<i64: 1, 128>}, {pipeline_mode = #tpu.pipeline_mode<synchronous>, transform_indices = @transform_5, window_bounds = array<i64: 16, 128>}]} {
    %c0 = arith.constant 0 : index
    %c0_0 = arith.constant 0 : index
    %0 = vector.load %arg1[%c0, %c0_0] : memref<16x1024xbf16, #tpu.memory_space<vmem>>, vector<16x1024xbf16>
    %c0_1 = arith.constant 0 : index
    %c0_2 = arith.constant 0 : index
    %1 = vector.load %arg2[%c0_1, %c0_2] : memref<1024x128xbf16, #tpu.memory_space<vmem>>, vector<1024x128xbf16>
    %cst = arith.constant dense<0.000000e+00> : vector<16x128xf32>
    %2 = tpu.matmul %0, %1, %cst {dimension_numbers = #tpu.dot_dimension_numbers<[1], [0], [0], [1], [0, 0, 1, 1], [], []>} : vector<16x1024xbf16>, vector<1024x128xbf16>, vector<16x128xf32> -> vector<16x128xf32>
    %c0_3 = arith.constant 0 : index
    %c0_4 = arith.constant 0 : index
    %3 = vector.load %arg3[%c0_3, %c0_4] : memref<128x128xf32, #tpu.memory_space<vmem>>, vector<128x128xf32>
    %cst_5 = arith.constant dense<0.000000e+00> : vector<16x128xf32>
    %4 = tpu.matmul %2, %3, %cst_5 {dimension_numbers = #tpu.dot_dimension_numbers<[1], [0], [0], [1], [0, 0, 1, 1], [], []>} : vector<16x128xf32>, vector<128x128xf32>, vector<16x128xf32> -> vector<16x128xf32>
    %5 = arith.mulf %2, %2 : vector<16x128xf32>
    %c0_6 = arith.constant 0 : index
    %c0_7 = arith.constant 0 : index
    %6 = vector.load %arg3[%c0_6, %c0_7] : memref<128x128xf32, #tpu.memory_space<vmem>>, vector<128x128xf32>
    %cst_8 = arith.constant dense<0.000000e+00> : vector<16x128xf32>
    %7 = tpu.matmul %5, %6, %cst_8 {dimension_numbers = #tpu.dot_dimension_numbers<[1], [0], [0], [1], [0, 0, 1, 1], [], []>} : vector<16x128xf32>, vector<128x128xf32>, vector<16x128xf32> -> vector<16x128xf32>
    %cst_9 = arith.constant dense<0.000000e+00> : vector<128xf32>
    %8 = vector.multi_reduction <add>, %4, %cst_9 [0] : vector<16x128xf32> to vector<128xf32>
    %9 = vector.shape_cast %8 : vector<128xf32> to vector<1x128xf32>
    %cst_10 = arith.constant 3.125000e-02 : f32
    %10 = vector.broadcast %cst_10 : f32 to vector<1x128xf32>
    %11 = arith.mulf %9, %10 : vector<1x128xf32>
    %cst_11 = arith.constant dense<0.000000e+00> : vector<128xf32>
    %12 = vector.multi_reduction <add>, %7, %cst_11 [0] : vector<16x128xf32> to vector<128xf32>
    %13 = vector.shape_cast %12 : vector<128xf32> to vector<1x128xf32>
    %cst_12 = arith.constant 3.125000e-02 : f32
    %14 = vector.broadcast %cst_12 : f32 to vector<1x128xf32>
    %15 = arith.mulf %13, %14 : vector<1x128xf32>
    %16 = arith.mulf %11, %11 : vector<1x128xf32>
    %17 = arith.subf %15, %16 : vector<1x128xf32>
    %cst_13 = arith.constant 0.000000e+00 : f32
    %18 = vector.broadcast %cst_13 : f32 to vector<1x128xf32>
    %19 = arith.maximumf %17, %18 : vector<1x128xf32>
    %cst_14 = arith.constant 9.99999974E-6 : f32
    %20 = vector.broadcast %cst_14 : f32 to vector<1x128xf32>
    %21 = arith.addf %19, %20 : vector<1x128xf32>
    %22 = math.rsqrt %21 : vector<1x128xf32>
    %23 = vector.broadcast %11 : vector<1x128xf32> to vector<16x128xf32>
    %24 = arith.subf %2, %23 : vector<16x128xf32>
    %c0_15 = arith.constant 0 : index
    %c0_16 = arith.constant 0 : index
    %25 = vector.load %arg4[%c0_15, %c0_16] : memref<1x128xf32, #tpu.memory_space<vmem>>, vector<1x128xf32>
    %26 = arith.mulf %22, %25 : vector<1x128xf32>
    %27 = vector.broadcast %26 : vector<1x128xf32> to vector<16x128xf32>
    %28 = arith.mulf %24, %27 : vector<16x128xf32>
    %c0_17 = arith.constant 0 : index
    %c0_18 = arith.constant 0 : index
    %29 = vector.load %arg5[%c0_17, %c0_18] : memref<1x128xf32, #tpu.memory_space<vmem>>, vector<1x128xf32>
    %30 = vector.broadcast %29 : vector<1x128xf32> to vector<16x128xf32>
    %31 = arith.addf %28, %30 : vector<16x128xf32>
    %cst_19 = arith.constant 0.000000e+00 : f32
    %32 = vector.broadcast %cst_19 : f32 to vector<16x128xf32>
    %33 = arith.cmpf oge, %31, %32 : vector<16x128xf32>
    %cst_20 = arith.constant 2.000000e-01 : f32
    %34 = vector.broadcast %cst_20 : f32 to vector<16x128xf32>
    %35 = arith.mulf %34, %31 : vector<16x128xf32>
    %36 = arith.select %33, %31, %35 : vector<16x128xi1>, vector<16x128xf32>
    %c0_21 = arith.constant 0 : index
    %c0_22 = arith.constant 0 : index
    %37 = vector.load %arg6[%c0_21, %c0_22] : memref<16x128xf32, #tpu.memory_space<vmem>>, vector<16x128xf32>
    tpu.vector_store %arg6[%c0_21, %c0_22], %36 {strides = array<i32>} : memref<16x128xf32, #tpu.memory_space<vmem>>, vector<16x128xf32>,
    return
  }
  func.func @transform_0(%arg0: i32) -> (i32, i32) {
    %c0_i32 = arith.constant 0 : i32
    %c0_i32_0 = arith.constant 0 : i32
    %c0_i32_1 = arith.constant 0 : i32
    return %c0_i32, %c0_i32_0 : i32, i32
  }
  func.func @transform_1(%arg0: i32) -> (i32, i32) {
    %c0_i32 = arith.constant 0 : i32
    %c0_i32_0 = arith.constant 0 : i32
    %c0_i32_1 = arith.constant 0 : i32
    return %c0_i32, %c0_i32_0 : i32, i32
  }
  func.func @transform_2(%arg0: i32) -> (i32, i32) {
    %c0_i32 = arith.constant 0 : i32
    %c0_i32_0 = arith.constant 0 : i32
    %c0_i32_1 = arith.constant 0 : i32
    return %c0_i32, %c0_i32_0 : i32, i32
  }
  func.func @transform_3(%arg0: i32) -> (i32, i32) {
    %c0_i32 = arith.constant 0 : i32
    %c0_i32_0 = arith.constant 0 : i32
    %c0_i32_1 = arith.constant 0 : i32
    return %c0_i32, %c0_i32_0 : i32, i32
  }
  func.func @transform_4(%arg0: i32) -> (i32, i32) {
    %c0_i32 = arith.constant 0 : i32
    %c0_i32_0 = arith.constant 0 : i32
    %c0_i32_1 = arith.constant 0 : i32
    return %c0_i32, %c0_i32_0 : i32, i32
  }
  func.func @transform_5(%arg0: i32) -> (i32, i32) {
    %c0_i32 = arith.constant 0 : i32
    %c0_i32_0 = arith.constant 0 : i32
    %c0_i32_1 = arith.constant 0 : i32
    return %c0_i32, %c0_i32_0 : i32, i32
  }
}

</mosaic_0001>

<bundles_post_ra>
// kernel: discriminator_forward.4
= control target key start
LH: loop header
LB: loop body
LE: loop exit
PB: predicated region body
PF: predicated region fallthrough
CT: control target
= control target key end

     0   :  { %s2763_s1 = inlined_call_operand.vmem [shape: bf16[768,128], index: 1, kind: input, shape index: {}]   ;;  %s2764_s0 = inlined_call_operand.vmem [shape: bf16[128,768], index: 0, kind: input, shape index: {}]   ;;  %s2765_s2 = inlined_call_operand.vmem [shape: f32[128,128], index: 2, kind: input, shape index: {}]   ;;  %s2766_s3 = inlined_call_operand.vmem [shape: f32[1,128], index: 3, kind: input, shape index: {}]   ;;  %s2767_s4 = inlined_call_operand.vmem [shape: f32[1,128], index: 4, kind: input, shape index: {}]   ;;  %s2768_s5 = inlined_call_operand.vmem [shape: f32[128,128], index: 5, kind: output, shape index: {}]  }
   0x1   :  { %v2013_v0 = vld [vmem:[%s2763_s1 + $0x40] sm:$0xff]   ;;  %v2017_v4 = vld [vmem:[%s2763_s1 + $0x48] sm:$0xff]   ;;  %v2021_v8 = vld [vmem:[%s2763_s1 + $0x50] sm:$0xff]  }
   0x2   :  { %v2014_v1 = vld [vmem:[%s2763_s1 + $0xc0] sm:$0xff]   ;;  %1581 = vmatprep.subr.bf16.mxu0 %v2013_v0  ;;  %v2018_v5 = vld [vmem:[%s2763_s1 + $0xc8] sm:$0xff]   ;;  %v2022_v9 = vld [vmem:[%s2763_s1 + $0xd0] sm:$0xff]  }
   0x3   :  { %v2015_v2 = vld [vmem:[%s2763_s1] sm:$0xff]   ;;  %1645 = vmatprep.subr.bf16.mxu1 %v2014_v1  ;;  %v2019_v6 = vld [vmem:[%s2763_s1 + $0x8] sm:$0xff]   ;;  %v2023_v10 = vld [vmem:[%s2763_s1 + $0x10] sm:$0xff]  }
   0x4   :  { %v2016_v3 = vld [vmem:[%s2763_s1 + $0x80] sm:$0xff]   ;;  %1582 = vmatpush3.bf16.msra.mxu0 %v2015_v2  ;;  %v2020_v7 = vld [vmem:[%s2763_s1 + $0x88] sm:$0xff]   ;;  %v2024_v11 = vld [vmem:[%s2763_s1 + $0x90] sm:$0xff]  }
   0x5   :  { %1646 = vmatpush3.bf16.msra.mxu1 %v2016_v3  ;;  %1583 = vmatprep.subr.bf16.mxu0 %v2017_v4  ;;  %v2025_v12 = vld [vmem:[%s2763_s1 + $0x58] sm:$0xff]   ;;  %v2029_v16 = vld [vmem:[%s2763_s1 + $0x60] sm:$0xff]   ;;  %v2033_v20 = vld [vmem:[%s2763_s1 + $0x68] sm:$0xff]  }
   0x6   :  { %1647 = vmatprep.subr.bf16.mxu1 %v2018_v5  ;;  %v2026_v13 = vld [vmem:[%s2763_s1 + $0xd8] sm:$0xff]   ;;  %v2030_v17 = vld [vmem:[%s2763_s1 + $0xe0] sm:$0xff]   ;;  %v2034_v21 = vld [vmem:[%s2763_s1 + $0xe8] sm:$0xff]  }
   0x7   :  { %v2027_v14 = vld [vmem:[%s2763_s1 + $0x18] sm:$0xff]   ;;  %v2031_v18 = vld [vmem:[%s2763_s1 + $0x20] sm:$0xff]   ;;  %v2035_v22 = vld [vmem:[%s2763_s1 + $0x28] sm:$0xff]  }
   0x8   :  { %1584 = vmatpush3.bf16.msra.mxu0 %v2019_v6  ;;  %v2028_v15 = vld [vmem:[%s2763_s1 + $0x98] sm:$0xff]   ;;  %v2032_v19 = vld [vmem:[%s2763_s1 + $0xa0] sm:$0xff]   ;;  %v2036_v23 = vld [vmem:[%s2763_s1 + $0xa8] sm:$0xff]  }
   0x9   :  { %1648 = vmatpush3.bf16.msra.mxu1 %v2020_v7  ;;  %1585 = vmatprep.subr.bf16.mxu0 %v2021_v8  ;;  %v2037_v24 = vld [vmem:[%s2763_s1 + $0x70] sm:$0xff]   ;;  %v2041_v28 = vld [vmem:[%s2763_s1 + $0x78] sm:$0xff]   ;;  %v2048_v34 = vld [vmem:[%s2764_s0 + $0x8] ss:$24 sps:$4 sm:$0xff]  }
   0xa   :  { %1649 = vmatprep.subr.bf16.mxu1 %v2022_v9  ;;  %v2038_v25 = vld [vmem:[%s2763_s1 + $0xf0] sm:$0xff]   ;;  %v2042_v29 = vld [vmem:[%s2763_s1 + $0xf8] sm:$0xff]   ;;  %v2050_v35 = vld [vmem:[%s2764_s0 + $0xc] ss:$24 sps:$4 sm:$0xff]  }
   0xb   :  { %v2039_v26 = vld [vmem:[%s2763_s1 + $0x30] sm:$0xff]   ;;  %v2043_v30 = vld [vmem:[%s2763_s1 + $0x38] sm:$0xff]   ;;  %v2051_v36 = vld [vmem:[%s2763_s1 + $0x140] sm:$0xff]   ;;  %822 = vmatprep.mubr.bf16.mxu1 %v2050_v35 }
   0xc   :  { %1586 = vmatpush3.bf16.msra.mxu0 %v2023_v10  ;;  %v2040_v27 = vld [vmem:[%s2763_s1 + $0xb0] sm:$0xff]   ;;  %v2044_v31 = vld [vmem:[%s2763_s1 + $0xb8] sm:$0xff]   ;;  %v2052_v37 = vld [vmem:[%s2763_s1 + $0x100] sm:$0xff]  }
   0xd   :  { %1650 = vmatpush3.bf16.msra.mxu1 %v2024_v11  ;;  %1587 = vmatprep.subr.bf16.mxu0 %v2025_v12  ;;  %v2045_v32 = vld [vmem:[%s2764_s0] ss:$24 sps:$4 sm:$0xff]   ;;  %v2047_v33 = vld [vmem:[%s2764_s0 + $0x4] ss:$24 sps:$4 sm:$0xff]   ;;  %v2053_v38 = vld [vmem:[%s2764_s0 + $0x34] ss:$24 sps:$4 sm:$0xff]  }
   0xe   :  { %1651 = vmatprep.subr.bf16.mxu1 %v2026_v13  ;;  %725 = vmatprep.mubr.bf16.mxu0 %v2047_v33  ;;  %v2055_v39 = vld [vmem:[%s2764_s0 + $0x3c] ss:$24 sps:$4 sm:$0xff]   ;;  %v2057_v40 = vld [vmem:[%s2764_s0 + $0x30] ss:$24 sps:$4 sm:$0xff]   ;;  %v2063_v45 = vld [vmem:[%s2764_s0 + $0x6c] ss:$24 sps:$4 sm:$0xff]  }
   0xf   :  { %v2058_v41 = vld [vmem:[%s2764_s0 + $0x38] ss:$24 sps:$4 sm:$0xff]   ;;  %v2059_v42 = vld [vmem:[%s2763_s1 + $0x148] sm:$0xff]   ;;  %v2061_v44 = vld [vmem:[%s2764_s0 + $0x64] ss:$24 sps:$4 sm:$0xff]  }
  0x10   :  { %1588 = vmatpush3.bf16.msra.mxu0 %v2027_v14  ;;  %v2060_v43 = vld [vmem:[%s2763_s1 + $0x108] sm:$0xff]   ;;  %v2067_v46 = vld [vmem:[%s2763_s1 + $0x150] sm:$0xff]   ;;  %v2065_v48 = vld [vmem:[%s2764_s0 + $0x60] ss:$24 sps:$4 sm:$0xff]  }
  0x11   :  { %1652 = vmatpush3.bf16.msra.mxu1 %v2028_v15  ;;  %1589 = vmatprep.subr.bf16.mxu0 %v2029_v16  ;;  %v2068_v47 = vld [vmem:[%s2763_s1 + $0x110] sm:$0xff]   ;;  %v2066_v49 = vld [vmem:[%s2764_s0 + $0x68] ss:$24 sps:$4 sm:$0xff]   ;;  %v2075_v52 = vld [vmem:[%s2763_s1 + $0x158] sm:$0xff]  }
  0x12   :  { %1653 = vmatprep.subr.bf16.mxu1 %v2030_v17  ;;  %v2069_v50 = vld [vmem:[%s2764_s0 + $0x94] ss:$24 sps:$4 sm:$0xff]   ;;  %v2076_v53 = vld [vmem:[%s2763_s1 + $0x118] sm:$0xff]   ;;  %v2083_v54 = vld [vmem:[%s2763_s1 + $0x160] sm:$0xff]  }
  0x13   :  { %v2071_v51 = vld [vmem:[%s2764_s0 + $0x9c] ss:$24 sps:$4 sm:$0xff]   ;;  %v2084_v55 = vld [vmem:[%s2763_s1 + $0x120] sm:$0xff]   ;;  %v2073_v56 = vld [vmem:[%s2764_s0 + $0x90] ss:$24 sps:$4 sm:$0xff]  }
  0x14   :  { %1590 = vmatpush3.bf16.msra.mxu0 %v2031_v18  ;;  %v2074_v57 = vld [vmem:[%s2764_s0 + $0x98] ss:$24 sps:$4 sm:$0xff]   ;;  %v2077_v58 = vld [vmem:[%s2764_s0 + $0xc4] ss:$24 sps:$4 sm:$0xff]   ;;  %v2091_v60 = vld [vmem:[%s2763_s1 + $0x168] sm:$0xff]  }
  0x15   :  { %1654 = vmatpush3.bf16.msra.mxu1 %v2032_v19  ;;  %1591 = vmatprep.subr.bf16.mxu0 %v2033_v20  ;;  %v2079_v59 = vld [vmem:[%s2764_s0 + $0xcc] ss:$24 sps:$4 sm:$0xff]   ;;  %v2081_v62 = vld [vmem:[%s2764_s0 + $0xc0] ss:$24 sps:$4 sm:$0xff]   ;;  %v2099_v0 = vld [vmem:[%s2763_s1 + $0x170] sm:$0xff]  }
  0x16   :  { %1655 = vmatprep.subr.bf16.mxu1 %v2034_v21  ;;  %v2092_v61 = vld [vmem:[%s2763_s1 + $0x128] sm:$0xff]   ;;  %v2100_v1 = vld [vmem:[%s2763_s1 + $0x130] sm:$0xff]   ;;  %v2107_v4 = vld [vmem:[%s2763_s1 + $0x178] sm:$0xff]  }
  0x17   :  { %v2082_v63 = vld [vmem:[%s2764_s0 + $0xc8] ss:$24 sps:$4 sm:$0xff]   ;;  %v2085_v2 = vld [vmem:[%s2764_s0 + $0xf4] ss:$24 sps:$4 sm:$0xff]   ;;  %v2108_v5 = vld [vmem:[%s2763_s1 + $0x138] sm:$0xff]  }
  0x18   :  { %1592 = vmatpush3.bf16.msra.mxu0 %v2035_v22  ;;  %v2087_v3 = vld [vmem:[%s2764_s0 + $0xfc] ss:$24 sps:$4 sm:$0xff]   ;;  %v2089_v6 = vld [vmem:[%s2764_s0 + $0xf0] ss:$24 sps:$4 sm:$0xff]   ;;  %v2095_v9 = vld [vmem:[%s2764_s0 + $0x12c] ss:$24 sps:$4 sm:$0xff]  }
  0x19   :  { %1656 = vmatpush3.bf16.msra.mxu1 %v2036_v23  ;;  %1593 = vmatprep.subr.bf16.mxu0 %v2037_v24  ;;  %v2090_v7 = vld [vmem:[%s2764_s0 + $0xf8] ss:$24 sps:$4 sm:$0xff]   ;;  %v2093_v8 = vld [vmem:[%s2764_s0 + $0x124] ss:$24 sps:$4 sm:$0xff]   ;;  %v2098_v11 = vld [vmem:[%s2764_s0 + $0x128] ss:$24 sps:$4 sm:$0xff]  }
  0x1a   :  { %1657 = vmatprep.subr.bf16.mxu1 %v2038_v25  ;;  %v2097_v10 = vld [vmem:[%s2764_s0 + $0x120] ss:$24 sps:$4 sm:$0xff]   ;;  %v2101_v12 = vld [vmem:[%s2764_s0 + $0x154] ss:$24 sps:$4 sm:$0xff]   ;;  %v2105_v14 = vld [vmem:[%s2764_s0 + $0x150] ss:$24 sps:$4 sm:$0xff]  }
  0x1b   :  { %v2103_v13 = vld [vmem:[%s2764_s0 + $0x15c] ss:$24 sps:$4 sm:$0xff]   ;;  %v2106_v15 = vld [vmem:[%s2764_s0 + $0x158] ss:$24 sps:$4 sm:$0xff]   ;;  %v985_v33 = vld [vmem:[%s2765_s2 + $0x8] sm:$0xff] }
  0x1c   :  { %1594 = vmatpush3.bf16.msra.mxu0 %v2039_v26  ;;  %v2111_v16 = vld [vmem:[%s2764_s0 + $0x14] ss:$24 sps:$4 sm:$0xff]   ;;  %v2109_v17 = vld [vmem:[%s2764_s0 + $0x10] ss:$24 sps:$4 sm:$0xff]   ;;  %v2112_v18 = vld [vmem:[%s2764_s0 + $0x44] ss:$24 sps:$4 sm:$0xff]  }
  0x1d   :  { %1658 = vmatpush3.bf16.msra.mxu1 %v2040_v27  ;;  %1595 = vmatprep.subr.bf16.mxu0 %v2041_v28  ;;  %v2114_v19 = vld [vmem:[%s2764_s0 + $0x40] ss:$24 sps:$4 sm:$0xff]   ;;  %v2115_v20 = vld [vmem:[%s2764_s0 + $0x74] ss:$24 sps:$4 sm:$0xff]   ;;  %v2117_v21 = vld [vmem:[%s2764_s0 + $0x70] ss:$24 sps:$4 sm:$0xff]  }
  0x1e   :  { %1659 = vmatprep.subr.bf16.mxu1 %v2042_v29  ;;  %v2118_v22 = vld [vmem:[%s2764_s0 + $0xa4] ss:$24 sps:$4 sm:$0xff]   ;;  %v2120_v23 = vld [vmem:[%s2764_s0 + $0xa0] ss:$24 sps:$4 sm:$0xff]   ;;  %v2121_v24 = vld [vmem:[%s2764_s0 + $0xd4] ss:$24 sps:$4 sm:$0xff]  }
  0x1f   :  { %v2123_v25 = vld [vmem:[%s2764_s0 + $0xd0] ss:$24 sps:$4 sm:$0xff]   ;;  %v2124_v26 = vld [vmem:[%s2764_s0 + $0x104] ss:$24 sps:$4 sm:$0xff]   ;;  %v2126_v27 = vld [vmem:[%s2764_s0 + $0x100] ss:$24 sps:$4 sm:$0xff]  }
  0x20   :  { %1596 = vmatpush3.bf16.msra.mxu0 %v2043_v30  ;;  %v2127_v28 = vld [vmem:[%s2764_s0 + $0x134] ss:$24 sps:$4 sm:$0xff]   ;;  %v2129_v29 = vld [vmem:[%s2764_s0 + $0x130] ss:$24 sps:$4 sm:$0xff]   ;;  %v2130_v30 = vld [vmem:[%s2764_s0 + $0x164] ss:$24 sps:$4 sm:$0xff]  }
  0x21   :  { %1660 = vmatpush3.bf16.msra.mxu1 %v2044_v31  ;;  %1709 = vmatprep.subr.bf16.mxu0 %v2051_v36  ;;  %v2132_v31 = vld [vmem:[%s2764_s0 + $0x160] ss:$24 sps:$4 sm:$0xff]   ;;  %v986_v35 = vld [vmem:[%s2765_s2 + $0x10] sm:$0xff] }
  0x22   :  { %v987_v36 = vld [vmem:[%s2765_s2 + $0x18] sm:$0xff] }
  0x23   :  { %726 = vmatmul.mubr.bf16.vlgmr.msra.gmra.mrb[0].mxu0 %v2045_v32  ;;  %v984_v32 = vld [vmem:[%s2765_s2] sm:$0xff] }
  0x24   :  { %823 = vmatmul.mubr.bf16.vlgmr.msra.gmra.mrb[0].mxu1 %v2048_v34  ;;  %1710 = vmatpush3.bf16.msra.mxu0 %v2052_v37  ;;  %v2459_v34 = vpack.c.bf16 %v985_v33, %v984_v32  ;;  %v2469_v37 = vpack.c.bf16 %v987_v36, %v986_v35 }
  0x25   :  { %733 = vmatprep.mubr.bf16.mxu0 %v2053_v38  ;;  %830 = vmatprep.mubr.bf16.mxu1 %v2055_v39  ;;  %v988_v38 = vld [vmem:[%s2765_s2 + $0x20] sm:$0xff]  ;;  %v989_v39 = vld [vmem:[%s2765_s2 + $0x28] sm:$0xff] }
  0x26   :  { %1711 = vmatprep.subr.bf16.mxu0 %v2059_v42  ;;  %1950 = vmatprep.subr.bf16.mxu1 %v2459_v34  ;;  %v991_v42 = vld [vmem:[%s2765_s2 + $0x38] sm:$0xff] }
  0x27   :  { %1952 = vmatpush3.bf16.msra.mxu1 %v2459_v34 }
  0x28   :  { %1712 = vmatpush3.bf16.msra.mxu0 %v2060_v43  ;;  %1954 = vmatprep.subr.bf16.mxu1 %v2469_v37 }
  0x29   :  { %1713 = vmatprep.subr.bf16.mxu0 %v2067_v46 }
  0x2b   :  { %734 = vmatmul.mubr.bf16.gmra.mrb[4].mxu0 %v2057_v40  ;;  %1956 = vmatpush3.bf16.msra.mxu1 %v2469_v37  ;;  %v2479_v40 = vpack.c.bf16 %v989_v39, %v988_v38 }
  0x2c   :  { %831 = vmatmul.mubr.bf16.gmra.mrb[4].mxu1 %v2058_v41  ;;  %741 = vmatprep.mubr.bf16.mxu0 %v2061_v44  ;;  %v990_v41 = vld [vmem:[%s2765_s2 + $0x30] sm:$0xff]  ;;  %v992_v44 = vld [vmem:[%s2765_s2 + $0x40] sm:$0xff] }
  0x2d   :  { %838 = vmatprep.mubr.bf16.mxu1 %v2063_v45  ;;  %1714 = vmatpush3.bf16.msra.mxu0 %v2068_v47  ;;  %v2489_v43 = vpack.c.bf16 %v991_v42, %v990_v41  ;;  %v993_v45 = vld [vmem:[%s2765_s2 + $0x48] sm:$0xff]  ;;  %v994_v47 = vld [vmem:[%s2765_s2 + $0x50] sm:$0xff] }
  0x2e   :  { %1715 = vmatprep.subr.bf16.mxu0 %v2075_v52  ;;  %1958 = vmatprep.subr.bf16.mxu1 %v2479_v40  ;;  %v2499_v46 = vpack.c.bf16 %v993_v45, %v992_v44 }
  0x2f   :  { %1960 = vmatpush3.bf16.msra.mxu1 %v2479_v40 }
  0x30   :  { %1962 = vmatprep.subr.bf16.mxu1 %v2489_v43 }
  0x31   :  { %1716 = vmatpush3.bf16.msra.mxu0 %v2076_v53  ;;  %v998_v53 = vld [vmem:[%s2765_s2 + $0x70] sm:$0xff] }
  0x32   :  { %1717 = vmatprep.subr.bf16.mxu0 %v2083_v54  ;;  %v999_v54 = vld [vmem:[%s2765_s2 + $0x78] sm:$0xff] }
  0x33   :  { %742 = vmatmul.mubr.bf16.gmra.mrb[8].mxu0 %v2065_v48  ;;  %1964 = vmatpush3.bf16.msra.mxu1 %v2489_v43  ;;  %v995_v48 = vld [vmem:[%s2765_s2 + $0x58] sm:$0xff] }
  0x34   :  { %839 = vmatmul.mubr.bf16.gmra.mrb[8].mxu1 %v2066_v49  ;;  %749 = vmatprep.mubr.bf16.mxu0 %v2069_v50  ;;  %v2509_v49 = vpack.c.bf16 %v995_v48, %v994_v47  ;;  %v996_v50 = vld [vmem:[%s2765_s2 + $0x60] sm:$0xff] }
  0x35   :  { %846 = vmatprep.mubr.bf16.mxu1 %v2071_v51  ;;  %1718 = vmatpush3.bf16.msra.mxu0 %v2084_v55  ;;  %v997_v51 = vld [vmem:[%s2765_s2 + $0x68] sm:$0xff]  ;;  %v2529_v55 = vpack.c.bf16 %v999_v54, %v998_v53 }
  0x36   :  { %1719 = vmatprep.subr.bf16.mxu0 %v2091_v60  ;;  %1966 = vmatprep.subr.bf16.mxu1 %v2499_v46  ;;  %v2519_v52 = vpack.c.bf16 %v997_v51, %v996_v50 }
  0x37   :  { %1968 = vmatpush3.bf16.msra.mxu1 %v2499_v46 }
  0x38   :  { %1970 = vmatprep.subr.bf16.mxu1 %v2509_v49 }
  0x39   :  { %1720 = vmatpush3.bf16.msra.mxu0 %v2092_v61 }
  0x3a   :  { %1721 = vmatprep.subr.bf16.mxu0 %v2099_v0 }
  0x3b   :  { %750 = vmatmul.mubr.bf16.gmra.mrb[12].mxu0 %v2073_v56  ;;  %1972 = vmatpush3.bf16.msra.mxu1 %v2509_v49 }
  0x3c   :  { %847 = vmatmul.mubr.bf16.gmra.mrb[12].mxu1 %v2074_v57  ;;  %757 = vmatprep.mubr.bf16.mxu0 %v2077_v58 }
  0x3d   :  { %854 = vmatprep.mubr.bf16.mxu1 %v2079_v59  ;;  %1722 = vmatpush3.bf16.msra.mxu0 %v2100_v1 }
  0x3e   :  { %1723 = vmatprep.subr.bf16.mxu0 %v2107_v4  ;;  %1974 = vmatprep.subr.bf16.mxu1 %v2519_v52 }
  0x3f   :  { %1976 = vmatpush3.bf16.msra.mxu1 %v2519_v52 }
  0x40   :  { %1978 = vmatprep.subr.bf16.mxu1 %v2529_v55 }
  0x41   :  { %1724 = vmatpush3.bf16.msra.mxu0 %v2108_v5 }
  0x43   :  { %758 = vmatmul.mubr.bf16.gmra.mrb[16].mxu0 %v2081_v62  ;;  %1980 = vmatpush3.bf16.msra.mxu1 %v2529_v55 }
  0x44   :  { %855 = vmatmul.mubr.bf16.gmra.mrb[16].mxu1 %v2082_v63  ;;  %765 = vmatprep.mubr.bf16.mxu0 %v2085_v2 }
  0x45   :  { %862 = vmatprep.mubr.bf16.mxu1 %v2087_v3  ;;  %1982 = vmatprep.subr.bf16.mxu1 %v2459_v34 }
  0x4b   :  { %766 = vmatmul.mubr.bf16.gmra.mrb[20].mxu0 %v2089_v6 }
  0x4c   :  { %863 = vmatmul.mubr.bf16.gmra.mrb[20].mxu1 %v2090_v7  ;;  %773 = vmatprep.mubr.bf16.mxu0 %v2093_v8 }
  0x4d   :  { %870 = vmatprep.mubr.bf16.mxu1 %v2095_v9 }
  0x53   :  { %774 = vmatmul.mubr.bf16.gmra.mrb[24].mxu0 %v2097_v10 }
  0x54   :  { %871 = vmatmul.mubr.bf16.gmra.mrb[24].mxu1 %v2098_v11  ;;  %781 = vmatprep.mubr.bf16.mxu0 %v2101_v12 }
  0x55   :  { %878 = vmatprep.mubr.bf16.mxu1 %v2103_v13 }
  0x5b   :  { %782 = vmatmul.mubr.bf16.gmra.mrb[28].mxu0 %v2105_v14 }
  0x5c   :  { %879 = vmatmul.mubr.bf16.gmra.mrb[28].mxu1 %v2106_v15  ;;  %919 = vmatprep.mubr.bf16.mxu0 %v2111_v16 }
  0x63   :  { %920 = vmatmul.mubr.bf16.vlgmr.msra.gmra.mrb[32].mxu0 %v2109_v17 }
  0x64   :  { %927 = vmatprep.mubr.bf16.mxu0 %v2112_v18 }
  0x6b   :  { %928 = vmatmul.mubr.bf16.gmra.mrb[36].mxu0 %v2114_v19 }
  0x6c   :  { %935 = vmatprep.mubr.bf16.mxu0 %v2115_v20 }
  0x73   :  { %936 = vmatmul.mubr.bf16.gmra.mrb[40].mxu0 %v2117_v21 }
  0x74   :  { %943 = vmatprep.mubr.bf16.mxu0 %v2118_v22 }
  0x7b   :  { %944 = vmatmul.mubr.bf16.gmra.mrb[44].mxu0 %v2120_v23 }
  0x7c   :  { %951 = vmatprep.mubr.bf16.mxu0 %v2121_v24 }
  0x83   :  { %952 = vmatmul.mubr.bf16.gmra.mrb[48].mxu0 %v2123_v25 }
  0x84   :  { %959 = vmatprep.mubr.bf16.mxu0 %v2124_v26 }
  0x8b   :  { %960 = vmatmul.mubr.bf16.gmra.mrb[52].mxu0 %v2126_v27 }
  0x8c   :  { %967 = vmatprep.mubr.bf16.mxu0 %v2127_v28 }
  0x93   :  { %968 = vmatmul.mubr.bf16.gmra.mrb[56].mxu0 %v2129_v29 }
  0x94   :  { %975 = vmatprep.mubr.bf16.mxu0 %v2130_v30 }
  0x9b   :  { %976 = vmatmul.mubr.bf16.gmra.mrb[60].mxu0 %v2132_v31 }
  0xf6   :  { %v1597_v56 = vpop.f32.mrb[0].mxu0 }
  0xf7   :  { %v1661_v57 = vpop.f32.mrb[0].mxu1  ;;  %v1598_v58 = vpop.f32.mrb[1].mxu0 }
  0xf8   :  { %v1599_v59 = vadd.f32 %v1598_v58, %v1597_v56  ;;  %v1662_v60 = vpop.f32.mrb[1].mxu1  ;;  %v1600_v61 = vpop.f32.mrb[2].mxu0 }
  0xf9   :  { %v1663_v62 = vadd.f32 %v1662_v60, %v1661_v57  ;;  %v1664_v63 = vpop.f32.mrb[2].mxu1  ;;  %v1601_v0 = vpop.f32.mrb[3].mxu0 }
  0xfa   :  { %v1602_v1 = vadd.f32 %v1601_v0, %v1600_v61  ;;  %v1665_v2 = vpop.f32.mrb[3].mxu1 }
  0xfb   :  { %v2534_v3 = vadd.f32 %v1663_v62, %v1599_v59  ;;  %v1666_v4 = vadd.f32 %v1665_v2, %v1664_v63 }
  0xfd   :  { %v2536_v5 = vadd.f32 %v1666_v4, %v1602_v1 }
  0xfe   :  { %v1603_v6 = vpop.f32.mrb[4].mxu0 }
  0xff   :  { %v1667_v7 = vpop.f32.mrb[4].mxu1  ;;  %v1604_v8 = vpop.f32.mrb[5].mxu0 }
 0x100   :  { %v1605_v9 = vadd.f32 %v1604_v8, %v1603_v6  ;;  %v1668_v10 = vpop.f32.mrb[5].mxu1  ;;  %v1606_v11 = vpop.f32.mrb[6].mxu0 }
 0x101   :  { %v1669_v12 = vadd.f32 %v1668_v10, %v1667_v7  ;;  %v1670_v13 = vpop.f32.mrb[6].mxu1  ;;  %v1607_v14 = vpop.f32.mrb[7].mxu0 }
 0x102   :  { %v1608_v15 = vadd.f32 %v1607_v14, %v1606_v11  ;;  %v1671_v16 = vpop.f32.mrb[7].mxu1 }
 0x103   :  { %v2538_v17 = vadd.f32 %v1669_v12, %v1605_v9  ;;  %v1672_v18 = vadd.f32 %v1671_v16, %v1670_v13 }
 0x105   :  { %v2540_v19 = vadd.f32 %v1672_v18, %v1608_v15 }
 0x106   :  { %v1609_v20 = vpop.f32.mrb[8].mxu0 }
 0x107   :  { %v1673_v21 = vpop.f32.mrb[8].mxu1  ;;  %v1610_v22 = vpop.f32.mrb[9].mxu0 }
 0x108   :  { %v1611_v23 = vadd.f32 %v1610_v22, %v1609_v20  ;;  %v1674_v24 = vpop.f32.mrb[9].mxu1  ;;  %v1612_v25 = vpop.f32.mrb[10].mxu0 }
 0x109   :  { %v1675_v26 = vadd.f32 %v1674_v24, %v1673_v21  ;;  %v1676_v27 = vpop.f32.mrb[10].mxu1  ;;  %v1613_v28 = vpop.f32.mrb[11].mxu0 }
 0x10a   :  { %v1614_v29 = vadd.f32 %v1613_v28, %v1612_v25  ;;  %v1677_v30 = vpop.f32.mrb[11].mxu1 }
 0x10b   :  { %v2542_v31 = vadd.f32 %v1675_v26, %v1611_v23  ;;  %v1678_v32 = vadd.f32 %v1677_v30, %v1676_v27 }
 0x10d   :  { %v2544_v33 = vadd.f32 %v1678_v32, %v1614_v29 }
 0x10e   :  { %v1615_v35 = vpop.f32.mrb[12].mxu0 }
 0x10f   :  { %v1679_v36 = vpop.f32.mrb[12].mxu1  ;;  %v1616_v38 = vpop.f32.mrb[13].mxu0 }
 0x110   :  { %v1617_v39 = vadd.f32 %v1616_v38, %v1615_v35  ;;  %v1680_v41 = vpop.f32.mrb[13].mxu1  ;;  %v1618_v42 = vpop.f32.mrb[14].mxu0 }
 0x111   :  { %v1681_v44 = vadd.f32 %v1680_v41, %v1679_v36  ;;  %v1682_v45 = vpop.f32.mrb[14].mxu1  ;;  %v1619_v47 = vpop.f32.mrb[15].mxu0 }
 0x112   :  { %v1620_v48 = vadd.f32 %v1619_v47, %v1618_v42  ;;  %v1683_v50 = vpop.f32.mrb[15].mxu1 }
 0x113   :  { %v2546_v51 = vadd.f32 %v1681_v44, %v1617_v39  ;;  %v1684_v53 = vadd.f32 %v1683_v50, %v1682_v45 }
 0x115   :  { %v2548_v54 = vadd.f32 %v1684_v53, %v1620_v48 }
 0x116   :  { %v1621_v56 = vpop.f32.mrb[16].mxu0 }
 0x117   :  { %v1685_v57 = vpop.f32.mrb[16].mxu1  ;;  %v1622_v58 = vpop.f32.mrb[17].mxu0 }
 0x118   :  { %v1623_v59 = vadd.f32 %v1622_v58, %v1621_v56  ;;  %v1686_v60 = vpop.f32.mrb[17].mxu1  ;;  %v1624_v61 = vpop.f32.mrb[18].mxu0 }
 0x119   :  { %v1687_v62 = vadd.f32 %v1686_v60, %v1685_v57  ;;  %v1688_v63 = vpop.f32.mrb[18].mxu1  ;;  %v1625_v0 = vpop.f32.mrb[19].mxu0 }
 0x11a   :  { %v1626_v1 = vadd.f32 %v1625_v0, %v1624_v61  ;;  %v1689_v2 = vpop.f32.mrb[19].mxu1 }
 0x11b   :  { %v2550_v4 = vadd.f32 %v1687_v62, %v1623_v59  ;;  %v1690_v6 = vadd.f32 %v1689_v2, %v1688_v63 }
 0x11d   :  { %v2552_v7 = vadd.f32 %v1690_v6, %v1626_v1 }
 0x11e   :  { %v1627_v8 = vpop.f32.mrb[20].mxu0 }
 0x11f   :  { %v1691_v9 = vpop.f32.mrb[20].mxu1  ;;  %v1628_v10 = vpop.f32.mrb[21].mxu0 }
 0x120   :  { %v1629_v11 = vadd.f32 %v1628_v10, %v1627_v8  ;;  %v1692_v12 = vpop.f32.mrb[21].mxu1  ;;  %v1630_v13 = vpop.f32.mrb[22].mxu0 }
 0x121   :  { %v1693_v14 = vadd.f32 %v1692_v12, %v1691_v9  ;;  %v1694_v15 = vpop.f32.mrb[22].mxu1  ;;  %v1631_v16 = vpop.f32.mrb[23].mxu0 }
 0x122   :  { %v1632_v18 = vadd.f32 %v1631_v16, %v1630_v13  ;;  %v1695_v20 = vpop.f32.mrb[23].mxu1 }
 0x123   :  { %v2554_v21 = vadd.f32 %v1693_v14, %v1629_v11  ;;  %v1696_v22 = vadd.f32 %v1695_v20, %v1694_v15 }
 0x125   :  { %v2556_v23 = vadd.f32 %v1696_v22, %v1632_v18 }
 0x126   :  { %v1633_v24 = vpop.f32.mrb[24].mxu0 }
 0x127   :  { %v1697_v25 = vpop.f32.mrb[24].mxu1  ;;  %v1634_v26 = vpop.f32.mrb[25].mxu0 }
 0x128   :  { %v1635_v27 = vadd.f32 %v1634_v26, %v1633_v24  ;;  %v1698_v28 = vpop.f32.mrb[25].mxu1  ;;  %v1636_v29 = vpop.f32.mrb[26].mxu0 }
 0x129   :  { %v1699_v30 = vadd.f32 %v1698_v28, %v1697_v25  ;;  %v1700_v32 = vpop.f32.mrb[26].mxu1  ;;  %v1637_v35 = vpop.f32.mrb[27].mxu0 }
 0x12a   :  { %v1638_v36 = vadd.f32 %v1637_v35, %v1636_v29  ;;  %v1701_v38 = vpop.f32.mrb[27].mxu1 }
 0x12b   :  { %v2558_v39 = vadd.f32 %v1699_v30, %v1635_v27  ;;  %v1702_v41 = vadd.f32 %v1701_v38, %v1700_v32 }
 0x12d   :  { %v2560_v42 = vadd.f32 %v1702_v41, %v1638_v36 }
 0x12e   :  { %v1639_v44 = vpop.f32.mrb[28].mxu0 }
 0x12f   :  { %v1703_v45 = vpop.f32.mrb[28].mxu1  ;;  %v1640_v47 = vpop.f32.mrb[29].mxu0 }
 0x130   :  { %v1641_v48 = vadd.f32 %v1640_v47, %v1639_v44  ;;  %v1704_v50 = vpop.f32.mrb[29].mxu1  ;;  %v1642_v53 = vpop.f32.mrb[30].mxu0 }
 0x131   :  { %v1705_v56 = vadd.f32 %v1704_v50, %v1703_v45  ;;  %v1706_v57 = vpop.f32.mrb[30].mxu1  ;;  %v1643_v58 = vpop.f32.mrb[31].mxu0 }
 0x132   :  { %v1644_v59 = vadd.f32 %v1643_v58, %v1642_v53  ;;  %v1707_v60 = vpop.f32.mrb[31].mxu1 }
 0x133   :  { %v2562_v61 = vadd.f32 %v1705_v56, %v1641_v48  ;;  %v1708_v62 = vadd.f32 %v1707_v60, %v1706_v57 }
 0x135   :  { %v2564_v63 = vadd.f32 %v1708_v62, %v1644_v59 }
 0x136   :  { %v1725_v0 = vpop.f32.mrb[32].mxu0 }
 0x137   :  { %v1726_v1 = vpop.f32.mrb[33].mxu0 }
 0x138   :  { %v1727_v2 = vadd.f32 %v1726_v1, %v1725_v0  ;;  %v1728_v6 = vpop.f32.mrb[34].mxu0 }
 0x139   :  { %v1729_v8 = vpop.f32.mrb[35].mxu0 }
 0x13a   :  { %v2567_v9 = vadd.f32 %v1727_v2, %v2534_v3  ;;  %v1730_v10 = vadd.f32 %v1729_v8, %v1728_v6 }
 0x13c   :  { %v2570_v11 = vadd.f32 %v1730_v10, %v2536_v5  ;;  %1869 = vmatprep.mubr.f32.mxu1 %v2567_v9 }
 0x13e   :  { %v1731_v12 = vpop.f32.mrb[36].mxu0  ;;  %1870 = vmatmul.mubr.f32.vlgmr.msra.gmra.mrb[32].mxu1 %v2570_v11  ;;  %v1146_v6 = vmul.f32 %v2570_v11, %v2570_v11 }
 0x13f   :  { %v1732_v13 = vpop.f32.mrb[37].mxu0  ;;  %1984 = vmatpush3.bf16.msra.mxu1 %v2459_v34 }
 0x140   :  { %v1733_v14 = vadd.f32 %v1732_v13, %v1731_v12  ;;  %v1734_v15 = vpop.f32.mrb[38].mxu0  ;;  %1986 = vmatprep.subr.bf16.mxu1 %v2469_v37 }
 0x141   :  { %v1735_v16 = vpop.f32.mrb[39].mxu0 }
 0x142   :  { %v2577_v3 = vadd.f32 %v1733_v14, %v2538_v17  ;;  %v1736_v18 = vadd.f32 %v1735_v16, %v1734_v15 }
 0x143   :  { %1988 = vmatpush3.bf16.msra.mxu1 %v2469_v37 }
 0x144   :  { %v2581_v5 = vadd.f32 %v1736_v18, %v2540_v19  ;;  %1872 = vmatprep.mubr.f32.mxu1 %v2577_v3  ;;  %1990 = vmatprep.subr.bf16.mxu1 %v2479_v40  ;;  %v1147_v8 = vmul.f32 %v2577_v3, %v2577_v3 }
 0x146   :  { %v1737_v20 = vpop.f32.mrb[40].mxu0  ;;  %1873 = vmatmul.mubr.f32.gmra.mrb[34].mxu1 %v2581_v5 }
 0x147   :  { %v1738_v34 = vpop.f32.mrb[41].mxu0  ;;  %1992 = vmatpush3.bf16.msra.mxu1 %v2479_v40 }
 0x148   :  { %v1739_v22 = vadd.f32 %v1738_v34, %v1737_v20  ;;  %v1740_v24 = vpop.f32.mrb[42].mxu0  ;;  %1994 = vmatprep.subr.bf16.mxu1 %v2489_v43 }
 0x149   :  { %v1741_v17 = vpop.f32.mrb[43].mxu0 }
 0x14a   :  { %v2589_v37 = vadd.f32 %v1739_v22, %v2542_v31  ;;  %v1742_v19 = vadd.f32 %v1741_v17, %v1740_v24 }
 0x14b   :  { %1996 = vmatpush3.bf16.msra.mxu1 %v2489_v43 }
 0x14c   :  { %v2593_v25 = vadd.f32 %v1742_v19, %v2544_v33  ;;  %1875 = vmatprep.mubr.f32.mxu1 %v2589_v37  ;;  %1998 = vmatprep.subr.bf16.mxu1 %v2499_v46 }
 0x14e   :  { %v1743_v26 = vpop.f32.mrb[44].mxu0  ;;  %1876 = vmatmul.mubr.f32.gmra.mrb[36].mxu1 %v2593_v25  ;;  %v1150_v10 = vmul.f32 %v2593_v25, %v2593_v25 }
 0x14f   :  { %v1744_v40 = vpop.f32.mrb[45].mxu0  ;;  %2000 = vmatpush3.bf16.msra.mxu1 %v2499_v46 }
 0x150   :  { %v1745_v27 = vadd.f32 %v1744_v40, %v1743_v26  ;;  %v1746_v28 = vpop.f32.mrb[46].mxu0  ;;  %2002 = vmatprep.subr.bf16.mxu1 %v2509_v49 }
 0x151   :  { %v1747_v31 = vpop.f32.mrb[47].mxu0 }
 0x152   :  { %v2601_v43 = vadd.f32 %v1745_v27, %v2546_v51  ;;  %v1748_v33 = vadd.f32 %v1747_v31, %v1746_v28 }
 0x153   :  { %2004 = vmatpush3.bf16.msra.mxu1 %v2509_v49 }
 0x154   :  { %v2605_v29 = vadd.f32 %v1748_v33, %v2548_v54  ;;  %1878 = vmatprep.mubr.f32.mxu1 %v2601_v43  ;;  %2006 = vmatprep.subr.bf16.mxu1 %v2519_v52  ;;  %v1151_v12 = vmul.f32 %v2601_v43, %v2601_v43 }
 0x156   :  { %v1749_v30 = vpop.f32.mrb[48].mxu0  ;;  %1879 = vmatmul.mubr.f32.gmra.mrb[38].mxu1 %v2605_v29  ;;  %v1152_v13 = vmul.f32 %v2605_v29, %v2605_v29 }
 0x157   :  { %v1750_v46 = vpop.f32.mrb[49].mxu0  ;;  %2008 = vmatpush3.bf16.msra.mxu1 %v2519_v52 }
 0x158   :  { %v1751_v32 = vadd.f32 %v1750_v46, %v1749_v30  ;;  %v1752_v35 = vpop.f32.mrb[50].mxu0  ;;  %2010 = vmatprep.subr.bf16.mxu1 %v2529_v55 }
 0x159   :  { %v1753_v51 = vpop.f32.mrb[51].mxu0 }
 0x15a   :  { %v2613_v49 = vadd.f32 %v1751_v32, %v2550_v4  ;;  %v1754_v54 = vadd.f32 %v1753_v51, %v1752_v35 }
 0x15b   :  { %2012 = vmatpush3.bf16.msra.mxu1 %v2529_v55 }
 0x15c   :  { %v2617_v36 = vadd.f32 %v1754_v54, %v2552_v7  ;;  %1881 = vmatprep.mubr.f32.mxu1 %v2613_v49  ;;  %v1153_v14 = vmul.f32 %v2613_v49, %v2613_v49 }
 0x15e   :  { %v1755_v38 = vpop.f32.mrb[52].mxu0  ;;  %1882 = vmatmul.mubr.f32.gmra.mrb[40].mxu1 %v2617_v36  ;;  %v1154_v15 = vmul.f32 %v2617_v36, %v2617_v36 }
 0x15f   :  { %v1756_v52 = vpop.f32.mrb[53].mxu0 }
 0x160   :  { %v1757_v41 = vadd.f32 %v1756_v52, %v1755_v38  ;;  %v1758_v44 = vpop.f32.mrb[54].mxu0 }
 0x161   :  { %v1759_v45 = vpop.f32.mrb[55].mxu0 }
 0x162   :  { %v2622_v47 = vadd.f32 %v1757_v41, %v2554_v21  ;;  %v1760_v4 = vadd.f32 %v1759_v45, %v1758_v44 }
 0x164   :  { %v2625_v48 = vadd.f32 %v1760_v4, %v2556_v23  ;;  %1884 = vmatprep.mubr.f32.mxu1 %v2622_v47  ;;  %v1155_v16 = vmul.f32 %v2622_v47, %v2622_v47 }
 0x166   :  { %v1761_v55 = vpop.f32.mrb[56].mxu0  ;;  %1885 = vmatmul.mubr.f32.gmra.mrb[42].mxu1 %v2625_v48  ;;  %v1156_v18 = vmul.f32 %v2625_v48, %v2625_v48 }
 0x167   :  { %v1762_v7 = vpop.f32.mrb[57].mxu0 }
 0x168   :  { %v1763_v50 = vadd.f32 %v1762_v7, %v1761_v55  ;;  %v1764_v53 = vpop.f32.mrb[58].mxu0 }
 0x169   :  { %v1765_v56 = vpop.f32.mrb[59].mxu0 }
 0x16a   :  { %v2630_v57 = vadd.f32 %v1763_v50, %v2558_v39  ;;  %v1766_v58 = vadd.f32 %v1765_v56, %v1764_v53 }
 0x16c   :  { %v2633_v21 = vadd.f32 %v1766_v58, %v2560_v42  ;;  %1887 = vmatprep.mubr.f32.mxu1 %v2630_v57  ;;  %v1145_v42 = vmul.f32 %v2567_v9, %v2567_v9  ;;  %v1157_v20 = vmul.f32 %v2630_v57, %v2630_v57 }
 0x16e   :  { %v1767_v23 = vpop.f32.mrb[60].mxu0  ;;  %1888 = vmatmul.mubr.f32.gmra.mrb[44].mxu1 %v2633_v21  ;;  %v1158_v34 = vmul.f32 %v2633_v21, %v2633_v21 }
 0x16f   :  { %v1768_v59 = vpop.f32.mrb[61].mxu0 }
 0x170   :  { %v1769_v60 = vadd.f32 %v1768_v59, %v1767_v23  ;;  %v1770_v62 = vpop.f32.mrb[62].mxu0 }
 0x171   :  { %v1771_v0 = vpop.f32.mrb[63].mxu0 }
 0x172   :  { %v2638_v1 = vadd.f32 %v1769_v60, %v2562_v61  ;;  %v1772_v2 = vadd.f32 %v1771_v0, %v1770_v62  ;;  %v1148_v61 = vmul.f32 %v2581_v5, %v2581_v5 }
 0x174   :  { %v2641_v39 = vadd.f32 %v1772_v2, %v2564_v63  ;;  %1890 = vmatprep.mubr.f32.mxu1 %v2638_v1  ;;  %v1149_v63 = vmul.f32 %v2589_v37, %v2589_v37  ;;  %v1159_v22 = vmul.f32 %v2638_v1, %v2638_v1 }
 0x176   :  { %1891 = vmatmul.mubr.f32.gmra.mrb[46].mxu1 %v2641_v39  ;;  %v1160_v24 = vmul.f32 %v2641_v39, %v2641_v39 }
 0x177   :  { %1925 = vmatprep.mubr.f32.mxu1 %v1145_v42 }
 0x17a   :  { %1926 = vmatmul.mubr.f32.vlgmr.msra.gmra.mrb[48].mxu1 %v1146_v6 }
 0x17b   :  { %1928 = vmatprep.mubr.f32.mxu1 %v1147_v8 }
 0x17e   :  { %1929 = vmatmul.mubr.f32.gmra.mrb[50].mxu1 %v1148_v61 }
 0x17f   :  { %1931 = vmatprep.mubr.f32.mxu1 %v1149_v63 }
 0x182   :  { %1932 = vmatmul.mubr.f32.gmra.mrb[52].mxu1 %v1150_v10 }
 0x183   :  { %1934 = vmatprep.mubr.f32.mxu1 %v1151_v12 }
 0x186   :  { %1935 = vmatmul.mubr.f32.gmra.mrb[54].mxu1 %v1152_v13 }
 0x187   :  { %1937 = vmatprep.mubr.f32.mxu1 %v1153_v14 }
 0x18a   :  { %1938 = vmatmul.mubr.f32.gmra.mrb[56].mxu1 %v1154_v15 }
 0x18b   :  { %1940 = vmatprep.mubr.f32.mxu1 %v1155_v16 }
 0x18e   :  { %1941 = vmatmul.mubr.f32.gmra.mrb[58].mxu1 %v1156_v18 }
 0x18f   :  { %1943 = vmatprep.mubr.f32.mxu1 %v1157_v20 }
 0x192   :  { %1944 = vmatmul.mubr.f32.gmra.mrb[60].mxu1 %v1158_v34 }
 0x193   :  { %1946 = vmatprep.mubr.f32.mxu1 %v1159_v22 }
 0x196   :  { %1947 = vmatmul.mubr.f32.gmra.mrb[62].mxu1 %v1160_v24 }
 0x211   :  { %v1871_v17 = vpop.f32.mrb[32].mxu1 }
 0x212   :  { %v1066_v19 = vpop.f32.mrb[33].mxu1 }
 0x213   :  { %v1306_v26 = vadd.f32 %v1871_v17, %v1066_v19 }
 0x219   :  { %v1874_v40 = vpop.f32.mrb[34].mxu1 }
 0x21a   :  { %v1076_v27 = vpop.f32.mrb[35].mxu1 }
 0x21b   :  { %v1307_v28 = vadd.f32 %v1306_v26, %v1076_v27 }
 0x21d   :  { %v1308_v31 = vadd.f32 %v1874_v40, %v1307_v28 }
 0x221   :  { %v1877_v33 = vpop.f32.mrb[36].mxu1 }
 0x222   :  { %v1086_v30 = vpop.f32.mrb[37].mxu1 }
 0x223   :  { %v1309_v46 = vadd.f32 %v1308_v31, %v1086_v30 }
 0x225   :  { %v1310_v32 = vadd.f32 %v1877_v33, %v1309_v46 }
 0x229   :  { %v1880_v35 = vpop.f32.mrb[38].mxu1 }
 0x22a   :  { %v1096_v51 = vpop.f32.mrb[39].mxu1 }
 0x22b   :  { %v1311_v54 = vadd.f32 %v1310_v32, %v1096_v51 }
 0x22d   :  { %v1312_v38 = vadd.f32 %v1880_v35, %v1311_v54 }
 0x231   :  { %v1883_v52 = vpop.f32.mrb[40].mxu1 }
 0x232   :  { %v1106_v41 = vpop.f32.mrb[41].mxu1 }
 0x233   :  { %v1313_v44 = vadd.f32 %v1312_v38, %v1106_v41 }
 0x235   :  { %v1314_v45 = vadd.f32 %v1883_v52, %v1313_v44 }
 0x239   :  { %v1886_v4 = vpop.f32.mrb[42].mxu1 }
 0x23a   :  { %v1116_v55 = vpop.f32.mrb[43].mxu1 }
 0x23b   :  { %v1315_v7 = vadd.f32 %v1314_v45, %v1116_v55 }
 0x23d   :  { %v1316_v50 = vadd.f32 %v1886_v4, %v1315_v7 }
 0x241   :  { %v1889_v53 = vpop.f32.mrb[44].mxu1 }
 0x242   :  { %v1126_v56 = vpop.f32.mrb[45].mxu1 }
 0x243   :  { %v1317_v58 = vadd.f32 %v1316_v50, %v1126_v56 }
 0x245   :  { %v1318_v23 = vadd.f32 %v1889_v53, %v1317_v58 }
 0x249   :  { %v1892_v59 = vpop.f32.mrb[46].mxu1 }
 0x24a   :  { %v1136_v60 = vpop.f32.mrb[47].mxu1 }
 0x24b   :  { %v1319_v62 = vadd.f32 %v1318_v23, %v1136_v60 }
 0x24d   :  { %v1320_v0 = vadd.f32 %v1892_v59, %v1319_v62  ;;  %v1927_v2 = vpop.f32.mrb[48].mxu1 }
 0x24e   :  { %v1227_v42 = vpop.f32.mrb[49].mxu1 }
 0x24f   :  { %v1328_v6 = vadd.f32 %v1927_v2, %v1227_v42  ;;  %v1321_v26 = vrot.slane %v1320_v0, 4  ;;  %v1373_v42 = vlaneseq }
 0x251   :  { %v1930_v8 = vpop.f32.mrb[50].mxu1  ;;  %v1322_v33 = vadd.f32 %v1321_v26, %v1320_v0 }
 0x252   :  { %v1237_v61 = vpop.f32.mrb[51].mxu1 }
 0x253   :  { %v1329_v63 = vadd.f32 %v1328_v6, %v1237_v61  ;;  %v1323_v51 = vrot.slane %v1322_v33, 2  ;;  %v1374_v6 = vshrl.u32 %v1373_v42, 7 }
 0x255   :  { %v1933_v10 = vpop.f32.mrb[52].mxu1  ;;  %v1330_v12 = vadd.f32 %v1930_v8, %v1329_v63  ;;  %v1324_v52 = vadd.f32 %v1323_v51, %v1322_v33  ;;  %v1371_v8 = vld [vmem:[%s2766_s3] sm:$0x1]  ;;  %v1375_v61 = vsub.s32 0, %v1374_v6 }
 0x256   :  { %v1247_v13 = vpop.f32.mrb[53].mxu1 }
 0x257   :  { %v1331_v14 = vadd.f32 %v1330_v12, %v1247_v13  ;;  %v1325_v45 = vrot.slane %v1324_v52, 1 }
 0x259   :  { %v1936_v15 = vpop.f32.mrb[54].mxu1  ;;  %v1332_v16 = vadd.f32 %v1933_v10, %v1331_v14  ;;  %v1326_v7 = vadd.f32 %v1325_v45, %v1324_v52 }
 0x25a   :  { %v1257_v18 = vpop.f32.mrb[55].mxu1 }
 0x25b   :  { %v1333_v20 = vadd.f32 %v1332_v16, %v1257_v18  ;;  %v1327_v56 = vmul.f32 0.00048828125, %v1326_v7 }
 0x25d   :  { %v1939_v34 = vpop.f32.mrb[56].mxu1  ;;  %v1334_v24 = vadd.f32 %v1936_v15, %v1333_v20  ;;  %v1350_v60 = vmul.f32 %v1327_v56, %v1327_v56  ;;  %v1355_v10 = vsub.f32 %v2567_v9, %v1327_v56  ;;  %v1356_v12 = vsub.f32 %v2570_v11, %v1327_v56 }
 0x25e   :  { %v1267_v22 = vpop.f32.mrb[57].mxu1  ;;  %v1357_v13 = vsub.f32 %v2577_v3, %v1327_v56  ;;  %v1358_v14 = vsub.f32 %v2581_v5, %v1327_v56  ;;  %v1359_v15 = vsub.f32 %v2589_v37, %v1327_v56  ;;  %v1360_v18 = vsub.f32 %v2593_v25, %v1327_v56 }
 0x25f   :  { %v1335_v40 = vadd.f32 %v1334_v24, %v1267_v22  ;;  %v1361_v20 = vsub.f32 %v2601_v43, %v1327_v56  ;;  %v1363_v22 = vsub.f32 %v2613_v49, %v1327_v56  ;;  %v1364_v24 = vsub.f32 %v2617_v36, %v1327_v56 }
 0x260   :  { %v1365_v9 = vsub.f32 %v2622_v47, %v1327_v56  ;;  %v1366_v11 = vsub.f32 %v2625_v48, %v1327_v56  ;;  %v1367_v5 = vsub.f32 %v2630_v57, %v1327_v56  ;;  %v1368_v37 = vsub.f32 %v2633_v21, %v1327_v56  ;;  %v1580_v47 = vld [vmem:[%s2767_s4] ss:$0 sm:$0xff] }
 0x261   :  { %v1942_v17 = vpop.f32.mrb[58].mxu1  ;;  %v1336_v27 = vadd.f32 %v1939_v34, %v1335_v40  ;;  %v1362_v34 = vsub.f32 %v2605_v29, %v1327_v56  ;;  %v1370_v25 = vsub.f32 %v2641_v39, %v1327_v56 }
 0x262   :  { %v1277_v19 = vpop.f32.mrb[59].mxu1 }
 0x263   :  { %v1337_v30 = vadd.f32 %v1336_v27, %v1277_v19 }
 0x265   :  { %v1945_v28 = vpop.f32.mrb[60].mxu1  ;;  %v1338_v46 = vadd.f32 %v1942_v17, %v1337_v30  ;;  %v1369_v17 = vsub.f32 %v2638_v1, %v1327_v56 }
 0x266   :  { %v1287_v31 = vpop.f32.mrb[61].mxu1 }
 0x267   :  { %v1339_v54 = vadd.f32 %v1338_v46, %v1287_v31 }
 0x269   :  { %v1948_v32 = vpop.f32.mrb[62].mxu1  ;;  %v1340_v38 = vadd.f32 %v1945_v28, %v1339_v54 }
 0x26a   :  { %v1297_v35 = vpop.f32.mrb[63].mxu1 }
 0x26b   :  { %v1341_v41 = vadd.f32 %v1340_v38, %v1297_v35 }
 0x26d   :  { %v1342_v44 = vadd.f32 %v1948_v32, %v1341_v41 }
 0x26f   :  { %v1343_v4 = vrot.slane %v1342_v44, 4 }
 0x271   :  { %v1344_v55 = vadd.f32 %v1343_v4, %v1342_v44 }
 0x273   :  { %v1345_v50 = vrot.slane %v1344_v55, 2 }
 0x275   :  { %v1346_v53 = vadd.f32 %v1345_v50, %v1344_v55 }
 0x277   :  { %v1347_v58 = vrot.slane %v1346_v53, 1 }
 0x279   :  { %v1348_v23 = vadd.f32 %v1347_v58, %v1346_v53 }
 0x27b   :  { %v1349_v59 = vmul.f32 0.00048828125, %v1348_v23 }
 0x27d   :  { %v1351_v62 = vsub.f32 %v1349_v59, %v1350_v60 }
 0x27f   :  { %v1352_v0 = vmax.f32 %v1351_v62, 0.0 }
 0x281   :  { %v1353_v2 = vadd.f32 1e-05, %v1352_v0 }
 0x283   :  { %2133 = vrsqrt.f32 %v1353_v2 }
 0x28d   :  { %v2134_v63 = vpop.eup %2133 }
 0x28e   :  { %v1372_v16 = vmul.f32 %v2134_v63, %v1371_v8 }
 0x290   :  { %v1376_v3 = vrot.slane %v1372_v16, %v1375_v61 }
 0x292   :  { %v1377_v43 = vmul.f32 %v1376_v3, %v1355_v10  ;;  %v1378_v19 = vmul.f32 %v1376_v3, %v1356_v12  ;;  %v1379_v29 = vmul.f32 %v1376_v3, %v1357_v13  ;;  %v1380_v26 = vmul.f32 %v1376_v3, %v1358_v14 }
 0x293   :  { %v1381_v49 = vmul.f32 %v1376_v3, %v1359_v15  ;;  %v1382_v40 = vmul.f32 %v1376_v3, %v1360_v18  ;;  %v1383_v36 = vmul.f32 %v1376_v3, %v1361_v20  ;;  %v1384_v27 = vmul.f32 %v1376_v3, %v1362_v34 }
 0x294   :  { %v1385_v48 = vmul.f32 %v1376_v3, %v1363_v22  ;;  %v1386_v57 = vmul.f32 %v1376_v3, %v1364_v24  ;;  %v1387_v28 = vmul.f32 %v1376_v3, %v1365_v9  ;;  %v1388_v21 = vmul.f32 %v1376_v3, %v1366_v11 }
 0x295   :  { %v1389_v31 = vmul.f32 %v1376_v3, %v1367_v5  ;;  %v1390_v1 = vmul.f32 %v1376_v3, %v1368_v37  ;;  %v1391_v33 = vmul.f32 %v1376_v3, %v1369_v17  ;;  %v1392_v39 = vmul.f32 %v1376_v3, %v1370_v25 }
 0x296   :  { %v1400_v30 = vadd.f32 %v1580_v47, %v1377_v43  ;;  %v1401_v46 = vadd.f32 %v1580_v47, %v1378_v19  ;;  %v1402_v32 = vadd.f32 %v1580_v47, %v1379_v29  ;;  %v1403_v35 = vadd.f32 %v1580_v47, %v1380_v26 }
 0x297   :  { %v1404_v51 = vadd.f32 %v1580_v47, %v1381_v49  ;;  %v1405_v54 = vadd.f32 %v1580_v47, %v1382_v40  ;;  %v1406_v38 = vadd.f32 %v1580_v47, %v1383_v36  ;;  %v1407_v52 = vadd.f32 %v1580_v47, %v1384_v27 }
 0x298   :  { %v1408_v41 = vadd.f32 %v1580_v47, %v1385_v48  ;;  %v1409_v44 = vadd.f32 %v1580_v47, %v1386_v57  ;;  %v1410_v45 = vadd.f32 %v1580_v47, %v1387_v28  ;;  %v1411_v4 = vadd.f32 %v1580_v47, %v1388_v21 }
 0x299   :  { %v1412_v55 = vadd.f32 %v1580_v47, %v1389_v31  ;;  %v1413_v7 = vadd.f32 %v1580_v47, %v1390_v1  ;;  %v1414_v50 = vadd.f32 %v1580_v47, %v1391_v33  ;;  %v1415_v53 = vadd.f32 %v1580_v47, %v1392_v39 }
 0x29a   :  { %vm1416_vm0 = vcmp.ge.f32.partialorder %v1400_v30, 0.0  ;;  %vm1417_vm1 = vcmp.ge.f32.partialorder %v1401_v46, 0.0  ;;  %vm1418_vm2 = vcmp.ge.f32.partialorder %v1402_v32, 0.0  ;;  %vm1419_vm3 = vcmp.ge.f32.partialorder %v1403_v35, 0.0 }
 0x29b   :  { %vm1420_vm4 = vcmp.ge.f32.partialorder %v1404_v51, 0.0  ;;  %vm1421_vm5 = vcmp.ge.f32.partialorder %v1405_v54, 0.0  ;;  %vm1422_vm6 = vcmp.ge.f32.partialorder %v1406_v38, 0.0  ;;  %vm1423_vm7 = vcmp.ge.f32.partialorder %v1407_v52, 0.0 }
 0x29c   :  { %vm1424_vm8 = vcmp.ge.f32.partialorder %v1408_v41, 0.0  ;;  %vm1425_vm9 = vcmp.ge.f32.partialorder %v1409_v44, 0.0  ;;  %vm1426_vm10 = vcmp.ge.f32.partialorder %v1410_v45, 0.0  ;;  %vm1427_vm11 = vcmp.ge.f32.partialorder %v1411_v4, 0.0 }
 0x29d   :  { %vm1428_vm12 = vcmp.ge.f32.partialorder %v1412_v55, 0.0  ;;  %vm1429_vm13 = vcmp.ge.f32.partialorder %v1413_v7, 0.0  ;;  %vm1430_vm14 = vcmp.ge.f32.partialorder %v1414_v50, 0.0  ;;  %vm1431_vm15 = vcmp.ge.f32.partialorder %v1415_v53, 0.0 }
 0x29e   :  { %v1432_v56 = vmul.f32 0.2, %v1400_v30  ;;  %v1433_v58 = vmul.f32 0.2, %v1401_v46  ;;  %v1434_v23 = vmul.f32 0.2, %v1402_v32 }
 0x29f   :  { %v1435_v59 = vmul.f32 0.2, %v1403_v35  ;;  %v1436_v60 = vmul.f32 0.2, %v1404_v51  ;;  %v1437_v62 = vmul.f32 0.2, %v1405_v54 }
 0x2a0   :  { %v1438_v0 = vmul.f32 0.2, %v1406_v38  ;;  %v1439_v2 = vmul.f32 0.2, %v1407_v52  ;;  %v1440_v42 = vmul.f32 0.2, %v1408_v41  ;;  %v1448_v6 = vsel %vm1416_vm0, %v1400_v30, %v1432_v56 }
 0x2a1   :  { %v1441_v8 = vmul.f32 0.2, %v1409_v44  ;;  %v1442_v61 = vmul.f32 0.2, %v1410_v45  ;;  %v1443_v63 = vmul.f32 0.2, %v1411_v4  ;;  %v1449_v10 = vsel %vm1417_vm1, %v1401_v46, %v1433_v58  ;;  %1464 = vst [vmem:[%s2768_s5] sm:$0xff] %v1448_v6 }
 0x2a2   :  { %v1444_v12 = vmul.f32 0.2, %v1412_v55  ;;  %v1445_v13 = vmul.f32 0.2, %v1413_v7  ;;  %v1446_v14 = vmul.f32 0.2, %v1414_v50  ;;  %v1450_v15 = vsel %vm1418_vm2, %v1402_v32, %v1434_v23 }
 0x2a3   :  { %1465 = vst [vmem:[%s2768_s5 + $0x8] sm:$0xff] %v1449_v10  ;;  %v1447_v16 = vmul.f32 0.2, %v1415_v53  ;;  %v1451_v18 = vsel %vm1419_vm3, %v1403_v35, %v1435_v59  ;;  %v1452_v20 = vsel %vm1420_vm4, %v1404_v51, %v1436_v60  ;;  %v1453_v34 = vsel %vm1421_vm5, %v1405_v54, %v1437_v62  ;;  %1466 = vst [vmem:[%s2768_s5 + $0x10] sm:$0xff] %v1450_v15 }
 0x2a4   :  { %v1454_v22 = vsel %vm1422_vm6, %v1406_v38, %v1438_v0  ;;  %v1455_v24 = vsel %vm1423_vm7, %v1407_v52, %v1439_v2  ;;  %v1456_v9 = vsel %vm1424_vm8, %v1408_v41, %v1440_v42  ;;  %v1457_v11 = vsel %vm1425_vm9, %v1409_v44, %v1441_v8  ;;  %1467 = vst [vmem:[%s2768_s5 + $0x18] sm:$0xff] %v1451_v18 }
 0x2a5   :  { %1468 = vst [vmem:[%s2768_s5 + $0x20] sm:$0xff] %v1452_v20  ;;  %1469 = vst [vmem:[%s2768_s5 + $0x28] sm:$0xff] %v1453_v34  ;;  %v1458_v3 = vsel %vm1426_vm10, %v1410_v45, %v1442_v61  ;;  %v1459_v5 = vsel %vm1427_vm11, %v1411_v4, %v1443_v63  ;;  %v1460_v37 = vsel %vm1428_vm12, %v1412_v55, %v1444_v12 }
 0x2a6   :  { %v1461_v17 = vsel %vm1429_vm13, %v1413_v7, %v1445_v13  ;;  %1470 = vst [vmem:[%s2768_s5 + $0x30] sm:$0xff] %v1454_v22  ;;  %1471 = vst [vmem:[%s2768_s5 + $0x38] sm:$0xff] %v1455_v24  ;;  %v1462_v25 = vsel %vm1430_vm14, %v1414_v50, %v1446_v14  ;;  %v1463_v43 = vsel %vm1431_vm15, %v1415_v53, %v1447_v16 }
 0x2a7   :  { %1472 = vst [vmem:[%s2768_s5 + $0x40] sm:$0xff] %v1456_v9  ;;  %1473 = vst [vmem:[%s2768_s5 + $0x48] sm:$0xff] %v1457_v11 }
 0x2a8   :  { %1474 = vst [vmem:[%s2768_s5 + $0x50] sm:$0xff] %v1458_v3  ;;  %1475 = vst [vmem:[%s2768_s5 + $0x58] sm:$0xff] %v1459_v5 }
 0x2a9   :  { %1476 = vst [vmem:[%s2768_s5 + $0x60] sm:$0xff] %v1460_v37  ;;  %1477 = vst [vmem:[%s2768_s5 + $0x68] sm:$0xff] %v1461_v17 }
 0x2aa   :  { %1478 = vst [vmem:[%s2768_s5 + $0x70] sm:$0xff] %v1462_v25  ;;  %1479 = vst [vmem:[%s2768_s5 + $0x78] sm:$0xff] %v1463_v43 }

// kernel: discriminator_forward.5
= control target key start
LH: loop header
LB: loop body
LE: loop exit
PB: predicated region body
PF: predicated region fallthrough
CT: control target
= control target key end

     0   :  { %s2315_s1 = inlined_call_operand.vmem [shape: bf16[1024,128], index: 1, kind: input, shape index: {}]   ;;  %s2316_s0 = inlined_call_operand.vmem [shape: bf16[64,1024], index: 0, kind: input, shape index: {}]   ;;  %s2317_s2 = inlined_call_operand.vmem [shape: f32[128,128], index: 2, kind: input, shape index: {}]   ;;  %s2318_s3 = inlined_call_operand.vmem [shape: f32[1,128], index: 3, kind: input, shape index: {}]   ;;  %s2319_s4 = inlined_call_operand.vmem [shape: f32[1,128], index: 4, kind: input, shape index: {}]   ;;  %s2320_s5 = inlined_call_operand.vmem [shape: f32[64,128], index: 5, kind: output, shape index: {}]  }
   0x1   :  { %v1782_v0 = vld [vmem:[%s2315_s1 + $0x40] sm:$0xff]   ;;  %v1786_v4 = vld [vmem:[%s2315_s1 + $0x48] sm:$0xff]   ;;  %v1790_v8 = vld [vmem:[%s2315_s1 + $0x50] sm:$0xff]  }
   0x2   :  { %v1783_v1 = vld [vmem:[%s2315_s1 + $0xc0] sm:$0xff]   ;;  %1422 = vmatprep.subr.bf16.mxu0 %v1782_v0  ;;  %v1787_v5 = vld [vmem:[%s2315_s1 + $0xc8] sm:$0xff]   ;;  %v1791_v9 = vld [vmem:[%s2315_s1 + $0xd0] sm:$0xff]  }
   0x3   :  { %v1784_v2 = vld [vmem:[%s2315_s1] sm:$0xff]   ;;  %1462 = vmatprep.subr.bf16.mxu1 %v1783_v1  ;;  %v1788_v6 = vld [vmem:[%s2315_s1 + $0x8] sm:$0xff]   ;;  %v1792_v10 = vld [vmem:[%s2315_s1 + $0x10] sm:$0xff]  }
   0x4   :  { %v1785_v3 = vld [vmem:[%s2315_s1 + $0x80] sm:$0xff]   ;;  %1423 = vmatpush3.bf16.msra.mxu0 %v1784_v2  ;;  %v1789_v7 = vld [vmem:[%s2315_s1 + $0x88] sm:$0xff]   ;;  %v1793_v11 = vld [vmem:[%s2315_s1 + $0x90] sm:$0xff]  }
   0x5   :  { %1463 = vmatpush3.bf16.msra.mxu1 %v1785_v3  ;;  %1424 = vmatprep.subr.bf16.mxu0 %v1786_v4  ;;  %v1794_v12 = vld [vmem:[%s2315_s1 + $0x58] sm:$0xff]   ;;  %v1798_v16 = vld [vmem:[%s2315_s1 + $0x60] sm:$0xff]   ;;  %v1802_v20 = vld [vmem:[%s2315_s1 + $0x68] sm:$0xff]  }
   0x6   :  { %1464 = vmatprep.subr.bf16.mxu1 %v1787_v5  ;;  %v1795_v13 = vld [vmem:[%s2315_s1 + $0xd8] sm:$0xff]   ;;  %v1799_v17 = vld [vmem:[%s2315_s1 + $0xe0] sm:$0xff]   ;;  %v1803_v21 = vld [vmem:[%s2315_s1 + $0xe8] sm:$0xff]  }
   0x7   :  { %v1796_v14 = vld [vmem:[%s2315_s1 + $0x18] sm:$0xff]   ;;  %v1800_v18 = vld [vmem:[%s2315_s1 + $0x20] sm:$0xff]   ;;  %v1804_v22 = vld [vmem:[%s2315_s1 + $0x28] sm:$0xff]  }
   0x8   :  { %1425 = vmatpush3.bf16.msra.mxu0 %v1788_v6  ;;  %v1797_v15 = vld [vmem:[%s2315_s1 + $0x98] sm:$0xff]   ;;  %v1801_v19 = vld [vmem:[%s2315_s1 + $0xa0] sm:$0xff]   ;;  %v1805_v23 = vld [vmem:[%s2315_s1 + $0xa8] sm:$0xff]  }
   0x9   :  { %1465 = vmatpush3.bf16.msra.mxu1 %v1789_v7  ;;  %1426 = vmatprep.subr.bf16.mxu0 %v1790_v8  ;;  %v1806_v24 = vld [vmem:[%s2315_s1 + $0x70] sm:$0xff]   ;;  %v1810_v28 = vld [vmem:[%s2315_s1 + $0x78] sm:$0xff]   ;;  %v21_v32 = vld [vmem:[%s2316_s0] sm:$0xff] }
   0xa   :  { %1466 = vmatprep.subr.bf16.mxu1 %v1791_v9  ;;  %v1807_v25 = vld [vmem:[%s2315_s1 + $0xf0] sm:$0xff]   ;;  %v1811_v29 = vld [vmem:[%s2315_s1 + $0xf8] sm:$0xff]   ;;  %v25_v33 = vld [vmem:[%s2316_s0 + $0x20] sm:$0xff] }
   0xb   :  { %v1808_v26 = vld [vmem:[%s2315_s1 + $0x30] sm:$0xff]   ;;  %v1812_v30 = vld [vmem:[%s2315_s1 + $0x38] sm:$0xff]   ;;  %v22_v34 = vld [vmem:[%s2316_s0 + $0x8] sm:$0xff]  ;;  %v1325_v35 = vcombine.low %v21_v32, %v25_v33  ;;  %v1326_v36 = vcombine.high %v21_v32, %v25_v33 }
   0xc   :  { %1427 = vmatpush3.bf16.msra.mxu0 %v1792_v10  ;;  %v1809_v27 = vld [vmem:[%s2315_s1 + $0xb0] sm:$0xff]   ;;  %v1813_v31 = vld [vmem:[%s2315_s1 + $0xb8] sm:$0xff]   ;;  %v26_v37 = vld [vmem:[%s2316_s0 + $0x28] sm:$0xff] }
   0xd   :  { %1467 = vmatpush3.bf16.msra.mxu1 %v1793_v11  ;;  %1428 = vmatprep.subr.bf16.mxu0 %v1794_v12  ;;  %v1327_v38 = vcombine.low %v22_v34, %v26_v37  ;;  %v1328_v39 = vcombine.high %v22_v34, %v26_v37  ;;  %v1814_v40 = vld [vmem:[%s2315_s1 + $0x140] sm:$0xff]   ;;  %v1818_v44 = vld [vmem:[%s2315_s1 + $0x148] sm:$0xff]   ;;  %v1822_v56 = vld [vmem:[%s2315_s1 + $0x150] sm:$0xff]  }
   0xe   :  { %1468 = vmatprep.subr.bf16.mxu1 %v1795_v13  ;;  %757 = vmatprep.mubr.bf16.mxu0 %v1326_v36  ;;  %v1815_v41 = vld [vmem:[%s2315_s1 + $0x1c0] sm:$0xff]   ;;  %v1819_v45 = vld [vmem:[%s2315_s1 + $0x1c8] sm:$0xff]   ;;  %v1823_v57 = vld [vmem:[%s2315_s1 + $0x1d0] sm:$0xff]  }
   0xf   :  { %822 = vmatprep.mubr.bf16.mxu1 %v1328_v39  ;;  %v1816_v42 = vld [vmem:[%s2315_s1 + $0x100] sm:$0xff]   ;;  %v1820_v46 = vld [vmem:[%s2315_s1 + $0x108] sm:$0xff]   ;;  %v1824_v58 = vld [vmem:[%s2315_s1 + $0x110] sm:$0xff]  }
  0x10   :  { %1429 = vmatpush3.bf16.msra.mxu0 %v1796_v14  ;;  %v1817_v43 = vld [vmem:[%s2315_s1 + $0x180] sm:$0xff]   ;;  %v1821_v47 = vld [vmem:[%s2315_s1 + $0x188] sm:$0xff]   ;;  %v1825_v59 = vld [vmem:[%s2315_s1 + $0x190] sm:$0xff]  }
  0x11   :  { %1469 = vmatpush3.bf16.msra.mxu1 %v1797_v15  ;;  %1430 = vmatprep.subr.bf16.mxu0 %v1798_v16  ;;  %v29_v48 = vld [vmem:[%s2316_s0 + $0x40] sm:$0xff]  ;;  %v30_v51 = vld [vmem:[%s2316_s0 + $0x48] sm:$0xff]  ;;  %v1826_v60 = vld [vmem:[%s2315_s1 + $0x158] sm:$0xff]  }
  0x12   :  { %1470 = vmatprep.subr.bf16.mxu1 %v1799_v17  ;;  %v33_v49 = vld [vmem:[%s2316_s0 + $0x60] sm:$0xff]  ;;  %v34_v52 = vld [vmem:[%s2316_s0 + $0x68] sm:$0xff]  ;;  %v1827_v61 = vld [vmem:[%s2315_s1 + $0x1d8] sm:$0xff]  }
  0x13   :  { %v1334_v50 = vcombine.high %v29_v48, %v33_v49  ;;  %v1333_v53 = vcombine.low %v29_v48, %v33_v49  ;;  %v1336_v54 = vcombine.high %v30_v51, %v34_v52  ;;  %v1335_v55 = vcombine.low %v30_v51, %v34_v52  ;;  %v1828_v62 = vld [vmem:[%s2315_s1 + $0x118] sm:$0xff]   ;;  %v37_v0 = vld [vmem:[%s2316_s0 + $0x80] sm:$0xff]  ;;  %v38_v2 = vld [vmem:[%s2316_s0 + $0x88] sm:$0xff] }
  0x14   :  { %1431 = vmatpush3.bf16.msra.mxu0 %v1800_v18  ;;  %v1829_v63 = vld [vmem:[%s2315_s1 + $0x198] sm:$0xff]   ;;  %v41_v1 = vld [vmem:[%s2316_s0 + $0xa0] sm:$0xff]  ;;  %v42_v3 = vld [vmem:[%s2316_s0 + $0xa8] sm:$0xff] }
  0x15   :  { %1471 = vmatpush3.bf16.msra.mxu1 %v1801_v19  ;;  %1432 = vmatprep.subr.bf16.mxu0 %v1802_v20  ;;  %v1342_v4 = vcombine.high %v37_v0, %v41_v1  ;;  %v1344_v5 = vcombine.high %v38_v2, %v42_v3  ;;  %v1341_v6 = vcombine.low %v37_v0, %v41_v1  ;;  %v1830_v8 = vld [vmem:[%s2315_s1 + $0x160] sm:$0xff]   ;;  %v1834_v12 = vld [vmem:[%s2315_s1 + $0x168] sm:$0xff]   ;;  %v23_v32 = vld [vmem:[%s2316_s0 + $0x10] sm:$0xff] }
  0x16   :  { %1472 = vmatprep.subr.bf16.mxu1 %v1803_v21  ;;  %v1343_v7 = vcombine.low %v38_v2, %v42_v3  ;;  %v1831_v9 = vld [vmem:[%s2315_s1 + $0x1e0] sm:$0xff]   ;;  %v1835_v13 = vld [vmem:[%s2315_s1 + $0x1e8] sm:$0xff]   ;;  %v27_v33 = vld [vmem:[%s2316_s0 + $0x30] sm:$0xff] }
  0x17   :  { %v1832_v10 = vld [vmem:[%s2315_s1 + $0x120] sm:$0xff]   ;;  %v1836_v14 = vld [vmem:[%s2315_s1 + $0x128] sm:$0xff]   ;;  %v1329_v34 = vcombine.low %v23_v32, %v27_v33  ;;  %v24_v36 = vld [vmem:[%s2316_s0 + $0x18] sm:$0xff] }
  0x18   :  { %1433 = vmatpush3.bf16.msra.mxu0 %v1804_v22  ;;  %v1833_v11 = vld [vmem:[%s2315_s1 + $0x1a0] sm:$0xff]   ;;  %v1837_v15 = vld [vmem:[%s2315_s1 + $0x1a8] sm:$0xff]   ;;  %v28_v37 = vld [vmem:[%s2316_s0 + $0x38] sm:$0xff] }
  0x19   :  { %1473 = vmatpush3.bf16.msra.mxu1 %v1805_v23  ;;  %1434 = vmatprep.subr.bf16.mxu0 %v1806_v24  ;;  %v45_v16 = vld [vmem:[%s2316_s0 + $0xc0] sm:$0xff]  ;;  %v46_v18 = vld [vmem:[%s2316_s0 + $0xc8] sm:$0xff]  ;;  %v1838_v24 = vld [vmem:[%s2315_s1 + $0x170] sm:$0xff]   ;;  %v1331_v39 = vcombine.low %v24_v36, %v28_v37 }
  0x1a   :  { %1474 = vmatprep.subr.bf16.mxu1 %v1807_v25  ;;  %v49_v17 = vld [vmem:[%s2316_s0 + $0xe0] sm:$0xff]  ;;  %v50_v20 = vld [vmem:[%s2316_s0 + $0xe8] sm:$0xff]  ;;  %v1839_v25 = vld [vmem:[%s2315_s1 + $0x1f0] sm:$0xff]  }
  0x1b   :  { %v1350_v19 = vcombine.high %v45_v16, %v49_v17  ;;  %v1349_v21 = vcombine.low %v45_v16, %v49_v17  ;;  %v1352_v22 = vcombine.high %v46_v18, %v50_v20  ;;  %v1351_v23 = vcombine.low %v46_v18, %v50_v20  ;;  %v40_v48 = vld [vmem:[%s2316_s0 + $0x98] sm:$0xff]  ;;  %v985_v0 = vld [vmem:[%s2317_s2] sm:$0xff]  ;;  %v986_v1 = vld [vmem:[%s2317_s2 + $0x8] sm:$0xff] }
  0x1c   :  { %1435 = vmatpush3.bf16.msra.mxu0 %v1808_v26  ;;  %v1840_v26 = vld [vmem:[%s2315_s1 + $0x130] sm:$0xff]   ;;  %v44_v49 = vld [vmem:[%s2316_s0 + $0xb8] sm:$0xff]  ;;  %v1718_v2 = vpack.c.bf16 %v986_v1, %v985_v0  ;;  %v997_v18 = vld [vmem:[%s2317_s2 + $0x60] sm:$0xff] }
  0x1d   :  { %1475 = vmatpush3.bf16.msra.mxu1 %v1809_v27  ;;  %1436 = vmatprep.subr.bf16.mxu0 %v1810_v28  ;;  %v1841_v27 = vld [vmem:[%s2315_s1 + $0x1b0] sm:$0xff]   ;;  %v1842_v28 = vld [vmem:[%s2315_s1 + $0x178] sm:$0xff]  }
  0x1e   :  { %1476 = vmatprep.subr.bf16.mxu1 %v1811_v29  ;;  %v1843_v29 = vld [vmem:[%s2315_s1 + $0x1f8] sm:$0xff]   ;;  %v987_v3 = vld [vmem:[%s2317_s2 + $0x10] sm:$0xff] }
  0x1f   :  { %v996_v16 = vld [vmem:[%s2317_s2 + $0x58] sm:$0xff] }
  0x20   :  { %1437 = vmatpush3.bf16.msra.mxu0 %v1812_v30  ;;  %v1844_v30 = vld [vmem:[%s2315_s1 + $0x138] sm:$0xff]  }
  0x21   :  { %1477 = vmatpush3.bf16.msra.mxu1 %v1813_v31  ;;  %1502 = vmatprep.subr.bf16.mxu0 %v1814_v40  ;;  %v1845_v31 = vld [vmem:[%s2315_s1 + $0x1b8] sm:$0xff]   ;;  %v1332_v40 = vcombine.high %v24_v36, %v28_v37 }
  0x22   :  { %1542 = vmatprep.subr.bf16.mxu1 %v1815_v41  ;;  %v35_v41 = vld [vmem:[%s2316_s0 + $0x70] sm:$0xff] }
  0x23   :  { %758 = vmatmul.mubr.bf16.vlgmr.msra.gmra.mrb[0].mxu0 %v1325_v35  ;;  %v1330_v35 = vcombine.high %v23_v32, %v27_v33 }
  0x24   :  { %823 = vmatmul.mubr.bf16.vlgmr.msra.gmra.mrb[0].mxu1 %v1327_v38  ;;  %1503 = vmatpush3.bf16.msra.mxu0 %v1816_v42  ;;  %v31_v38 = vld [vmem:[%s2316_s0 + $0x50] sm:$0xff]  ;;  %v32_v42 = vld [vmem:[%s2316_s0 + $0x58] sm:$0xff] }
  0x25   :  { %1543 = vmatpush3.bf16.msra.mxu1 %v1817_v43  ;;  %1504 = vmatprep.subr.bf16.mxu0 %v1818_v44  ;;  %v36_v43 = vld [vmem:[%s2316_s0 + $0x78] sm:$0xff]  ;;  %v1338_v44 = vcombine.high %v31_v38, %v35_v41 }
  0x26   :  { %1544 = vmatprep.subr.bf16.mxu1 %v1819_v45  ;;  %765 = vmatprep.mubr.bf16.mxu0 %v1334_v50  ;;  %v1340_v45 = vcombine.high %v32_v42, %v36_v43  ;;  %v1337_v50 = vcombine.low %v31_v38, %v35_v41  ;;  %v1339_v51 = vcombine.low %v32_v42, %v36_v43 }
  0x27   :  { %830 = vmatprep.mubr.bf16.mxu1 %v1336_v54  ;;  %v47_v54 = vld [vmem:[%s2316_s0 + $0xd0] sm:$0xff] }
  0x28   :  { %1505 = vmatpush3.bf16.msra.mxu0 %v1820_v46  ;;  %v39_v46 = vld [vmem:[%s2316_s0 + $0x90] sm:$0xff] }
  0x29   :  { %1545 = vmatpush3.bf16.msra.mxu1 %v1821_v47  ;;  %1506 = vmatprep.subr.bf16.mxu0 %v1822_v56  ;;  %v43_v47 = vld [vmem:[%s2316_s0 + $0xb0] sm:$0xff]  ;;  %v48_v56 = vld [vmem:[%s2316_s0 + $0xd8] sm:$0xff] }
  0x2a   :  { %1546 = vmatprep.subr.bf16.mxu1 %v1823_v57  ;;  %v1346_v52 = vcombine.high %v39_v46, %v43_v47  ;;  %v52_v57 = vld [vmem:[%s2316_s0 + $0xf8] sm:$0xff] }
  0x2b   :  { %766 = vmatmul.mubr.bf16.gmra.mrb[4].mxu0 %v1333_v53  ;;  %v1348_v53 = vcombine.high %v40_v48, %v44_v49 }
  0x2c   :  { %831 = vmatmul.mubr.bf16.gmra.mrb[4].mxu1 %v1335_v55  ;;  %1507 = vmatpush3.bf16.msra.mxu0 %v1824_v58  ;;  %v51_v55 = vld [vmem:[%s2316_s0 + $0xf0] sm:$0xff]  ;;  %v1345_v58 = vcombine.low %v39_v46, %v43_v47 }
  0x2d   :  { %1547 = vmatpush3.bf16.msra.mxu1 %v1825_v59  ;;  %1508 = vmatprep.subr.bf16.mxu0 %v1826_v60  ;;  %v1347_v59 = vcombine.low %v40_v48, %v44_v49  ;;  %v1354_v60 = vcombine.high %v47_v54, %v51_v55 }
  0x2e   :  { %1548 = vmatprep.subr.bf16.mxu1 %v1827_v61  ;;  %773 = vmatprep.mubr.bf16.mxu0 %v1342_v4  ;;  %v1356_v61 = vcombine.high %v48_v56, %v52_v57  ;;  %v988_v4 = vld [vmem:[%s2317_s2 + $0x18] sm:$0xff] }
  0x2f   :  { %838 = vmatprep.mubr.bf16.mxu1 %v1344_v5  ;;  %v1722_v5 = vpack.c.bf16 %v988_v4, %v987_v3 }
  0x30   :  { %1509 = vmatpush3.bf16.msra.mxu0 %v1828_v62  ;;  %v1353_v62 = vcombine.low %v47_v54, %v51_v55 }
  0x31   :  { %1549 = vmatpush3.bf16.msra.mxu1 %v1829_v63  ;;  %1510 = vmatprep.subr.bf16.mxu0 %v1830_v8  ;;  %v1355_v63 = vcombine.low %v48_v56, %v52_v57 }
  0x32   :  { %1550 = vmatprep.subr.bf16.mxu1 %v1831_v9  ;;  %v991_v9 = vld [vmem:[%s2317_s2 + $0x30] sm:$0xff] }
  0x33   :  { %774 = vmatmul.mubr.bf16.gmra.mrb[8].mxu0 %v1341_v6  ;;  %v989_v6 = vld [vmem:[%s2317_s2 + $0x20] sm:$0xff] }
  0x34   :  { %839 = vmatmul.mubr.bf16.gmra.mrb[8].mxu1 %v1343_v7  ;;  %1511 = vmatpush3.bf16.msra.mxu0 %v1832_v10  ;;  %v990_v7 = vld [vmem:[%s2317_s2 + $0x28] sm:$0xff]  ;;  %v992_v10 = vld [vmem:[%s2317_s2 + $0x38] sm:$0xff] }
  0x35   :  { %1551 = vmatpush3.bf16.msra.mxu1 %v1833_v11  ;;  %1512 = vmatprep.subr.bf16.mxu0 %v1834_v12  ;;  %v1726_v8 = vpack.c.bf16 %v990_v7, %v989_v6  ;;  %v1730_v11 = vpack.c.bf16 %v992_v10, %v991_v9  ;;  %v993_v12 = vld [vmem:[%s2317_s2 + $0x40] sm:$0xff] }
  0x36   :  { %1552 = vmatprep.subr.bf16.mxu1 %v1835_v13  ;;  %781 = vmatprep.mubr.bf16.mxu0 %v1350_v19  ;;  %v994_v13 = vld [vmem:[%s2317_s2 + $0x48] sm:$0xff] }
  0x37   :  { %846 = vmatprep.mubr.bf16.mxu1 %v1352_v22  ;;  %v998_v19 = vld [vmem:[%s2317_s2 + $0x68] sm:$0xff]  ;;  %v1000_v22 = vld [vmem:[%s2317_s2 + $0x78] sm:$0xff] }
  0x38   :  { %1513 = vmatpush3.bf16.msra.mxu0 %v1836_v14  ;;  %v1734_v14 = vpack.c.bf16 %v994_v13, %v993_v12  ;;  %v1742_v20 = vpack.c.bf16 %v998_v19, %v997_v18 }
  0x39   :  { %1553 = vmatpush3.bf16.msra.mxu1 %v1837_v15  ;;  %1514 = vmatprep.subr.bf16.mxu0 %v1838_v24  ;;  %v995_v15 = vld [vmem:[%s2317_s2 + $0x50] sm:$0xff] }
  0x3a   :  { %1554 = vmatprep.subr.bf16.mxu1 %v1839_v25  ;;  %v1738_v17 = vpack.c.bf16 %v996_v16, %v995_v15 }
  0x3b   :  { %782 = vmatmul.mubr.bf16.gmra.mrb[12].mxu0 %v1349_v21  ;;  %v999_v21 = vld [vmem:[%s2317_s2 + $0x70] sm:$0xff] }
  0x3c   :  { %847 = vmatmul.mubr.bf16.gmra.mrb[12].mxu1 %v1351_v23  ;;  %1515 = vmatpush3.bf16.msra.mxu0 %v1840_v26  ;;  %v1746_v23 = vpack.c.bf16 %v1000_v22, %v999_v21 }
  0x3d   :  { %1555 = vmatpush3.bf16.msra.mxu1 %v1841_v27  ;;  %1516 = vmatprep.subr.bf16.mxu0 %v1842_v28 }
  0x3e   :  { %1556 = vmatprep.subr.bf16.mxu1 %v1843_v29  ;;  %887 = vmatprep.mubr.bf16.mxu0 %v1330_v35 }
  0x3f   :  { %952 = vmatprep.mubr.bf16.mxu1 %v1332_v40 }
  0x40   :  { %1517 = vmatpush3.bf16.msra.mxu0 %v1844_v30 }
  0x41   :  { %1557 = vmatpush3.bf16.msra.mxu1 %v1845_v31  ;;  %1719 = vmatprep.subr.bf16.mxu0 %v1718_v2 }
  0x42   :  { %1751 = vmatprep.subr.bf16.mxu1 %v1718_v2 }
  0x43   :  { %888 = vmatmul.mubr.bf16.vlgmr.msra.gmra.mrb[16].mxu0 %v1329_v34 }
  0x44   :  { %953 = vmatmul.mubr.bf16.vlgmr.msra.gmra.mrb[16].mxu1 %v1331_v39  ;;  %895 = vmatprep.mubr.bf16.mxu0 %v1338_v44 }
  0x45   :  { %960 = vmatprep.mubr.bf16.mxu1 %v1340_v45  ;;  %1721 = vmatpush3.bf16.msra.mxu0 %v1718_v2 }
  0x46   :  { %1753 = vmatpush3.bf16.msra.mxu1 %v1718_v2  ;;  %1723 = vmatprep.subr.bf16.mxu0 %v1722_v5 }
  0x47   :  { %1755 = vmatprep.subr.bf16.mxu1 %v1722_v5 }
  0x49   :  { %1725 = vmatpush3.bf16.msra.mxu0 %v1722_v5 }
  0x4a   :  { %1757 = vmatpush3.bf16.msra.mxu1 %v1722_v5  ;;  %1727 = vmatprep.subr.bf16.mxu0 %v1726_v8 }
  0x4b   :  { %896 = vmatmul.mubr.bf16.gmra.mrb[20].mxu0 %v1337_v50  ;;  %1759 = vmatprep.subr.bf16.mxu1 %v1726_v8 }
  0x4c   :  { %961 = vmatmul.mubr.bf16.gmra.mrb[20].mxu1 %v1339_v51  ;;  %903 = vmatprep.mubr.bf16.mxu0 %v1346_v52 }
  0x4d   :  { %968 = vmatprep.mubr.bf16.mxu1 %v1348_v53  ;;  %1729 = vmatpush3.bf16.msra.mxu0 %v1726_v8 }
  0x4e   :  { %1761 = vmatpush3.bf16.msra.mxu1 %v1726_v8  ;;  %1731 = vmatprep.subr.bf16.mxu0 %v1730_v11 }
  0x4f   :  { %1763 = vmatprep.subr.bf16.mxu1 %v1730_v11 }
  0x51   :  { %1733 = vmatpush3.bf16.msra.mxu0 %v1730_v11 }
  0x52   :  { %1765 = vmatpush3.bf16.msra.mxu1 %v1730_v11  ;;  %1735 = vmatprep.subr.bf16.mxu0 %v1734_v14 }
  0x53   :  { %904 = vmatmul.mubr.bf16.gmra.mrb[24].mxu0 %v1345_v58  ;;  %1767 = vmatprep.subr.bf16.mxu1 %v1734_v14 }
  0x54   :  { %969 = vmatmul.mubr.bf16.gmra.mrb[24].mxu1 %v1347_v59  ;;  %911 = vmatprep.mubr.bf16.mxu0 %v1354_v60 }
  0x55   :  { %976 = vmatprep.mubr.bf16.mxu1 %v1356_v61  ;;  %1737 = vmatpush3.bf16.msra.mxu0 %v1734_v14 }
  0x56   :  { %1769 = vmatpush3.bf16.msra.mxu1 %v1734_v14  ;;  %1739 = vmatprep.subr.bf16.mxu0 %v1738_v17 }
  0x57   :  { %1771 = vmatprep.subr.bf16.mxu1 %v1738_v17 }
  0x59   :  { %1741 = vmatpush3.bf16.msra.mxu0 %v1738_v17 }
  0x5a   :  { %1773 = vmatpush3.bf16.msra.mxu1 %v1738_v17  ;;  %1743 = vmatprep.subr.bf16.mxu0 %v1742_v20 }
  0x5b   :  { %912 = vmatmul.mubr.bf16.gmra.mrb[28].mxu0 %v1353_v62  ;;  %1775 = vmatprep.subr.bf16.mxu1 %v1742_v20 }
  0x5c   :  { %977 = vmatmul.mubr.bf16.gmra.mrb[28].mxu1 %v1355_v63 }
  0x5d   :  { %1745 = vmatpush3.bf16.msra.mxu0 %v1742_v20 }
  0x5e   :  { %1777 = vmatpush3.bf16.msra.mxu1 %v1742_v20  ;;  %1747 = vmatprep.subr.bf16.mxu0 %v1746_v23 }
  0x5f   :  { %1779 = vmatprep.subr.bf16.mxu1 %v1746_v23 }
  0x61   :  { %1749 = vmatpush3.bf16.msra.mxu0 %v1746_v23 }
  0x62   :  { %1781 = vmatpush3.bf16.msra.mxu1 %v1746_v23 }
  0xf6   :  { %v1438_v24 = vpop.f32.mrb[0].mxu0 }
  0xf7   :  { %v1478_v25 = vpop.f32.mrb[0].mxu1  ;;  %v1439_v26 = vpop.f32.mrb[1].mxu0 }
  0xf8   :  { %v1440_v27 = vadd.f32 %v1439_v26, %v1438_v24  ;;  %v1479_v28 = vpop.f32.mrb[1].mxu1  ;;  %v1441_v29 = vpop.f32.mrb[2].mxu0 }
  0xf9   :  { %v1480_v30 = vadd.f32 %v1479_v28, %v1478_v25  ;;  %v1481_v31 = vpop.f32.mrb[2].mxu1  ;;  %v1442_v32 = vpop.f32.mrb[3].mxu0 }
  0xfa   :  { %v1443_v33 = vadd.f32 %v1442_v32, %v1441_v29  ;;  %v1482_v34 = vpop.f32.mrb[3].mxu1 }
  0xfb   :  { %v825_v35 = vadd.f32 %v1480_v30, %v1440_v27  ;;  %v1483_v36 = vadd.f32 %v1482_v34, %v1481_v31 }
  0xfd   :  { %v828_v37 = vadd.f32 %v1483_v36, %v1443_v33 }
  0xfe   :  { %v1444_v38 = vpop.f32.mrb[4].mxu0 }
  0xff   :  { %v1484_v39 = vpop.f32.mrb[4].mxu1  ;;  %v1445_v40 = vpop.f32.mrb[5].mxu0 }
 0x100   :  { %v1446_v41 = vadd.f32 %v1445_v40, %v1444_v38  ;;  %v1485_v42 = vpop.f32.mrb[5].mxu1  ;;  %v1447_v43 = vpop.f32.mrb[6].mxu0 }
 0x101   :  { %v1486_v44 = vadd.f32 %v1485_v42, %v1484_v39  ;;  %v1487_v45 = vpop.f32.mrb[6].mxu1  ;;  %v1448_v46 = vpop.f32.mrb[7].mxu0 }
 0x102   :  { %v1449_v47 = vadd.f32 %v1448_v46, %v1447_v43  ;;  %v1488_v48 = vpop.f32.mrb[7].mxu1 }
 0x103   :  { %v833_v49 = vadd.f32 %v1486_v44, %v1446_v41  ;;  %v1489_v50 = vadd.f32 %v1488_v48, %v1487_v45 }
 0x105   :  { %v2214_v51 = vadd.f32 %v1489_v50, %v1449_v47 }
 0x106   :  { %v1450_v52 = vpop.f32.mrb[8].mxu0 }
 0x107   :  { %v1490_v53 = vpop.f32.mrb[8].mxu1  ;;  %v1451_v54 = vpop.f32.mrb[9].mxu0 }
 0x108   :  { %v1491_v55 = vpop.f32.mrb[9].mxu1  ;;  %v1452_v56 = vadd.f32 %v1451_v54, %v1450_v52  ;;  %v1453_v58 = vpop.f32.mrb[10].mxu0 }
 0x109   :  { %v1492_v57 = vadd.f32 %v1491_v55, %v1490_v53  ;;  %v1493_v59 = vpop.f32.mrb[10].mxu1  ;;  %v1454_v60 = vpop.f32.mrb[11].mxu0 }
 0x10a   :  { %v1494_v61 = vpop.f32.mrb[11].mxu1  ;;  %v1455_v63 = vadd.f32 %v1454_v60, %v1453_v58 }
 0x10b   :  { %v2216_v62 = vadd.f32 %v1492_v57, %v1452_v56  ;;  %v1495_v0 = vadd.f32 %v1494_v61, %v1493_v59 }
 0x10d   :  { %v2218_v1 = vadd.f32 %v1495_v0, %v1455_v63 }
 0x10e   :  { %v1456_v2 = vpop.f32.mrb[12].mxu0 }
 0x10f   :  { %v1496_v3 = vpop.f32.mrb[12].mxu1  ;;  %v1457_v4 = vpop.f32.mrb[13].mxu0 }
 0x110   :  { %v1458_v5 = vadd.f32 %v1457_v4, %v1456_v2  ;;  %v1497_v6 = vpop.f32.mrb[13].mxu1  ;;  %v1459_v7 = vpop.f32.mrb[14].mxu0 }
 0x111   :  { %v1498_v8 = vadd.f32 %v1497_v6, %v1496_v3  ;;  %v1499_v9 = vpop.f32.mrb[14].mxu1  ;;  %v1460_v10 = vpop.f32.mrb[15].mxu0 }
 0x112   :  { %v1461_v11 = vadd.f32 %v1460_v10, %v1459_v7  ;;  %v1500_v12 = vpop.f32.mrb[15].mxu1 }
 0x113   :  { %v2220_v13 = vadd.f32 %v1498_v8, %v1458_v5  ;;  %v1501_v14 = vadd.f32 %v1500_v12, %v1499_v9 }
 0x115   :  { %v2222_v15 = vadd.f32 %v1501_v14, %v1461_v11 }
 0x116   :  { %v1518_v16 = vpop.f32.mrb[16].mxu0 }
 0x117   :  { %v1558_v17 = vpop.f32.mrb[16].mxu1  ;;  %v1519_v18 = vpop.f32.mrb[17].mxu0 }
 0x118   :  { %v1520_v19 = vadd.f32 %v1519_v18, %v1518_v16  ;;  %v1559_v20 = vpop.f32.mrb[17].mxu1  ;;  %v1521_v21 = vpop.f32.mrb[18].mxu0 }
 0x119   :  { %v1560_v22 = vadd.f32 %v1559_v20, %v1558_v17  ;;  %v1561_v23 = vpop.f32.mrb[18].mxu1  ;;  %v1522_v24 = vpop.f32.mrb[19].mxu0 }
 0x11a   :  { %v890_v25 = vadd.f32 %v1520_v19, %v825_v35  ;;  %v1523_v26 = vadd.f32 %v1522_v24, %v1521_v21  ;;  %v1562_v27 = vpop.f32.mrb[19].mxu1 }
 0x11b   :  { %v1563_v28 = vadd.f32 %v1562_v27, %v1561_v23 }
 0x11c   :  { %v2224_v29 = vadd.f32 %v1560_v22, %v890_v25  ;;  %v893_v30 = vadd.f32 %v1523_v26, %v828_v37 }
 0x11e   :  { %v2226_v31 = vadd.f32 %v1563_v28, %v893_v30  ;;  %v1524_v32 = vpop.f32.mrb[20].mxu0  ;;  %1662 = vmatprep.mubr.f32.mxu0 %v2224_v29  ;;  %v1106_v33 = vmul.f32 %v2224_v29, %v2224_v29 }
 0x11f   :  { %v1564_v34 = vpop.f32.mrb[20].mxu1  ;;  %v1525_v36 = vpop.f32.mrb[21].mxu0 }
 0x120   :  { %v1107_v38 = vmul.f32 %v2226_v31, %v2226_v31  ;;  %v1526_v35 = vadd.f32 %v1525_v36, %v1524_v32  ;;  %v1565_v39 = vpop.f32.mrb[21].mxu1  ;;  %v1527_v40 = vpop.f32.mrb[22].mxu0  ;;  %1663 = vmatmul.mubr.f32.vlgmr.msra.gmra.mrb[32].mxu0 %v2226_v31  ;;  %1706 = vmatprep.mubr.f32.mxu1 %v1106_v33 }
 0x121   :  { %v1566_v37 = vadd.f32 %v1565_v39, %v1564_v34  ;;  %v1567_v41 = vpop.f32.mrb[22].mxu1  ;;  %v1528_v42 = vpop.f32.mrb[23].mxu0 }
 0x122   :  { %v898_v43 = vadd.f32 %v1526_v35, %v833_v49  ;;  %v1529_v44 = vadd.f32 %v1528_v42, %v1527_v40  ;;  %v1568_v45 = vpop.f32.mrb[23].mxu1  ;;  %1707 = vmatmul.mubr.f32.vlgmr.msra.gmra.mrb[32].mxu1 %v1107_v38 }
 0x123   :  { %v1569_v46 = vadd.f32 %v1568_v45, %v1567_v41 }
 0x124   :  { %v2234_v47 = vadd.f32 %v1566_v37, %v898_v43  ;;  %v901_v48 = vadd.f32 %v1529_v44, %v2214_v51 }
 0x126   :  { %v2237_v50 = vadd.f32 %v1569_v46, %v901_v48  ;;  %v1530_v52 = vpop.f32.mrb[24].mxu0  ;;  %1665 = vmatprep.mubr.f32.mxu0 %v2234_v47  ;;  %v1108_v53 = vmul.f32 %v2234_v47, %v2234_v47 }
 0x127   :  { %v1570_v54 = vpop.f32.mrb[24].mxu1  ;;  %v1531_v55 = vpop.f32.mrb[25].mxu0 }
 0x128   :  { %v1532_v56 = vadd.f32 %v1531_v55, %v1530_v52  ;;  %v1571_v49 = vpop.f32.mrb[25].mxu1  ;;  %v1533_v57 = vpop.f32.mrb[26].mxu0  ;;  %1666 = vmatmul.mubr.f32.gmra.mrb[34].mxu0 %v2237_v50  ;;  %1709 = vmatprep.mubr.f32.mxu1 %v1108_v53  ;;  %v1109_v58 = vmul.f32 %v2237_v50, %v2237_v50 }
 0x129   :  { %v1572_v51 = vadd.f32 %v1571_v49, %v1570_v54  ;;  %v1573_v59 = vpop.f32.mrb[26].mxu1  ;;  %v1534_v60 = vpop.f32.mrb[27].mxu0 }
 0x12a   :  { %v906_v61 = vadd.f32 %v1532_v56, %v2216_v62  ;;  %v1535_v63 = vadd.f32 %v1534_v60, %v1533_v57  ;;  %v1574_v0 = vpop.f32.mrb[27].mxu1  ;;  %1710 = vmatmul.mubr.f32.gmra.mrb[34].mxu1 %v1109_v58 }
 0x12b   :  { %v1575_v2 = vadd.f32 %v1574_v0, %v1573_v59 }
 0x12c   :  { %v2246_v3 = vadd.f32 %v1572_v51, %v906_v61  ;;  %v909_v4 = vadd.f32 %v1535_v63, %v2218_v1 }
 0x12e   :  { %v2249_v5 = vadd.f32 %v1575_v2, %v909_v4  ;;  %v1536_v6 = vpop.f32.mrb[28].mxu0  ;;  %1668 = vmatprep.mubr.f32.mxu0 %v2246_v3  ;;  %v1110_v7 = vmul.f32 %v2246_v3, %v2246_v3 }
 0x12f   :  { %v1576_v8 = vpop.f32.mrb[28].mxu1  ;;  %v1537_v9 = vpop.f32.mrb[29].mxu0 }
 0x130   :  { %v1538_v10 = vadd.f32 %v1537_v9, %v1536_v6  ;;  %v1577_v62 = vpop.f32.mrb[29].mxu1  ;;  %v1539_v11 = vpop.f32.mrb[30].mxu0  ;;  %1669 = vmatmul.mubr.f32.gmra.mrb[36].mxu0 %v2249_v5  ;;  %1712 = vmatprep.mubr.f32.mxu1 %v1110_v7  ;;  %v1111_v12 = vmul.f32 %v2249_v5, %v2249_v5 }
 0x131   :  { %v1578_v1 = vadd.f32 %v1577_v62, %v1576_v8  ;;  %v1579_v14 = vpop.f32.mrb[30].mxu1  ;;  %v1540_v16 = vpop.f32.mrb[31].mxu0 }
 0x132   :  { %v914_v17 = vadd.f32 %v1538_v10, %v2220_v13  ;;  %v1541_v18 = vadd.f32 %v1540_v16, %v1539_v11  ;;  %v1580_v19 = vpop.f32.mrb[31].mxu1  ;;  %1713 = vmatmul.mubr.f32.gmra.mrb[36].mxu1 %v1111_v12  ;;  %v1262_v16 = vlaneseq }
 0x133   :  { %v1581_v20 = vadd.f32 %v1580_v19, %v1579_v14 }
 0x134   :  { %v2258_v21 = vadd.f32 %v1578_v1, %v914_v17  ;;  %v917_v22 = vadd.f32 %v1541_v18, %v2222_v15  ;;  %v1263_v17 = vshrl.u32 %v1262_v16, 7  ;;  %v1260_v18 = vld [vmem:[%s2318_s3] sm:$0x1] }
 0x136   :  { %v2261_v23 = vadd.f32 %v1581_v20, %v917_v22  ;;  %1671 = vmatprep.mubr.f32.mxu0 %v2258_v21  ;;  %v1112_v24 = vmul.f32 %v2258_v21, %v2258_v21  ;;  %v1264_v19 = vsub.s32 0, %v1263_v17 }
 0x138   :  { %1672 = vmatmul.mubr.f32.gmra.mrb[38].mxu0 %v2261_v23  ;;  %1715 = vmatprep.mubr.f32.mxu1 %v1112_v24  ;;  %v1113_v13 = vmul.f32 %v2261_v23, %v2261_v23 }
 0x13a   :  { %1716 = vmatmul.mubr.f32.gmra.mrb[38].mxu1 %v1113_v13 }
 0x1f3   :  { %v1664_v25 = vpop.f32.mrb[32].mxu0 }
 0x1f4   :  { %v1067_v26 = vpop.f32.mrb[33].mxu0 }
 0x1f5   :  { %v1219_v27 = vadd.f32 %v1664_v25, %v1067_v26  ;;  %v1708_v28 = vpop.f32.mrb[32].mxu1 }
 0x1f6   :  { %v1180_v30 = vpop.f32.mrb[33].mxu1 }
 0x1f7   :  { %v1233_v15 = vadd.f32 %v1708_v28, %v1180_v30 }
 0x1fb   :  { %v1667_v32 = vpop.f32.mrb[34].mxu0 }
 0x1fc   :  { %v1077_v33 = vpop.f32.mrb[35].mxu0 }
 0x1fd   :  { %v1220_v34 = vadd.f32 %v1219_v27, %v1077_v33  ;;  %v1711_v36 = vpop.f32.mrb[34].mxu1  ;;  %v1421_v33 = vld [vmem:[%s2319_s4] ss:$0 sm:$0xff] }
 0x1fe   :  { %v1190_v38 = vpop.f32.mrb[35].mxu1 }
 0x1ff   :  { %v1234_v35 = vadd.f32 %v1233_v15, %v1190_v38  ;;  %v1221_v39 = vadd.f32 %v1667_v32, %v1220_v34 }
 0x201   :  { %v1235_v40 = vadd.f32 %v1711_v36, %v1234_v35 }
 0x203   :  { %v1670_v37 = vpop.f32.mrb[36].mxu0 }
 0x204   :  { %v1087_v41 = vpop.f32.mrb[37].mxu0 }
 0x205   :  { %v1222_v42 = vadd.f32 %v1221_v39, %v1087_v41  ;;  %v1714_v43 = vpop.f32.mrb[36].mxu1 }
 0x206   :  { %v1200_v44 = vpop.f32.mrb[37].mxu1 }
 0x207   :  { %v1236_v45 = vadd.f32 %v1235_v40, %v1200_v44  ;;  %v1223_v46 = vadd.f32 %v1670_v37, %v1222_v42 }
 0x209   :  { %v1237_v48 = vadd.f32 %v1714_v43, %v1236_v45 }
 0x20b   :  { %v1673_v52 = vpop.f32.mrb[38].mxu0 }
 0x20c   :  { %v1097_v53 = vpop.f32.mrb[39].mxu0 }
 0x20d   :  { %v1224_v54 = vadd.f32 %v1223_v46, %v1097_v53  ;;  %v1717_v55 = vpop.f32.mrb[38].mxu1 }
 0x20e   :  { %v1210_v56 = vpop.f32.mrb[39].mxu1 }
 0x20f   :  { %v1225_v49 = vadd.f32 %v1673_v52, %v1224_v54  ;;  %v1238_v57 = vadd.f32 %v1237_v48, %v1210_v56 }
 0x211   :  { %v1226_v58 = vrot.slane %v1225_v49, 4  ;;  %v1239_v51 = vadd.f32 %v1717_v55, %v1238_v57 }
 0x213   :  { %v1227_v59 = vadd.f32 %v1226_v58, %v1225_v49  ;;  %v1240_v60 = vrot.slane %v1239_v51, 4 }
 0x215   :  { %v1228_v61 = vrot.slane %v1227_v59, 2  ;;  %v1241_v63 = vadd.f32 %v1240_v60, %v1239_v51 }
 0x217   :  { %v1229_v0 = vadd.f32 %v1228_v61, %v1227_v59  ;;  %v1242_v2 = vrot.slane %v1241_v63, 2 }
 0x219   :  { %v1230_v4 = vrot.slane %v1229_v0, 1  ;;  %v1243_v6 = vadd.f32 %v1242_v2, %v1241_v63 }
 0x21b   :  { %v1231_v7 = vadd.f32 %v1230_v4, %v1229_v0  ;;  %v1244_v8 = vrot.slane %v1243_v6, 1 }
 0x21d   :  { %v1232_v9 = vmul.f32 0.001953125, %v1231_v7  ;;  %v1245_v10 = vadd.f32 %v1244_v8, %v1243_v6 }
 0x21f   :  { %v1246_v62 = vmul.f32 0.001953125, %v1245_v10  ;;  %v1247_v11 = vmul.f32 %v1232_v9, %v1232_v9  ;;  %v1252_v24 = vsub.f32 %v2224_v29, %v1232_v9  ;;  %v1253_v13 = vsub.f32 %v2226_v31, %v1232_v9 }
 0x220   :  { %v1254_v25 = vsub.f32 %v2234_v47, %v1232_v9  ;;  %v1255_v26 = vsub.f32 %v2237_v50, %v1232_v9  ;;  %v1256_v28 = vsub.f32 %v2246_v3, %v1232_v9  ;;  %v1257_v30 = vsub.f32 %v2249_v5, %v1232_v9 }
 0x221   :  { %v1248_v12 = vsub.f32 %v1246_v62, %v1247_v11  ;;  %v1258_v15 = vsub.f32 %v2258_v21, %v1232_v9  ;;  %v1259_v32 = vsub.f32 %v2261_v23, %v1232_v9 }
 0x223   :  { %v1249_v1 = vmax.f32 %v1248_v12, 0.0 }
 0x225   :  { %v1250_v14 = vadd.f32 1e-05, %v1249_v1 }
 0x227   :  { %1846 = vrsqrt.f32 %v1250_v14 }
 0x231   :  { %v1847_v20 = vpop.eup %1846 }
 0x232   :  { %v1261_v22 = vmul.f32 %v1847_v20, %v1260_v18 }
 0x234   :  { %v1265_v27 = vrot.slane %v1261_v22, %v1264_v19 }
 0x236   :  { %v1266_v29 = vmul.f32 %v1265_v27, %v1252_v24  ;;  %v1267_v34 = vmul.f32 %v1265_v27, %v1253_v13  ;;  %v1268_v31 = vmul.f32 %v1265_v27, %v1254_v25  ;;  %v1269_v36 = vmul.f32 %v1265_v27, %v1255_v26 }
 0x237   :  { %v1270_v47 = vmul.f32 %v1265_v27, %v1256_v28  ;;  %v1271_v38 = vmul.f32 %v1265_v27, %v1257_v30  ;;  %v1272_v50 = vmul.f32 %v1265_v27, %v1258_v15  ;;  %v1273_v35 = vmul.f32 %v1265_v27, %v1259_v32 }
 0x238   :  { %v1281_v39 = vadd.f32 %v1421_v33, %v1266_v29  ;;  %v1282_v3 = vadd.f32 %v1421_v33, %v1267_v34  ;;  %v1283_v40 = vadd.f32 %v1421_v33, %v1268_v31  ;;  %v1284_v5 = vadd.f32 %v1421_v33, %v1269_v36 }
 0x239   :  { %v1285_v37 = vadd.f32 %v1421_v33, %v1270_v47  ;;  %v1286_v21 = vadd.f32 %v1421_v33, %v1271_v38  ;;  %v1287_v41 = vadd.f32 %v1421_v33, %v1272_v50  ;;  %v1288_v23 = vadd.f32 %v1421_v33, %v1273_v35 }
 0x23a   :  { %vm1289_vm0 = vcmp.ge.f32.partialorder %v1281_v39, 0.0  ;;  %vm1290_vm1 = vcmp.ge.f32.partialorder %v1282_v3, 0.0  ;;  %vm1291_vm2 = vcmp.ge.f32.partialorder %v1283_v40, 0.0  ;;  %vm1292_vm3 = vcmp.ge.f32.partialorder %v1284_v5, 0.0 }
 0x23b   :  { %vm1293_vm4 = vcmp.ge.f32.partialorder %v1285_v37, 0.0  ;;  %vm1294_vm5 = vcmp.ge.f32.partialorder %v1286_v21, 0.0  ;;  %vm1295_vm6 = vcmp.ge.f32.partialorder %v1287_v41, 0.0  ;;  %vm1296_vm7 = vcmp.ge.f32.partialorder %v1288_v23, 0.0 }
 0x23c   :  { %v1297_v42 = vmul.f32 0.2, %v1281_v39  ;;  %v1298_v43 = vmul.f32 0.2, %v1282_v3  ;;  %v1299_v44 = vmul.f32 0.2, %v1283_v40 }
 0x23d   :  { %v1300_v45 = vmul.f32 0.2, %v1284_v5  ;;  %v1301_v46 = vmul.f32 0.2, %v1285_v37  ;;  %v1302_v48 = vmul.f32 0.2, %v1286_v21 }
 0x23e   :  { %v1303_v52 = vmul.f32 0.2, %v1287_v41  ;;  %v1304_v53 = vmul.f32 0.2, %v1288_v23  ;;  %v1305_v54 = vsel %vm1289_vm0, %v1281_v39, %v1297_v42  ;;  %v1306_v55 = vsel %vm1290_vm1, %v1282_v3, %v1298_v43 }
 0x23f   :  { %v1307_v56 = vsel %vm1291_vm2, %v1283_v40, %v1299_v44  ;;  %v1308_v49 = vsel %vm1292_vm3, %v1284_v5, %v1300_v45  ;;  %v1309_v57 = vsel %vm1293_vm4, %v1285_v37, %v1301_v46  ;;  %v1310_v58 = vsel %vm1294_vm5, %v1286_v21, %v1302_v48  ;;  %1313 = vst [vmem:[%s2320_s5] sm:$0xff] %v1305_v54 }
 0x240   :  { %1314 = vst [vmem:[%s2320_s5 + $0x8] sm:$0xff] %v1306_v55  ;;  %v1311_v51 = vsel %vm1295_vm6, %v1287_v41, %v1303_v52  ;;  %v1312_v59 = vsel %vm1296_vm7, %v1288_v23, %v1304_v53  ;;  %1315 = vst [vmem:[%s2320_s5 + $0x10] sm:$0xff] %v1307_v56 }
 0x241   :  { %1316 = vst [vmem:[%s2320_s5 + $0x18] sm:$0xff] %v1308_v49  ;;  %1317 = vst [vmem:[%s2320_s5 + $0x20] sm:$0xff] %v1309_v57 }
 0x242   :  { %1318 = vst [vmem:[%s2320_s5 + $0x28] sm:$0xff] %v1310_v58  ;;  %1319 = vst [vmem:[%s2320_s5 + $0x30] sm:$0xff] %v1311_v51 }
 0x243   :  { %1320 = vst [vmem:[%s2320_s5 + $0x38] sm:$0xff] %v1312_v59 }

// kernel: discriminator_forward.6
= control target key start
LH: loop header
LB: loop body
LE: loop exit
PB: predicated region body
PF: predicated region fallthrough
CT: control target
= control target key end

     0   :  { %s1872_s1 = inlined_call_operand.vmem [shape: bf16[1024,128], index: 1, kind: input, shape index: {}]   ;;  %s1873_s0 = inlined_call_operand.vmem [shape: bf16[32,1024], index: 0, kind: input, shape index: {}]   ;;  %s1874_s2 = inlined_call_operand.vmem [shape: f32[128,128], index: 2, kind: input, shape index: {}]   ;;  %s1875_s3 = inlined_call_operand.vmem [shape: f32[1,128], index: 3, kind: input, shape index: {}]   ;;  %s1876_s4 = inlined_call_operand.vmem [shape: f32[1,128], index: 4, kind: input, shape index: {}]   ;;  %s1877_s5 = inlined_call_operand.vmem [shape: f32[32,128], index: 5, kind: output, shape index: {}]  }
   0x1   :  { %v1458_v0 = vld [vmem:[%s1872_s1 + $0x40] sm:$0xff]   ;;  %v1462_v4 = vld [vmem:[%s1872_s1 + $0x48] sm:$0xff]   ;;  %v1466_v8 = vld [vmem:[%s1872_s1 + $0x50] sm:$0xff]  }
   0x2   :  { %v1459_v1 = vld [vmem:[%s1872_s1 + $0xc0] sm:$0xff]   ;;  %1166 = vmatprep.subr.bf16.mxu0 %v1458_v0  ;;  %v1463_v5 = vld [vmem:[%s1872_s1 + $0xc8] sm:$0xff]   ;;  %v1467_v9 = vld [vmem:[%s1872_s1 + $0xd0] sm:$0xff]  }
   0x3   :  { %v1460_v2 = vld [vmem:[%s1872_s1] sm:$0xff]   ;;  %1194 = vmatprep.subr.bf16.mxu1 %v1459_v1  ;;  %v1464_v6 = vld [vmem:[%s1872_s1 + $0x8] sm:$0xff]   ;;  %v1468_v10 = vld [vmem:[%s1872_s1 + $0x10] sm:$0xff]  }
   0x4   :  { %v1461_v3 = vld [vmem:[%s1872_s1 + $0x80] sm:$0xff]   ;;  %1167 = vmatpush3.bf16.msra.mxu0 %v1460_v2  ;;  %v1465_v7 = vld [vmem:[%s1872_s1 + $0x88] sm:$0xff]   ;;  %v1469_v11 = vld [vmem:[%s1872_s1 + $0x90] sm:$0xff]  }
   0x5   :  { %1195 = vmatpush3.bf16.msra.mxu1 %v1461_v3  ;;  %1168 = vmatprep.subr.bf16.mxu0 %v1462_v4  ;;  %v1470_v12 = vld [vmem:[%s1872_s1 + $0x58] sm:$0xff]   ;;  %v1474_v16 = vld [vmem:[%s1872_s1 + $0x60] sm:$0xff]   ;;  %v1478_v20 = vld [vmem:[%s1872_s1 + $0x68] sm:$0xff]  }
   0x6   :  { %1196 = vmatprep.subr.bf16.mxu1 %v1463_v5  ;;  %v1471_v13 = vld [vmem:[%s1872_s1 + $0xd8] sm:$0xff]   ;;  %v1475_v17 = vld [vmem:[%s1872_s1 + $0xe0] sm:$0xff]   ;;  %v1479_v21 = vld [vmem:[%s1872_s1 + $0xe8] sm:$0xff]  }
   0x7   :  { %v1472_v14 = vld [vmem:[%s1872_s1 + $0x18] sm:$0xff]   ;;  %v1476_v18 = vld [vmem:[%s1872_s1 + $0x20] sm:$0xff]   ;;  %v1480_v22 = vld [vmem:[%s1872_s1 + $0x28] sm:$0xff]  }
   0x8   :  { %1169 = vmatpush3.bf16.msra.mxu0 %v1464_v6  ;;  %v1473_v15 = vld [vmem:[%s1872_s1 + $0x98] sm:$0xff]   ;;  %v1477_v19 = vld [vmem:[%s1872_s1 + $0xa0] sm:$0xff]   ;;  %v1481_v23 = vld [vmem:[%s1872_s1 + $0xa8] sm:$0xff]  }
   0x9   :  { %1197 = vmatpush3.bf16.msra.mxu1 %v1465_v7  ;;  %1170 = vmatprep.subr.bf16.mxu0 %v1466_v8  ;;  %v1482_v24 = vld [vmem:[%s1872_s1 + $0x70] sm:$0xff]   ;;  %v1486_v28 = vld [vmem:[%s1872_s1 + $0x78] sm:$0xff]   ;;  %v21_v32 = vld [vmem:[%s1873_s0] sm:$0xff] }
   0xa   :  { %1198 = vmatprep.subr.bf16.mxu1 %v1467_v9  ;;  %v1483_v25 = vld [vmem:[%s1872_s1 + $0xf0] sm:$0xff]   ;;  %v1487_v29 = vld [vmem:[%s1872_s1 + $0xf8] sm:$0xff]   ;;  %v25_v33 = vld [vmem:[%s1873_s0 + $0x20] sm:$0xff] }
   0xb   :  { %v1484_v26 = vld [vmem:[%s1872_s1 + $0x30] sm:$0xff]   ;;  %v1488_v30 = vld [vmem:[%s1872_s1 + $0x38] sm:$0xff]   ;;  %v22_v34 = vld [vmem:[%s1873_s0 + $0x8] sm:$0xff]  ;;  %v1085_v35 = vcombine.low %v21_v32, %v25_v33  ;;  %v1086_v36 = vcombine.high %v21_v32, %v25_v33 }
   0xc   :  { %1171 = vmatpush3.bf16.msra.mxu0 %v1468_v10  ;;  %v1485_v27 = vld [vmem:[%s1872_s1 + $0xb0] sm:$0xff]   ;;  %v1489_v31 = vld [vmem:[%s1872_s1 + $0xb8] sm:$0xff]   ;;  %v26_v37 = vld [vmem:[%s1873_s0 + $0x28] sm:$0xff] }
   0xd   :  { %1199 = vmatpush3.bf16.msra.mxu1 %v1469_v11  ;;  %1172 = vmatprep.subr.bf16.mxu0 %v1470_v12  ;;  %v1087_v38 = vcombine.low %v22_v34, %v26_v37  ;;  %v1088_v39 = vcombine.high %v22_v34, %v26_v37  ;;  %v1490_v40 = vld [vmem:[%s1872_s1 + $0x140] sm:$0xff]   ;;  %v1494_v44 = vld [vmem:[%s1872_s1 + $0x148] sm:$0xff]   ;;  %v1498_v48 = vld [vmem:[%s1872_s1 + $0x150] sm:$0xff]  }
   0xe   :  { %1200 = vmatprep.subr.bf16.mxu1 %v1471_v13  ;;  %661 = vmatprep.mubr.bf16.mxu0 %v1086_v36  ;;  %v1491_v41 = vld [vmem:[%s1872_s1 + $0x1c0] sm:$0xff]   ;;  %v1495_v45 = vld [vmem:[%s1872_s1 + $0x1c8] sm:$0xff]   ;;  %v1499_v49 = vld [vmem:[%s1872_s1 + $0x1d0] sm:$0xff]  }
   0xf   :  { %710 = vmatprep.mubr.bf16.mxu1 %v1088_v39  ;;  %v1492_v42 = vld [vmem:[%s1872_s1 + $0x100] sm:$0xff]   ;;  %v1496_v46 = vld [vmem:[%s1872_s1 + $0x108] sm:$0xff]   ;;  %v1500_v50 = vld [vmem:[%s1872_s1 + $0x110] sm:$0xff]  }
  0x10   :  { %1173 = vmatpush3.bf16.msra.mxu0 %v1472_v14  ;;  %v1493_v43 = vld [vmem:[%s1872_s1 + $0x180] sm:$0xff]   ;;  %v1497_v47 = vld [vmem:[%s1872_s1 + $0x188] sm:$0xff]   ;;  %v1501_v51 = vld [vmem:[%s1872_s1 + $0x190] sm:$0xff]  }
  0x11   :  { %1201 = vmatpush3.bf16.msra.mxu1 %v1473_v15  ;;  %1174 = vmatprep.subr.bf16.mxu0 %v1474_v16  ;;  %v1502_v52 = vld [vmem:[%s1872_s1 + $0x158] sm:$0xff]   ;;  %v1506_v56 = vld [vmem:[%s1872_s1 + $0x160] sm:$0xff]   ;;  %v30_v63 = vld [vmem:[%s1873_s0 + $0x48] sm:$0xff] }
  0x12   :  { %1202 = vmatprep.subr.bf16.mxu1 %v1475_v17  ;;  %v1503_v53 = vld [vmem:[%s1872_s1 + $0x1d8] sm:$0xff]   ;;  %v1507_v57 = vld [vmem:[%s1872_s1 + $0x1e0] sm:$0xff]   ;;  %v34_v0 = vld [vmem:[%s1873_s0 + $0x68] sm:$0xff] }
  0x13   :  { %v1504_v54 = vld [vmem:[%s1872_s1 + $0x118] sm:$0xff]   ;;  %v1508_v58 = vld [vmem:[%s1872_s1 + $0x120] sm:$0xff]   ;;  %v1096_v2 = vcombine.high %v30_v63, %v34_v0  ;;  %v1510_v3 = vld [vmem:[%s1872_s1 + $0x168] sm:$0xff]   ;;  %v1095_v4 = vcombine.low %v30_v63, %v34_v0 }
  0x14   :  { %1175 = vmatpush3.bf16.msra.mxu0 %v1476_v18  ;;  %v1505_v55 = vld [vmem:[%s1872_s1 + $0x198] sm:$0xff]   ;;  %v1509_v59 = vld [vmem:[%s1872_s1 + $0x1a0] sm:$0xff]   ;;  %v1511_v5 = vld [vmem:[%s1872_s1 + $0x1e8] sm:$0xff]  }
  0x15   :  { %1203 = vmatpush3.bf16.msra.mxu1 %v1477_v19  ;;  %1176 = vmatprep.subr.bf16.mxu0 %v1478_v20  ;;  %v29_v60 = vld [vmem:[%s1873_s0 + $0x40] sm:$0xff]  ;;  %v1512_v6 = vld [vmem:[%s1872_s1 + $0x128] sm:$0xff]   ;;  %v1514_v8 = vld [vmem:[%s1872_s1 + $0x170] sm:$0xff]  }
  0x16   :  { %1204 = vmatprep.subr.bf16.mxu1 %v1479_v21  ;;  %v33_v61 = vld [vmem:[%s1873_s0 + $0x60] sm:$0xff]  ;;  %v1513_v7 = vld [vmem:[%s1872_s1 + $0x1a8] sm:$0xff]   ;;  %v1515_v9 = vld [vmem:[%s1872_s1 + $0x1f0] sm:$0xff]  }
  0x17   :  { %v1094_v62 = vcombine.high %v29_v60, %v33_v61  ;;  %v1093_v1 = vcombine.low %v29_v60, %v33_v61  ;;  %v1516_v10 = vld [vmem:[%s1872_s1 + $0x130] sm:$0xff]   ;;  %v1518_v12 = vld [vmem:[%s1872_s1 + $0x178] sm:$0xff]   ;;  %v825_v32 = vld [vmem:[%s1874_s2] sm:$0xff] }
  0x18   :  { %1177 = vmatpush3.bf16.msra.mxu0 %v1480_v22  ;;  %v1517_v11 = vld [vmem:[%s1872_s1 + $0x1b0] sm:$0xff]   ;;  %v1519_v13 = vld [vmem:[%s1872_s1 + $0x1f8] sm:$0xff]   ;;  %v826_v33 = vld [vmem:[%s1874_s2 + $0x8] sm:$0xff] }
  0x19   :  { %1205 = vmatpush3.bf16.msra.mxu1 %v1481_v23  ;;  %1178 = vmatprep.subr.bf16.mxu0 %v1482_v24  ;;  %v1520_v14 = vld [vmem:[%s1872_s1 + $0x138] sm:$0xff]   ;;  %v23_v16 = vld [vmem:[%s1873_s0 + $0x10] sm:$0xff]  ;;  %v830_v39 = vld [vmem:[%s1874_s2 + $0x28] sm:$0xff] }
  0x1a   :  { %1206 = vmatprep.subr.bf16.mxu1 %v1483_v25  ;;  %v1521_v15 = vld [vmem:[%s1872_s1 + $0x1b8] sm:$0xff]   ;;  %v27_v17 = vld [vmem:[%s1873_s0 + $0x30] sm:$0xff] }
  0x1b   :  { %v24_v18 = vld [vmem:[%s1873_s0 + $0x18] sm:$0xff]  ;;  %v1089_v20 = vcombine.low %v23_v16, %v27_v17  ;;  %v1090_v21 = vcombine.high %v23_v16, %v27_v17  ;;  %v31_v24 = vld [vmem:[%s1873_s0 + $0x50] sm:$0xff] }
  0x1c   :  { %1179 = vmatpush3.bf16.msra.mxu0 %v1484_v26  ;;  %v28_v19 = vld [vmem:[%s1873_s0 + $0x38] sm:$0xff]  ;;  %v35_v25 = vld [vmem:[%s1873_s0 + $0x70] sm:$0xff] }
  0x1d   :  { %1207 = vmatpush3.bf16.msra.mxu1 %v1485_v27  ;;  %1180 = vmatprep.subr.bf16.mxu0 %v1486_v28  ;;  %v1091_v22 = vcombine.low %v24_v18, %v28_v19  ;;  %v1092_v23 = vcombine.high %v24_v18, %v28_v19  ;;  %v32_v26 = vld [vmem:[%s1873_s0 + $0x58] sm:$0xff]  ;;  %v1098_v27 = vcombine.high %v31_v24, %v35_v25  ;;  %v827_v34 = vld [vmem:[%s1874_s2 + $0x10] sm:$0xff] }
  0x1e   :  { %1208 = vmatprep.subr.bf16.mxu1 %v1487_v29  ;;  %v36_v28 = vld [vmem:[%s1873_s0 + $0x78] sm:$0xff] }
  0x1f   :  { %v1100_v29 = vcombine.high %v32_v26, %v36_v28  ;;  %v828_v36 = vld [vmem:[%s1874_s2 + $0x18] sm:$0xff] }
  0x20   :  { %1181 = vmatpush3.bf16.msra.mxu0 %v1488_v30  ;;  %v1097_v30 = vcombine.low %v31_v24, %v35_v25  ;;  %v1398_v37 = vpack.c.bf16 %v828_v36, %v827_v34 }
  0x21   :  { %1209 = vmatpush3.bf16.msra.mxu1 %v1489_v31  ;;  %1222 = vmatprep.subr.bf16.mxu0 %v1490_v40  ;;  %v1099_v31 = vcombine.low %v32_v26, %v36_v28 }
  0x22   :  { %1250 = vmatprep.subr.bf16.mxu1 %v1491_v41  ;;  %v831_v41 = vld [vmem:[%s1874_s2 + $0x30] sm:$0xff] }
  0x23   :  { %662 = vmatmul.mubr.bf16.vlgmr.msra.gmra.mrb[0].mxu0 %v1085_v35  ;;  %v1394_v35 = vpack.c.bf16 %v826_v33, %v825_v32 }
  0x24   :  { %711 = vmatmul.mubr.bf16.vlgmr.msra.gmra.mrb[0].mxu1 %v1087_v38  ;;  %1223 = vmatpush3.bf16.msra.mxu0 %v1492_v42  ;;  %v829_v38 = vld [vmem:[%s1874_s2 + $0x20] sm:$0xff]  ;;  %v832_v42 = vld [vmem:[%s1874_s2 + $0x38] sm:$0xff] }
  0x25   :  { %1251 = vmatpush3.bf16.msra.mxu1 %v1493_v43  ;;  %1224 = vmatprep.subr.bf16.mxu0 %v1494_v44  ;;  %v1402_v40 = vpack.c.bf16 %v830_v39, %v829_v38  ;;  %v1406_v43 = vpack.c.bf16 %v832_v42, %v831_v41  ;;  %v833_v44 = vld [vmem:[%s1874_s2 + $0x40] sm:$0xff] }
  0x26   :  { %1252 = vmatprep.subr.bf16.mxu1 %v1495_v45  ;;  %669 = vmatprep.mubr.bf16.mxu0 %v1094_v62  ;;  %v834_v45 = vld [vmem:[%s1874_s2 + $0x48] sm:$0xff] }
  0x27   :  { %718 = vmatprep.mubr.bf16.mxu1 %v1096_v2 }
  0x28   :  { %1225 = vmatpush3.bf16.msra.mxu0 %v1496_v46  ;;  %v1410_v46 = vpack.c.bf16 %v834_v45, %v833_v44 }
  0x29   :  { %1253 = vmatpush3.bf16.msra.mxu1 %v1497_v47  ;;  %1226 = vmatprep.subr.bf16.mxu0 %v1498_v48  ;;  %v835_v47 = vld [vmem:[%s1874_s2 + $0x50] sm:$0xff]  ;;  %v836_v48 = vld [vmem:[%s1874_s2 + $0x58] sm:$0xff] }
  0x2a   :  { %1254 = vmatprep.subr.bf16.mxu1 %v1499_v49  ;;  %v1414_v49 = vpack.c.bf16 %v836_v48, %v835_v47 }
  0x2b   :  { %670 = vmatmul.mubr.bf16.gmra.mrb[4].mxu0 %v1093_v1 }
  0x2c   :  { %1227 = vmatpush3.bf16.msra.mxu0 %v1500_v50  ;;  %719 = vmatmul.mubr.bf16.gmra.mrb[4].mxu1 %v1095_v4  ;;  %v837_v50 = vld [vmem:[%s1874_s2 + $0x60] sm:$0xff] }
  0x2d   :  { %1255 = vmatpush3.bf16.msra.mxu1 %v1501_v51  ;;  %1228 = vmatprep.subr.bf16.mxu0 %v1502_v52  ;;  %v838_v51 = vld [vmem:[%s1874_s2 + $0x68] sm:$0xff] }
  0x2e   :  { %1256 = vmatprep.subr.bf16.mxu1 %v1503_v53  ;;  %759 = vmatprep.mubr.bf16.mxu0 %v1090_v21  ;;  %v1418_v52 = vpack.c.bf16 %v838_v51, %v837_v50  ;;  %v839_v53 = vld [vmem:[%s1874_s2 + $0x70] sm:$0xff] }
  0x2f   :  { %808 = vmatprep.mubr.bf16.mxu1 %v1092_v23 }
  0x30   :  { %1229 = vmatpush3.bf16.msra.mxu0 %v1504_v54  ;;  %v840_v54 = vld [vmem:[%s1874_s2 + $0x78] sm:$0xff] }
  0x31   :  { %1257 = vmatpush3.bf16.msra.mxu1 %v1505_v55  ;;  %1230 = vmatprep.subr.bf16.mxu0 %v1506_v56  ;;  %v1422_v55 = vpack.c.bf16 %v840_v54, %v839_v53 }
  0x32   :  { %1258 = vmatprep.subr.bf16.mxu1 %v1507_v57 }
  0x34   :  { %1231 = vmatpush3.bf16.msra.mxu0 %v1508_v58 }
  0x35   :  { %1259 = vmatpush3.bf16.msra.mxu1 %v1509_v59  ;;  %1232 = vmatprep.subr.bf16.mxu0 %v1510_v3 }
  0x36   :  { %1260 = vmatprep.subr.bf16.mxu1 %v1511_v5 }
  0x38   :  { %1233 = vmatpush3.bf16.msra.mxu0 %v1512_v6 }
  0x39   :  { %1261 = vmatpush3.bf16.msra.mxu1 %v1513_v7  ;;  %1234 = vmatprep.subr.bf16.mxu0 %v1514_v8 }
  0x3a   :  { %1262 = vmatprep.subr.bf16.mxu1 %v1515_v9 }
  0x3c   :  { %1235 = vmatpush3.bf16.msra.mxu0 %v1516_v10 }
  0x3d   :  { %1263 = vmatpush3.bf16.msra.mxu1 %v1517_v11  ;;  %1236 = vmatprep.subr.bf16.mxu0 %v1518_v12 }
  0x3e   :  { %1264 = vmatprep.subr.bf16.mxu1 %v1519_v13 }
  0x40   :  { %1237 = vmatpush3.bf16.msra.mxu0 %v1520_v14 }
  0x41   :  { %1265 = vmatpush3.bf16.msra.mxu1 %v1521_v15  ;;  %1395 = vmatprep.subr.bf16.mxu0 %v1394_v35 }
  0x42   :  { %1427 = vmatprep.subr.bf16.mxu1 %v1394_v35 }
  0x43   :  { %760 = vmatmul.mubr.bf16.vlgmr.msra.gmra.mrb[8].mxu0 %v1089_v20 }
  0x44   :  { %809 = vmatmul.mubr.bf16.vlgmr.msra.gmra.mrb[8].mxu1 %v1091_v22  ;;  %767 = vmatprep.mubr.bf16.mxu0 %v1098_v27 }
  0x45   :  { %816 = vmatprep.mubr.bf16.mxu1 %v1100_v29  ;;  %1397 = vmatpush3.bf16.msra.mxu0 %v1394_v35 }
  0x46   :  { %1429 = vmatpush3.bf16.msra.mxu1 %v1394_v35  ;;  %1399 = vmatprep.subr.bf16.mxu0 %v1398_v37 }
  0x47   :  { %1431 = vmatprep.subr.bf16.mxu1 %v1398_v37 }
  0x49   :  { %1401 = vmatpush3.bf16.msra.mxu0 %v1398_v37 }
  0x4a   :  { %1433 = vmatpush3.bf16.msra.mxu1 %v1398_v37  ;;  %1403 = vmatprep.subr.bf16.mxu0 %v1402_v40 }
  0x4b   :  { %768 = vmatmul.mubr.bf16.gmra.mrb[12].mxu0 %v1097_v30  ;;  %1435 = vmatprep.subr.bf16.mxu1 %v1402_v40 }
  0x4c   :  { %817 = vmatmul.mubr.bf16.gmra.mrb[12].mxu1 %v1099_v31 }
  0x4d   :  { %1405 = vmatpush3.bf16.msra.mxu0 %v1402_v40 }
  0x4e   :  { %1437 = vmatpush3.bf16.msra.mxu1 %v1402_v40  ;;  %1407 = vmatprep.subr.bf16.mxu0 %v1406_v43 }
  0x4f   :  { %1439 = vmatprep.subr.bf16.mxu1 %v1406_v43 }
  0x51   :  { %1409 = vmatpush3.bf16.msra.mxu0 %v1406_v43 }
  0x52   :  { %1441 = vmatpush3.bf16.msra.mxu1 %v1406_v43  ;;  %1411 = vmatprep.subr.bf16.mxu0 %v1410_v46 }
  0x53   :  { %1443 = vmatprep.subr.bf16.mxu1 %v1410_v46 }
  0x55   :  { %1413 = vmatpush3.bf16.msra.mxu0 %v1410_v46 }
  0x56   :  { %1445 = vmatpush3.bf16.msra.mxu1 %v1410_v46  ;;  %1415 = vmatprep.subr.bf16.mxu0 %v1414_v49 }
  0x57   :  { %1447 = vmatprep.subr.bf16.mxu1 %v1414_v49 }
  0x59   :  { %1417 = vmatpush3.bf16.msra.mxu0 %v1414_v49 }
  0x5a   :  { %1449 = vmatpush3.bf16.msra.mxu1 %v1414_v49  ;;  %1419 = vmatprep.subr.bf16.mxu0 %v1418_v52 }
  0x5b   :  { %1451 = vmatprep.subr.bf16.mxu1 %v1418_v52 }
  0x5d   :  { %1421 = vmatpush3.bf16.msra.mxu0 %v1418_v52 }
  0x5e   :  { %1453 = vmatpush3.bf16.msra.mxu1 %v1418_v52  ;;  %1423 = vmatprep.subr.bf16.mxu0 %v1422_v55 }
  0x5f   :  { %1455 = vmatprep.subr.bf16.mxu1 %v1422_v55 }
  0x61   :  { %1425 = vmatpush3.bf16.msra.mxu0 %v1422_v55 }
  0x62   :  { %1457 = vmatpush3.bf16.msra.mxu1 %v1422_v55 }
  0xf6   :  { %v1182_v56 = vpop.f32.mrb[0].mxu0 }
  0xf7   :  { %v1210_v57 = vpop.f32.mrb[0].mxu1  ;;  %v1183_v58 = vpop.f32.mrb[1].mxu0 }
  0xf8   :  { %v1184_v59 = vadd.f32 %v1183_v58, %v1182_v56  ;;  %v1211_v60 = vpop.f32.mrb[1].mxu1  ;;  %v1185_v61 = vpop.f32.mrb[2].mxu0 }
  0xf9   :  { %v1212_v62 = vadd.f32 %v1211_v60, %v1210_v57  ;;  %v1213_v63 = vpop.f32.mrb[2].mxu1  ;;  %v1186_v0 = vpop.f32.mrb[3].mxu0 }
  0xfa   :  { %v1187_v1 = vadd.f32 %v1186_v0, %v1185_v61  ;;  %v1214_v2 = vpop.f32.mrb[3].mxu1 }
  0xfb   :  { %v713_v3 = vadd.f32 %v1212_v62, %v1184_v59  ;;  %v1215_v4 = vadd.f32 %v1214_v2, %v1213_v63 }
  0xfd   :  { %v716_v5 = vadd.f32 %v1215_v4, %v1187_v1 }
  0xfe   :  { %v1188_v6 = vpop.f32.mrb[4].mxu0 }
  0xff   :  { %v1216_v7 = vpop.f32.mrb[4].mxu1  ;;  %v1189_v8 = vpop.f32.mrb[5].mxu0 }
 0x100   :  { %v1190_v9 = vadd.f32 %v1189_v8, %v1188_v6  ;;  %v1217_v10 = vpop.f32.mrb[5].mxu1  ;;  %v1191_v11 = vpop.f32.mrb[6].mxu0 }
 0x101   :  { %v1218_v12 = vadd.f32 %v1217_v10, %v1216_v7  ;;  %v1219_v13 = vpop.f32.mrb[6].mxu1  ;;  %v1192_v14 = vpop.f32.mrb[7].mxu0 }
 0x102   :  { %v1193_v15 = vadd.f32 %v1192_v14, %v1191_v11  ;;  %v1220_v16 = vpop.f32.mrb[7].mxu1 }
 0x103   :  { %v721_v17 = vadd.f32 %v1218_v12, %v1190_v9  ;;  %v1221_v18 = vadd.f32 %v1220_v16, %v1219_v13 }
 0x105   :  { %v724_v19 = vadd.f32 %v1221_v18, %v1193_v15 }
 0x116   :  { %v1238_v20 = vpop.f32.mrb[8].mxu0 }
 0x117   :  { %v1266_v21 = vpop.f32.mrb[8].mxu1  ;;  %v1239_v22 = vpop.f32.mrb[9].mxu0 }
 0x118   :  { %v1267_v23 = vpop.f32.mrb[9].mxu1  ;;  %v1240_v24 = vadd.f32 %v1239_v22, %v1238_v20  ;;  %v1241_v26 = vpop.f32.mrb[10].mxu0 }
 0x119   :  { %v1268_v25 = vadd.f32 %v1267_v23, %v1266_v21  ;;  %v1269_v27 = vpop.f32.mrb[10].mxu1  ;;  %v1242_v28 = vpop.f32.mrb[11].mxu0 }
 0x11a   :  { %v1270_v29 = vpop.f32.mrb[11].mxu1  ;;  %v762_v30 = vadd.f32 %v1240_v24, %v713_v3  ;;  %v1243_v31 = vadd.f32 %v1242_v28, %v1241_v26  ;;  %v1046_v24 = vlaneseq  ;;  %v1044_v26 = vld [vmem:[%s1875_s3] sm:$0x1] }
 0x11b   :  { %v1271_v32 = vadd.f32 %v1270_v29, %v1269_v27 }
 0x11c   :  { %v1842_v33 = vadd.f32 %v1268_v25, %v762_v30  ;;  %v765_v34 = vadd.f32 %v1243_v31, %v716_v5  ;;  %v1047_v25 = vshrl.u32 %v1046_v24, 7 }
 0x11e   :  { %v1844_v35 = vadd.f32 %v1271_v32, %v765_v34  ;;  %v1244_v36 = vpop.f32.mrb[12].mxu0  ;;  %1350 = vmatprep.mubr.f32.mxu0 %v1842_v33  ;;  %v926_v38 = vmul.f32 %v1842_v33, %v1842_v33  ;;  %v1048_v27 = vsub.s32 0, %v1047_v25 }
 0x11f   :  { %v1272_v37 = vpop.f32.mrb[12].mxu1  ;;  %v1245_v39 = vpop.f32.mrb[13].mxu0 }
 0x120   :  { %v1273_v40 = vpop.f32.mrb[13].mxu1  ;;  %v927_v41 = vmul.f32 %v1844_v35, %v1844_v35  ;;  %v1246_v42 = vadd.f32 %v1245_v39, %v1244_v36  ;;  %v1247_v44 = vpop.f32.mrb[14].mxu0  ;;  %1351 = vmatmul.mubr.f32.vlgmr.msra.gmra.mrb[16].mxu0 %v1844_v35  ;;  %1388 = vmatprep.mubr.f32.mxu1 %v926_v38 }
 0x121   :  { %v1274_v43 = vadd.f32 %v1273_v40, %v1272_v37  ;;  %v1275_v45 = vpop.f32.mrb[14].mxu1  ;;  %v1248_v46 = vpop.f32.mrb[15].mxu0  ;;  %v1165_v37 = vld [vmem:[%s1876_s4] ss:$0 sm:$0xff] }
 0x122   :  { %v1276_v47 = vpop.f32.mrb[15].mxu1  ;;  %v770_v48 = vadd.f32 %v1246_v42, %v721_v17  ;;  %v1249_v49 = vadd.f32 %v1248_v46, %v1247_v44  ;;  %1389 = vmatmul.mubr.f32.vlgmr.msra.gmra.mrb[16].mxu1 %v927_v41 }
 0x123   :  { %v1277_v50 = vadd.f32 %v1276_v47, %v1275_v45 }
 0x124   :  { %v819_v51 = vadd.f32 %v1274_v43, %v770_v48  ;;  %v773_v52 = vadd.f32 %v1249_v49, %v724_v19 }
 0x126   :  { %v822_v53 = vadd.f32 %v1277_v50, %v773_v52  ;;  %1353 = vmatprep.mubr.f32.mxu0 %v819_v51  ;;  %v928_v54 = vmul.f32 %v819_v51, %v819_v51 }
 0x128   :  { %1354 = vmatmul.mubr.f32.gmra.mrb[18].mxu0 %v822_v53  ;;  %1391 = vmatprep.mubr.f32.mxu1 %v928_v54  ;;  %v929_v55 = vmul.f32 %v822_v53, %v822_v53 }
 0x12a   :  { %1392 = vmatmul.mubr.f32.gmra.mrb[18].mxu1 %v929_v55 }
 0x1f3   :  { %v1352_v56 = vpop.f32.mrb[16].mxu0 }
 0x1f4   :  { %v907_v57 = vpop.f32.mrb[17].mxu0 }
 0x1f5   :  { %v1015_v58 = vadd.f32 %v1352_v56, %v907_v57  ;;  %v1390_v59 = vpop.f32.mrb[16].mxu1 }
 0x1f6   :  { %v996_v60 = vpop.f32.mrb[17].mxu1 }
 0x1f7   :  { %v1025_v61 = vadd.f32 %v1390_v59, %v996_v60 }
 0x1fb   :  { %v1355_v62 = vpop.f32.mrb[18].mxu0 }
 0x1fc   :  { %v917_v63 = vpop.f32.mrb[19].mxu0 }
 0x1fd   :  { %v1016_v0 = vadd.f32 %v1015_v58, %v917_v63  ;;  %v1393_v1 = vpop.f32.mrb[18].mxu1 }
 0x1fe   :  { %v1006_v2 = vpop.f32.mrb[19].mxu1 }
 0x1ff   :  { %v1017_v3 = vadd.f32 %v1355_v62, %v1016_v0  ;;  %v1026_v4 = vadd.f32 %v1025_v61, %v1006_v2 }
 0x201   :  { %v1018_v5 = vrot.slane %v1017_v3, 4  ;;  %v1027_v6 = vadd.f32 %v1393_v1, %v1026_v4 }
 0x203   :  { %v1019_v7 = vadd.f32 %v1018_v5, %v1017_v3  ;;  %v1028_v8 = vrot.slane %v1027_v6, 4 }
 0x205   :  { %v1020_v9 = vrot.slane %v1019_v7, 2  ;;  %v1029_v10 = vadd.f32 %v1028_v8, %v1027_v6 }
 0x207   :  { %v1021_v11 = vadd.f32 %v1020_v9, %v1019_v7  ;;  %v1030_v12 = vrot.slane %v1029_v10, 2 }
 0x209   :  { %v1022_v13 = vrot.slane %v1021_v11, 1  ;;  %v1031_v14 = vadd.f32 %v1030_v12, %v1029_v10 }
 0x20b   :  { %v1023_v15 = vadd.f32 %v1022_v13, %v1021_v11  ;;  %v1032_v16 = vrot.slane %v1031_v14, 1 }
 0x20d   :  { %v1024_v17 = vmul.f32 0.0078125, %v1023_v15  ;;  %v1033_v18 = vadd.f32 %v1032_v16, %v1031_v14 }
 0x20f   :  { %v1034_v19 = vmul.f32 0.0078125, %v1033_v18  ;;  %v1035_v20 = vmul.f32 %v1024_v17, %v1024_v17  ;;  %v1040_v30 = vsub.f32 %v1842_v33, %v1024_v17  ;;  %v1041_v31 = vsub.f32 %v1844_v35, %v1024_v17 }
 0x210   :  { %v1042_v32 = vsub.f32 %v819_v51, %v1024_v17  ;;  %v1043_v34 = vsub.f32 %v822_v53, %v1024_v17 }
 0x211   :  { %v1036_v21 = vsub.f32 %v1034_v19, %v1035_v20 }
 0x213   :  { %v1037_v22 = vmax.f32 %v1036_v21, 0.0 }
 0x215   :  { %v1038_v23 = vadd.f32 1e-05, %v1037_v22 }
 0x217   :  { %1522 = vrsqrt.f32 %v1038_v23 }
 0x221   :  { %v1523_v28 = vpop.eup %1522 }
 0x222   :  { %v1045_v29 = vmul.f32 %v1523_v28, %v1044_v26 }
 0x224   :  { %v1049_v36 = vrot.slane %v1045_v29, %v1048_v27 }
 0x226   :  { %v1050_v38 = vmul.f32 %v1049_v36, %v1040_v30  ;;  %v1051_v39 = vmul.f32 %v1049_v36, %v1041_v31  ;;  %v1052_v40 = vmul.f32 %v1049_v36, %v1042_v32  ;;  %v1053_v41 = vmul.f32 %v1049_v36, %v1043_v34 }
 0x228   :  { %v1061_v42 = vadd.f32 %v1165_v37, %v1050_v38  ;;  %v1062_v43 = vadd.f32 %v1165_v37, %v1051_v39  ;;  %v1063_v44 = vadd.f32 %v1165_v37, %v1052_v40  ;;  %v1064_v45 = vadd.f32 %v1165_v37, %v1053_v41 }
 0x22a   :  { %vm1065_vm0 = vcmp.ge.f32.partialorder %v1061_v42, 0.0  ;;  %vm1066_vm1 = vcmp.ge.f32.partialorder %v1062_v43, 0.0  ;;  %vm1067_vm2 = vcmp.ge.f32.partialorder %v1063_v44, 0.0  ;;  %vm1068_vm3 = vcmp.ge.f32.partialorder %v1064_v45, 0.0 }
 0x22b   :  { %v1069_v33 = vmul.f32 0.2, %v1061_v42  ;;  %v1070_v35 = vmul.f32 0.2, %v1062_v43  ;;  %v1071_v46 = vmul.f32 0.2, %v1063_v44 }
 0x22c   :  { %v1072_v47 = vmul.f32 0.2, %v1064_v45 }
 0x22d   :  { %v1073_v48 = vsel %vm1065_vm0, %v1061_v42, %v1069_v33  ;;  %v1074_v49 = vsel %vm1066_vm1, %v1062_v43, %v1070_v35  ;;  %v1075_v50 = vsel %vm1067_vm2, %v1063_v44, %v1071_v46 }
 0x22e   :  { %v1076_v51 = vsel %vm1068_vm3, %v1064_v45, %v1072_v47  ;;  %1077 = vst [vmem:[%s1877_s5] sm:$0xff] %v1073_v48  ;;  %1078 = vst [vmem:[%s1877_s5 + $0x8] sm:$0xff] %v1074_v49 }
 0x22f   :  { %1079 = vst [vmem:[%s1877_s5 + $0x10] sm:$0xff] %v1075_v50  ;;  %1080 = vst [vmem:[%s1877_s5 + $0x18] sm:$0xff] %v1076_v51 }

// kernel: discriminator_forward.7
= control target key start
LH: loop header
LB: loop body
LE: loop exit
PB: predicated region body
PF: predicated region fallthrough
CT: control target
= control target key end

     0   :  { %s1668_s1 = inlined_call_operand.vmem [shape: bf16[1024,128], index: 1, kind: input, shape index: {}]   ;;  %s1669_s0 = inlined_call_operand.vmem [shape: bf16[16,1024], index: 0, kind: input, shape index: {}]   ;;  %s1670_s2 = inlined_call_operand.vmem [shape: f32[128,128], index: 2, kind: input, shape index: {}]   ;;  %s1671_s3 = inlined_call_operand.vmem [shape: f32[1,128], index: 3, kind: input, shape index: {}]   ;;  %s1672_s4 = inlined_call_operand.vmem [shape: f32[1,128], index: 4, kind: input, shape index: {}]   ;;  %s1673_s5 = inlined_call_operand.vmem [shape: f32[16,128], index: 5, kind: output, shape index: {}]  }
   0x1   :  { %v1296_v0 = vld [vmem:[%s1668_s1 + $0x40] sm:$0xff]   ;;  %v1300_v4 = vld [vmem:[%s1668_s1 + $0x48] sm:$0xff]   ;;  %v1304_v8 = vld [vmem:[%s1668_s1 + $0x50] sm:$0xff]  }
   0x2   :  { %v1297_v1 = vld [vmem:[%s1668_s1 + $0xc0] sm:$0xff]   ;;  %1038 = vmatprep.subr.bf16.mxu0 %v1296_v0  ;;  %v1301_v5 = vld [vmem:[%s1668_s1 + $0xc8] sm:$0xff]   ;;  %v1305_v9 = vld [vmem:[%s1668_s1 + $0xd0] sm:$0xff]  }
   0x3   :  { %v1298_v2 = vld [vmem:[%s1668_s1] sm:$0xff]   ;;  %1060 = vmatprep.subr.bf16.mxu1 %v1297_v1  ;;  %v1302_v6 = vld [vmem:[%s1668_s1 + $0x8] sm:$0xff]   ;;  %v1306_v10 = vld [vmem:[%s1668_s1 + $0x10] sm:$0xff]  }
   0x4   :  { %v1299_v3 = vld [vmem:[%s1668_s1 + $0x80] sm:$0xff]   ;;  %1039 = vmatpush3.bf16.msra.mxu0 %v1298_v2  ;;  %v1303_v7 = vld [vmem:[%s1668_s1 + $0x88] sm:$0xff]   ;;  %v1307_v11 = vld [vmem:[%s1668_s1 + $0x90] sm:$0xff]  }
   0x5   :  { %1061 = vmatpush3.bf16.msra.mxu1 %v1299_v3  ;;  %1040 = vmatprep.subr.bf16.mxu0 %v1300_v4  ;;  %v1308_v12 = vld [vmem:[%s1668_s1 + $0x58] sm:$0xff]   ;;  %v1312_v16 = vld [vmem:[%s1668_s1 + $0x60] sm:$0xff]   ;;  %v1316_v20 = vld [vmem:[%s1668_s1 + $0x68] sm:$0xff]  }
   0x6   :  { %1062 = vmatprep.subr.bf16.mxu1 %v1301_v5  ;;  %v1309_v13 = vld [vmem:[%s1668_s1 + $0xd8] sm:$0xff]   ;;  %v1313_v17 = vld [vmem:[%s1668_s1 + $0xe0] sm:$0xff]   ;;  %v1317_v21 = vld [vmem:[%s1668_s1 + $0xe8] sm:$0xff]  }
   0x7   :  { %v1310_v14 = vld [vmem:[%s1668_s1 + $0x18] sm:$0xff]   ;;  %v1314_v18 = vld [vmem:[%s1668_s1 + $0x20] sm:$0xff]   ;;  %v1318_v22 = vld [vmem:[%s1668_s1 + $0x28] sm:$0xff]  }
   0x8   :  { %1041 = vmatpush3.bf16.msra.mxu0 %v1302_v6  ;;  %v1311_v15 = vld [vmem:[%s1668_s1 + $0x98] sm:$0xff]   ;;  %v1315_v19 = vld [vmem:[%s1668_s1 + $0xa0] sm:$0xff]   ;;  %v1319_v23 = vld [vmem:[%s1668_s1 + $0xa8] sm:$0xff]  }
   0x9   :  { %1063 = vmatpush3.bf16.msra.mxu1 %v1303_v7  ;;  %1042 = vmatprep.subr.bf16.mxu0 %v1304_v8  ;;  %v1320_v24 = vld [vmem:[%s1668_s1 + $0x70] sm:$0xff]   ;;  %v1324_v28 = vld [vmem:[%s1668_s1 + $0x78] sm:$0xff]   ;;  %v21_v32 = vld [vmem:[%s1669_s0] sm:$0xff] }
   0xa   :  { %1064 = vmatprep.subr.bf16.mxu1 %v1305_v9  ;;  %v1321_v25 = vld [vmem:[%s1668_s1 + $0xf0] sm:$0xff]   ;;  %v1325_v29 = vld [vmem:[%s1668_s1 + $0xf8] sm:$0xff]   ;;  %v25_v33 = vld [vmem:[%s1669_s0 + $0x20] sm:$0xff] }
   0xb   :  { %v1322_v26 = vld [vmem:[%s1668_s1 + $0x30] sm:$0xff]   ;;  %v1326_v30 = vld [vmem:[%s1668_s1 + $0x38] sm:$0xff]   ;;  %v22_v34 = vld [vmem:[%s1669_s0 + $0x8] sm:$0xff]  ;;  %v965_v35 = vcombine.low %v21_v32, %v25_v33  ;;  %v966_v36 = vcombine.high %v21_v32, %v25_v33 }
   0xc   :  { %1043 = vmatpush3.bf16.msra.mxu0 %v1306_v10  ;;  %v1323_v27 = vld [vmem:[%s1668_s1 + $0xb0] sm:$0xff]   ;;  %v1327_v31 = vld [vmem:[%s1668_s1 + $0xb8] sm:$0xff]   ;;  %v26_v37 = vld [vmem:[%s1669_s0 + $0x28] sm:$0xff] }
   0xd   :  { %1065 = vmatpush3.bf16.msra.mxu1 %v1307_v11  ;;  %1044 = vmatprep.subr.bf16.mxu0 %v1308_v12  ;;  %v967_v38 = vcombine.low %v22_v34, %v26_v37  ;;  %v968_v39 = vcombine.high %v22_v34, %v26_v37  ;;  %v1328_v40 = vld [vmem:[%s1668_s1 + $0x140] sm:$0xff]   ;;  %v1332_v44 = vld [vmem:[%s1668_s1 + $0x148] sm:$0xff]   ;;  %v1336_v48 = vld [vmem:[%s1668_s1 + $0x150] sm:$0xff]  }
   0xe   :  { %1066 = vmatprep.subr.bf16.mxu1 %v1309_v13  ;;  %613 = vmatprep.mubr.bf16.mxu0 %v966_v36  ;;  %v1329_v41 = vld [vmem:[%s1668_s1 + $0x1c0] sm:$0xff]   ;;  %v1333_v45 = vld [vmem:[%s1668_s1 + $0x1c8] sm:$0xff]   ;;  %v1337_v49 = vld [vmem:[%s1668_s1 + $0x1d0] sm:$0xff]  }
   0xf   :  { %654 = vmatprep.mubr.bf16.mxu1 %v968_v39  ;;  %v1330_v42 = vld [vmem:[%s1668_s1 + $0x100] sm:$0xff]   ;;  %v1334_v46 = vld [vmem:[%s1668_s1 + $0x108] sm:$0xff]   ;;  %v1338_v50 = vld [vmem:[%s1668_s1 + $0x110] sm:$0xff]  }
  0x10   :  { %1045 = vmatpush3.bf16.msra.mxu0 %v1310_v14  ;;  %v1331_v43 = vld [vmem:[%s1668_s1 + $0x180] sm:$0xff]   ;;  %v1335_v47 = vld [vmem:[%s1668_s1 + $0x188] sm:$0xff]   ;;  %v1339_v51 = vld [vmem:[%s1668_s1 + $0x190] sm:$0xff]  }
  0x11   :  { %1067 = vmatpush3.bf16.msra.mxu1 %v1311_v15  ;;  %1046 = vmatprep.subr.bf16.mxu0 %v1312_v16  ;;  %v1340_v52 = vld [vmem:[%s1668_s1 + $0x158] sm:$0xff]   ;;  %v1344_v56 = vld [vmem:[%s1668_s1 + $0x160] sm:$0xff]   ;;  %v1348_v60 = vld [vmem:[%s1668_s1 + $0x168] sm:$0xff]  }
  0x12   :  { %1068 = vmatprep.subr.bf16.mxu1 %v1313_v17  ;;  %v1341_v53 = vld [vmem:[%s1668_s1 + $0x1d8] sm:$0xff]   ;;  %v1345_v57 = vld [vmem:[%s1668_s1 + $0x1e0] sm:$0xff]   ;;  %v1349_v61 = vld [vmem:[%s1668_s1 + $0x1e8] sm:$0xff]  }
  0x13   :  { %v1342_v54 = vld [vmem:[%s1668_s1 + $0x118] sm:$0xff]   ;;  %v1346_v58 = vld [vmem:[%s1668_s1 + $0x120] sm:$0xff]   ;;  %v1350_v62 = vld [vmem:[%s1668_s1 + $0x128] sm:$0xff]  }
  0x14   :  { %1047 = vmatpush3.bf16.msra.mxu0 %v1314_v18  ;;  %v1343_v55 = vld [vmem:[%s1668_s1 + $0x198] sm:$0xff]   ;;  %v1347_v59 = vld [vmem:[%s1668_s1 + $0x1a0] sm:$0xff]   ;;  %v1351_v63 = vld [vmem:[%s1668_s1 + $0x1a8] sm:$0xff]  }
  0x15   :  { %1069 = vmatpush3.bf16.msra.mxu1 %v1315_v19  ;;  %1048 = vmatprep.subr.bf16.mxu0 %v1316_v20  ;;  %v1352_v0 = vld [vmem:[%s1668_s1 + $0x170] sm:$0xff]   ;;  %v1356_v4 = vld [vmem:[%s1668_s1 + $0x178] sm:$0xff]   ;;  %v745_v16 = vld [vmem:[%s1670_s2] sm:$0xff] }
  0x16   :  { %1070 = vmatprep.subr.bf16.mxu1 %v1317_v21  ;;  %v1353_v1 = vld [vmem:[%s1668_s1 + $0x1f0] sm:$0xff]   ;;  %v1357_v5 = vld [vmem:[%s1668_s1 + $0x1f8] sm:$0xff]   ;;  %v746_v17 = vld [vmem:[%s1670_s2 + $0x8] sm:$0xff] }
  0x17   :  { %v1354_v2 = vld [vmem:[%s1668_s1 + $0x130] sm:$0xff]   ;;  %v1358_v6 = vld [vmem:[%s1668_s1 + $0x138] sm:$0xff]   ;;  %v1232_v19 = vpack.c.bf16 %v746_v17, %v745_v16  ;;  %v757_v34 = vld [vmem:[%s1670_s2 + $0x60] sm:$0xff] }
  0x18   :  { %1049 = vmatpush3.bf16.msra.mxu0 %v1318_v22  ;;  %v1355_v3 = vld [vmem:[%s1668_s1 + $0x1b0] sm:$0xff]   ;;  %v1359_v7 = vld [vmem:[%s1668_s1 + $0x1b8] sm:$0xff]   ;;  %v749_v22 = vld [vmem:[%s1670_s2 + $0x20] sm:$0xff] }
  0x19   :  { %1071 = vmatpush3.bf16.msra.mxu1 %v1319_v23  ;;  %1050 = vmatprep.subr.bf16.mxu0 %v1320_v24  ;;  %v23_v8 = vld [vmem:[%s1669_s0 + $0x10] sm:$0xff]  ;;  %v24_v12 = vld [vmem:[%s1669_s0 + $0x18] sm:$0xff]  ;;  %v750_v23 = vld [vmem:[%s1670_s2 + $0x28] sm:$0xff] }
  0x1a   :  { %1072 = vmatprep.subr.bf16.mxu1 %v1321_v25  ;;  %v27_v9 = vld [vmem:[%s1669_s0 + $0x30] sm:$0xff]  ;;  %v28_v13 = vld [vmem:[%s1669_s0 + $0x38] sm:$0xff]  ;;  %v1240_v24 = vpack.c.bf16 %v750_v23, %v749_v22 }
  0x1b   :  { %v969_v10 = vcombine.low %v23_v8, %v27_v9  ;;  %v970_v11 = vcombine.high %v23_v8, %v27_v9  ;;  %v971_v14 = vcombine.low %v24_v12, %v28_v13  ;;  %v972_v15 = vcombine.high %v24_v12, %v28_v13  ;;  %v747_v18 = vld [vmem:[%s1670_s2 + $0x10] sm:$0xff]  ;;  %v748_v20 = vld [vmem:[%s1670_s2 + $0x18] sm:$0xff] }
  0x1c   :  { %1051 = vmatpush3.bf16.msra.mxu0 %v1322_v26  ;;  %v1236_v21 = vpack.c.bf16 %v748_v20, %v747_v18  ;;  %v751_v25 = vld [vmem:[%s1670_s2 + $0x30] sm:$0xff]  ;;  %v752_v26 = vld [vmem:[%s1670_s2 + $0x38] sm:$0xff] }
  0x1d   :  { %1073 = vmatpush3.bf16.msra.mxu1 %v1323_v27  ;;  %1052 = vmatprep.subr.bf16.mxu0 %v1324_v28  ;;  %v1244_v27 = vpack.c.bf16 %v752_v26, %v751_v25  ;;  %v753_v28 = vld [vmem:[%s1670_s2 + $0x40] sm:$0xff]  ;;  %v756_v32 = vld [vmem:[%s1670_s2 + $0x58] sm:$0xff]  ;;  %v759_v37 = vld [vmem:[%s1670_s2 + $0x70] sm:$0xff] }
  0x1e   :  { %1074 = vmatprep.subr.bf16.mxu1 %v1325_v29  ;;  %v754_v29 = vld [vmem:[%s1670_s2 + $0x48] sm:$0xff] }
  0x20   :  { %1053 = vmatpush3.bf16.msra.mxu0 %v1326_v30  ;;  %v1248_v30 = vpack.c.bf16 %v754_v29, %v753_v28 }
  0x21   :  { %1075 = vmatpush3.bf16.msra.mxu1 %v1327_v31  ;;  %1082 = vmatprep.subr.bf16.mxu0 %v1328_v40  ;;  %v755_v31 = vld [vmem:[%s1670_s2 + $0x50] sm:$0xff] }
  0x22   :  { %1104 = vmatprep.subr.bf16.mxu1 %v1329_v41  ;;  %v1252_v33 = vpack.c.bf16 %v756_v32, %v755_v31  ;;  %v938_v32 = vlaneseq }
  0x23   :  { %614 = vmatmul.mubr.bf16.vlgmr.msra.gmra.mrb[0].mxu0 %v965_v35  ;;  %v758_v35 = vld [vmem:[%s1670_s2 + $0x68] sm:$0xff] }
  0x24   :  { %655 = vmatmul.mubr.bf16.vlgmr.msra.gmra.mrb[0].mxu1 %v967_v38  ;;  %1083 = vmatpush3.bf16.msra.mxu0 %v1330_v42  ;;  %v1256_v36 = vpack.c.bf16 %v758_v35, %v757_v34  ;;  %v760_v38 = vld [vmem:[%s1670_s2 + $0x78] sm:$0xff]  ;;  %v936_v34 = vld [vmem:[%s1671_s3] sm:$0x1] }
  0x25   :  { %1105 = vmatpush3.bf16.msra.mxu1 %v1331_v43  ;;  %1084 = vmatprep.subr.bf16.mxu0 %v1332_v44  ;;  %v1260_v39 = vpack.c.bf16 %v760_v38, %v759_v37 }
  0x26   :  { %1106 = vmatprep.subr.bf16.mxu1 %v1333_v45  ;;  %695 = vmatprep.mubr.bf16.mxu0 %v970_v11 }
  0x27   :  { %736 = vmatprep.mubr.bf16.mxu1 %v972_v15 }
  0x28   :  { %1085 = vmatpush3.bf16.msra.mxu0 %v1334_v46 }
  0x29   :  { %1107 = vmatpush3.bf16.msra.mxu1 %v1335_v47  ;;  %1086 = vmatprep.subr.bf16.mxu0 %v1336_v48 }
  0x2a   :  { %1108 = vmatprep.subr.bf16.mxu1 %v1337_v49 }
  0x2c   :  { %1087 = vmatpush3.bf16.msra.mxu0 %v1338_v50 }
  0x2d   :  { %1109 = vmatpush3.bf16.msra.mxu1 %v1339_v51  ;;  %1088 = vmatprep.subr.bf16.mxu0 %v1340_v52 }
  0x2e   :  { %1110 = vmatprep.subr.bf16.mxu1 %v1341_v53 }
  0x30   :  { %1089 = vmatpush3.bf16.msra.mxu0 %v1342_v54 }
  0x31   :  { %1111 = vmatpush3.bf16.msra.mxu1 %v1343_v55  ;;  %1090 = vmatprep.subr.bf16.mxu0 %v1344_v56 }
  0x32   :  { %1112 = vmatprep.subr.bf16.mxu1 %v1345_v57 }
  0x34   :  { %1091 = vmatpush3.bf16.msra.mxu0 %v1346_v58 }
  0x35   :  { %1113 = vmatpush3.bf16.msra.mxu1 %v1347_v59  ;;  %1092 = vmatprep.subr.bf16.mxu0 %v1348_v60 }
  0x36   :  { %1114 = vmatprep.subr.bf16.mxu1 %v1349_v61 }
  0x38   :  { %1093 = vmatpush3.bf16.msra.mxu0 %v1350_v62 }
  0x39   :  { %1115 = vmatpush3.bf16.msra.mxu1 %v1351_v63  ;;  %1094 = vmatprep.subr.bf16.mxu0 %v1352_v0 }
  0x3a   :  { %1116 = vmatprep.subr.bf16.mxu1 %v1353_v1 }
  0x3c   :  { %1095 = vmatpush3.bf16.msra.mxu0 %v1354_v2 }
  0x3d   :  { %1117 = vmatpush3.bf16.msra.mxu1 %v1355_v3  ;;  %1096 = vmatprep.subr.bf16.mxu0 %v1356_v4 }
  0x3e   :  { %1118 = vmatprep.subr.bf16.mxu1 %v1357_v5 }
  0x40   :  { %1097 = vmatpush3.bf16.msra.mxu0 %v1358_v6 }
  0x41   :  { %1119 = vmatpush3.bf16.msra.mxu1 %v1359_v7  ;;  %1233 = vmatprep.subr.bf16.mxu0 %v1232_v19 }
  0x42   :  { %1265 = vmatprep.subr.bf16.mxu1 %v1232_v19 }
  0x43   :  { %696 = vmatmul.mubr.bf16.vlgmr.msra.gmra.mrb[4].mxu0 %v969_v10 }
  0x44   :  { %737 = vmatmul.mubr.bf16.vlgmr.msra.gmra.mrb[4].mxu1 %v971_v14  ;;  %1235 = vmatpush3.bf16.msra.mxu0 %v1232_v19 }
  0x45   :  { %1267 = vmatpush3.bf16.msra.mxu1 %v1232_v19  ;;  %1237 = vmatprep.subr.bf16.mxu0 %v1236_v21 }
  0x46   :  { %1269 = vmatprep.subr.bf16.mxu1 %v1236_v21 }
  0x48   :  { %1239 = vmatpush3.bf16.msra.mxu0 %v1236_v21 }
  0x49   :  { %1271 = vmatpush3.bf16.msra.mxu1 %v1236_v21  ;;  %1241 = vmatprep.subr.bf16.mxu0 %v1240_v24 }
  0x4a   :  { %1273 = vmatprep.subr.bf16.mxu1 %v1240_v24 }
  0x4c   :  { %1243 = vmatpush3.bf16.msra.mxu0 %v1240_v24 }
  0x4d   :  { %1275 = vmatpush3.bf16.msra.mxu1 %v1240_v24  ;;  %1245 = vmatprep.subr.bf16.mxu0 %v1244_v27 }
  0x4e   :  { %1277 = vmatprep.subr.bf16.mxu1 %v1244_v27 }
  0x50   :  { %1247 = vmatpush3.bf16.msra.mxu0 %v1244_v27 }
  0x51   :  { %1279 = vmatpush3.bf16.msra.mxu1 %v1244_v27  ;;  %1249 = vmatprep.subr.bf16.mxu0 %v1248_v30 }
  0x52   :  { %1281 = vmatprep.subr.bf16.mxu1 %v1248_v30 }
  0x54   :  { %1251 = vmatpush3.bf16.msra.mxu0 %v1248_v30 }
  0x55   :  { %1283 = vmatpush3.bf16.msra.mxu1 %v1248_v30  ;;  %1253 = vmatprep.subr.bf16.mxu0 %v1252_v33 }
  0x56   :  { %1285 = vmatprep.subr.bf16.mxu1 %v1252_v33 }
  0x58   :  { %1255 = vmatpush3.bf16.msra.mxu0 %v1252_v33 }
  0x59   :  { %1287 = vmatpush3.bf16.msra.mxu1 %v1252_v33  ;;  %1257 = vmatprep.subr.bf16.mxu0 %v1256_v36  ;;  %v939_v33 = vshrl.u32 %v938_v32, 7 }
  0x5a   :  { %1289 = vmatprep.subr.bf16.mxu1 %v1256_v36 }
  0x5b   :  { %v940_v35 = vsub.s32 0, %v939_v33 }
  0x5c   :  { %1259 = vmatpush3.bf16.msra.mxu0 %v1256_v36 }
  0x5d   :  { %1291 = vmatpush3.bf16.msra.mxu1 %v1256_v36  ;;  %1261 = vmatprep.subr.bf16.mxu0 %v1260_v39 }
  0x5e   :  { %1293 = vmatprep.subr.bf16.mxu1 %v1260_v39 }
  0x60   :  { %1263 = vmatpush3.bf16.msra.mxu0 %v1260_v39 }
  0x61   :  { %1295 = vmatpush3.bf16.msra.mxu1 %v1260_v39 }
  0xf6   :  { %v1054_v40 = vpop.f32.mrb[0].mxu0 }
  0xf7   :  { %v1076_v41 = vpop.f32.mrb[0].mxu1  ;;  %v1055_v42 = vpop.f32.mrb[1].mxu0 }
  0xf8   :  { %v1056_v43 = vadd.f32 %v1055_v42, %v1054_v40  ;;  %v1077_v44 = vpop.f32.mrb[1].mxu1  ;;  %v1057_v45 = vpop.f32.mrb[2].mxu0 }
  0xf9   :  { %v1078_v46 = vadd.f32 %v1077_v44, %v1076_v41  ;;  %v1079_v47 = vpop.f32.mrb[2].mxu1  ;;  %v1058_v48 = vpop.f32.mrb[3].mxu0  ;;  %v1037_v41 = vld [vmem:[%s1672_s4] ss:$0 sm:$0xff] }
  0xfa   :  { %v1059_v49 = vadd.f32 %v1058_v48, %v1057_v45  ;;  %v1080_v50 = vpop.f32.mrb[3].mxu1 }
  0xfb   :  { %v657_v51 = vadd.f32 %v1078_v46, %v1056_v43  ;;  %v1081_v52 = vadd.f32 %v1080_v50, %v1079_v47 }
  0xfd   :  { %v660_v53 = vadd.f32 %v1081_v52, %v1059_v49 }
 0x116   :  { %v1098_v54 = vpop.f32.mrb[4].mxu0 }
 0x117   :  { %v1120_v55 = vpop.f32.mrb[4].mxu1  ;;  %v1099_v56 = vpop.f32.mrb[5].mxu0 }
 0x118   :  { %v1100_v57 = vadd.f32 %v1099_v56, %v1098_v54  ;;  %v1121_v58 = vpop.f32.mrb[5].mxu1  ;;  %v1101_v59 = vpop.f32.mrb[6].mxu0 }
 0x119   :  { %v1122_v60 = vadd.f32 %v1121_v58, %v1120_v55  ;;  %v1123_v61 = vpop.f32.mrb[6].mxu1  ;;  %v1102_v62 = vpop.f32.mrb[7].mxu0 }
 0x11a   :  { %v698_v63 = vadd.f32 %v1100_v57, %v657_v51  ;;  %v1103_v0 = vadd.f32 %v1102_v62, %v1101_v59  ;;  %v1124_v1 = vpop.f32.mrb[7].mxu1 }
 0x11b   :  { %v1125_v2 = vadd.f32 %v1124_v1, %v1123_v61 }
 0x11c   :  { %v739_v3 = vadd.f32 %v1122_v60, %v698_v63  ;;  %v701_v4 = vadd.f32 %v1103_v0, %v660_v53 }
 0x11e   :  { %v742_v5 = vadd.f32 %v1125_v2, %v701_v4  ;;  %1194 = vmatprep.mubr.f32.mxu0 %v739_v3  ;;  %v836_v6 = vmul.f32 %v739_v3, %v739_v3 }
 0x120   :  { %v837_v7 = vmul.f32 %v742_v5, %v742_v5  ;;  %1195 = vmatmul.mubr.f32.vlgmr.msra.gmra.mrb[8].mxu0 %v742_v5  ;;  %1229 = vmatprep.mubr.f32.mxu1 %v836_v6 }
 0x122   :  { %1230 = vmatmul.mubr.f32.vlgmr.msra.gmra.mrb[8].mxu1 %v837_v7 }
 0x1f3   :  { %v1196_v8 = vpop.f32.mrb[8].mxu0 }
 0x1f4   :  { %v827_v9 = vpop.f32.mrb[9].mxu0 }
 0x1f5   :  { %v913_v10 = vadd.f32 %v1196_v8, %v827_v9  ;;  %v1231_v11 = vpop.f32.mrb[8].mxu1 }
 0x1f6   :  { %v904_v12 = vpop.f32.mrb[9].mxu1 }
 0x1f7   :  { %v914_v13 = vrot.slane %v913_v10, 4  ;;  %v921_v14 = vadd.f32 %v1231_v11, %v904_v12 }
 0x1f9   :  { %v915_v15 = vadd.f32 %v914_v13, %v913_v10  ;;  %v922_v16 = vrot.slane %v921_v14, 4 }
 0x1fb   :  { %v916_v17 = vrot.slane %v915_v15, 2  ;;  %v923_v18 = vadd.f32 %v922_v16, %v921_v14 }
 0x1fd   :  { %v917_v19 = vadd.f32 %v916_v17, %v915_v15  ;;  %v924_v20 = vrot.slane %v923_v18, 2 }
 0x1ff   :  { %v918_v21 = vrot.slane %v917_v19, 1  ;;  %v925_v22 = vadd.f32 %v924_v20, %v923_v18 }
 0x201   :  { %v919_v23 = vadd.f32 %v918_v21, %v917_v19  ;;  %v926_v24 = vrot.slane %v925_v22, 1 }
 0x203   :  { %v920_v25 = vmul.f32 0.03125, %v919_v23  ;;  %v927_v26 = vadd.f32 %v926_v24, %v925_v22 }
 0x205   :  { %v928_v27 = vmul.f32 0.03125, %v927_v26  ;;  %v929_v28 = vmul.f32 %v920_v25, %v920_v25  ;;  %v934_v38 = vsub.f32 %v739_v3, %v920_v25  ;;  %v935_v39 = vsub.f32 %v742_v5, %v920_v25 }
 0x207   :  { %v930_v29 = vsub.f32 %v928_v27, %v929_v28 }
 0x209   :  { %v931_v30 = vmax.f32 %v930_v29, 0.0 }
 0x20b   :  { %v932_v31 = vadd.f32 1e-05, %v931_v30 }
 0x20d   :  { %1360 = vrsqrt.f32 %v932_v31 }
 0x217   :  { %v1361_v36 = vpop.eup %1360 }
 0x218   :  { %v937_v37 = vmul.f32 %v1361_v36, %v936_v34 }
 0x21a   :  { %v941_v40 = vrot.slane %v937_v37, %v940_v35 }
 0x21c   :  { %v942_v42 = vmul.f32 %v941_v40, %v934_v38  ;;  %v943_v43 = vmul.f32 %v941_v40, %v935_v39 }
 0x21e   :  { %v951_v44 = vadd.f32 %v1037_v41, %v942_v42  ;;  %v952_v45 = vadd.f32 %v1037_v41, %v943_v43 }
 0x220   :  { %vm953_vm0 = vcmp.ge.f32.partialorder %v951_v44, 0.0  ;;  %vm954_vm1 = vcmp.ge.f32.partialorder %v952_v45, 0.0  ;;  %v955_v46 = vmul.f32 0.2, %v951_v44  ;;  %v956_v47 = vmul.f32 0.2, %v952_v45 }
 0x222   :  { %v957_v48 = vsel %vm953_vm0, %v951_v44, %v955_v46  ;;  %v958_v49 = vsel %vm954_vm1, %v952_v45, %v956_v47 }
 0x223   :  { %959 = vst [vmem:[%s1673_s5] sm:$0xff] %v957_v48  ;;  %960 = vst [vmem:[%s1673_s5 + $0x8] sm:$0xff] %v958_v49 }

</bundles_post_ra>
